<compile_context>
chip_gen: v7x
topology: tpu7x:2x2x1
jax: 0.10.0
libtpu: 0.0.40
codegen_flags: <defaults>
</compile_context>

<pallas_src>
import jax
import jax.numpy as jnp
from jax.experimental import pallas as pl
from jax.experimental.pallas import tpu as pltpu

# ---- model dimensions (channel sizes fixed by the module) ----
NS = 2           # samples; stands in for the hard-coded 509 in x.view(509, 6, 128)
T = 6            # fixed by the module's view(., 6, 128)
L = 16           # Conv1d input length (small demo length)
C_IN = 7
C_H = 128
KS = 3
PAD = 2

# ---- derived conv-canvas geometry (k=3, pad=2 -> each conv grows length by 2) ----
L1 = L + 2 * PAD - (KS - 1)      # conv1 output length  (L + 2)
L2 = L1 + 2 * PAD - (KS - 1)     # conv2 output length  (L + 4)
L3 = L2 + 2 * PAD - (KS - 1)     # conv3 output length  (L + 6), pooled over this
LS = 3 * PAD + L                 # canvas rows per sample == L + 6 == L3 (tight)

# ---- tiling knobs ----
NB_CNN = 16                      # samples per grid step -> MB matmul rows per conv tap
                                 # (raise to 64-128 at real scale: 509*6 = 3054 rows)
MB = NB_CNN * LS
TAIL = 8                         # zeroed tail rows: last taps of the last segment read zeros

# MXU operand dtype.  f32 keeps the 2e-3 check vs the f32 reference exact; switch to
# jnp.bfloat16 on v6e/v7x for ~2x MXU throughput (re-validate tolerance).
MXU_DTYPE = jnp.float32


def _mxu_dot(a, b):
    return jnp.dot(a.astype(MXU_DTYPE), b.astype(MXU_DTYPE),
                   preferred_element_type=jnp.float32)


# =====================================================================
# Kernel: one grid step handles NB_CNN samples.
#   layer-1 input canvas (built in wrapper): x at segment rows [6, 6+L), zeros elsewhere
#   layer-1 output valid at segment rows [4, LS)  -> masked (m1), becomes layer-2 canvas
#   layer-2 output valid at segment rows [2, LS)  -> masked (m2), becomes layer-3 canvas
#   layer-3 output valid at segment rows [0, LS)  -> segmented mean via pool matmul
# =====================================================================
def _cnn_kernel(x_ref, m1_ref, m2_ref, pool_ref,
                w1_ref, b1_ref, w2_ref, b2_ref, w3_ref, b3_ref,
                o_ref, cv_ref):
    # keep the scratch tail rows finite: they only feed masked-out / padded tap positions
    cv_ref[MB:MB + TAIL, :] = jnp.zeros((TAIL, C_H), jnp.float32)

    def conv_taps(read, w_ref):
        d = _mxu_dot(read(0), w_ref[0])
        d = d + _mxu_dot(read(1), w_ref[1])
        d = d + _mxu_dot(read(2), w_ref[2])
        return d

    # ---- layer 1: taps read the HBM-streamed input canvas ----
    d = conv_taps(lambda k: x_ref[k:MB + k, :], w1_ref)
    cv_ref[0:MB, :] = jnp.maximum(d + b1_ref[...], 0.0) * m1_ref[...]

    # ---- layer 2: taps read the canvas scratch ----
    d = conv_taps(lambda k: cv_ref[k:MB + k, :], w2_ref)
    cv_ref[0:MB, :] = jnp.maximum(d + b2_ref[...], 0.0) * m2_ref[...]

    # ---- layer 3 + AdaptiveAvgPool1d(1): segmented mean folded into one matmul ----
    d = conv_taps(lambda k: cv_ref[k:MB + k, :], w3_ref)
    h3 = jnp.maximum(d + b3_ref[...], 0.0)                    # (MB, 128)
    o_ref[...] = _mxu_dot(pool_ref[...], h3)                  # (NB_CNN, 128)


def cnn1d_encoder(x_ncl, p):
    """x_ncl: (N, 7, L) with N = samples*T.  Returns (samples, T, 128),
    matching the module's `x.view(509, 6, 128)` (509 replaced by the demo sample count)."""
    n = x_ncl.shape[0]

    # layer-1 canvas: x placed at segment rows [3*PAD, 3*PAD+L); zeros elsewhere encode padding
    x_nlc = jnp.transpose(x_ncl, (0, 2, 1)).astype(jnp.float32)         # (N, L, 7)
    canvas = jnp.zeros((n, LS, C_IN), jnp.float32)
    canvas = canvas.at[:, 3 * PAD:3 * PAD + L, :].set(x_nlc)

    nblk = pl.cdiv(n, NB_CNN)
    n_pad = nblk * NB_CNN
    canvas = jnp.pad(canvas, ((0, n_pad - n), (0, 0), (0, 0)))
    canvas = canvas.reshape(nblk, MB, C_IN)
    canvas = jnp.pad(canvas, ((0, 0), (0, TAIL), (0, 0)))               # zero tail rows / block
    canvas = canvas.reshape(nblk * (MB + TAIL), C_IN)

    # valid-range masks + segmented-mean pooling matrix (compile-time constants)
    pos = jnp.arange(MB) % LS
    seg = jnp.arange(MB) // LS
    m1 = (pos >= 2 * PAD).astype(jnp.float32)[:, None]                  # layer-1 valid: [4, LS)
    m2 = (pos >= PAD).astype(jnp.float32)[:, None]                      # layer-2 valid: [2, LS)
    pool = (seg[None, :] == jnp.arange(NB_CNN)[:, None]).astype(jnp.float32) / L3

    feats = pl.pallas_call(
        _cnn_kernel,
        out_shape=jax.ShapeDtypeStruct((n_pad, C_H), jnp.float32),
        grid_spec=pltpu.PrefetchScalarGridSpec(
            num_scalar_prefetch=0,
            grid=(nblk,),
            in_specs=[
                pl.BlockSpec((MB + TAIL, C_IN), lambda i: (i, 0)),
                pl.BlockSpec((MB, 1), lambda i: (0, 0)),
                pl.BlockSpec((MB, 1), lambda i: (0, 0)),
                pl.BlockSpec((NB_CNN, MB), lambda i: (0, 0)),
                pl.BlockSpec((KS, C_IN, C_H), lambda i: (0, 0, 0)),
                pl.BlockSpec((1, C_H), lambda i: (0, 0)),
                pl.BlockSpec((KS, C_H, C_H), lambda i: (0, 0, 0)),
                pl.BlockSpec((1, C_H), lambda i: (0, 0)),
                pl.BlockSpec((KS, C_H, C_H), lambda i: (0, 0, 0)),
                pl.BlockSpec((1, C_H), lambda i: (0, 0)),
            ],
            out_specs=pl.BlockSpec((NB_CNN, C_H), lambda i: (i, 0)),
            scratch_shapes=[pltpu.VMEM((MB + TAIL, C_H), jnp.float32)],
        ),
        compiler_params=pltpu.CompilerParams(dimension_semantics=("parallel",)),
    )(canvas, m1, m2, pool,
      p['w1'], p['b1'], p['w2'], p['b2'], p['w3'], p['b3'])

    return feats[:n].reshape(n // T, T, C_H)


# =====================================================================
# Deterministic synthetic parameters (kernel-friendly layout: (K, Cin, Cout))
# =====================================================================
def init_params(key):
    ks = jax.random.split(key, 6)
    s = 0.05
    return {
        'w1': s * jax.random.normal(ks[0], (KS, C_IN, C_H), jnp.float32),
        'b1': s * jax.random.normal(ks[1], (1, C_H), jnp.float32),
        'w2': s * jax.random.normal(ks[2], (KS, C_H, C_H), jnp.float32),
        'b2': s * jax.random.normal(ks[3], (1, C_H), jnp.float32),
        'w3': s * jax.random.normal(ks[4], (KS, C_H, C_H), jnp.float32),
        'b3': s * jax.random.normal(ks[5], (1, C_H), jnp.float32),
    }


# =====================================================================
# Pure-JAX reference for a numerical sanity check
# =====================================================================
def reference_forward(x_ncl, p):
    def conv_relu(h, w_kio, b_row):
        w = jnp.transpose(w_kio, (2, 1, 0))        # (Cout, Cin, K) == PyTorch Conv1d layout
        out = jax.lax.conv_general_dilated(
            h, w, window_strides=(1,), padding=[(PAD, PAD)],
            dimension_numbers=('NCH', 'OIH', 'NCH'))
        return jax.nn.relu(out + b_row[0][None, :, None])

    h = conv_relu(x_ncl, p['w1'], p['b1'])
    h = conv_relu(h, p['w2'], p['b2'])
    h = conv_relu(h, p['w3'], p['b3'])
    feats = jnp.mean(h, axis=2)                    # AdaptiveAvgPool1d(1)
    return feats.reshape(x_ncl.shape[0] // T, T, C_H)


if __name__ == "__main__":
    key = jax.random.PRNGKey(0)
    k_x, k_p = jax.random.split(key, 2)
    x = jax.random.normal(k_x, (NS * T, C_IN, L), jnp.float32)
    params = init_params(k_p)

    fwd = jax.jit(cnn1d_encoder)
    out = jax.block_until_ready(fwd(x, params))
    assert out.shape == (NS, T, C_H), out.shape

    ref = reference_forward(x, params)
    err = float(jnp.max(jnp.abs(out - ref)))
    if not err < 2e-3:
        raise AssertionError(f"kernel/reference mismatch: max abs err {err}")

    print("KERNEL_OK")
</pallas_src>

<mosaic_0001>
module attributes {stable_mosaic.version = 11 : i64} {
  func.func @_cnn_kernel(%arg0: i32, %arg1: memref<360x7xf32, #tpu.memory_space<vmem>>, %arg2: memref<352x1xf32, #tpu.memory_space<vmem>>, %arg3: memref<352x1xf32, #tpu.memory_space<vmem>>, %arg4: memref<16x352xf32, #tpu.memory_space<vmem>>, %arg5: memref<3x7x128xf32, #tpu.memory_space<vmem>>, %arg6: memref<1x128xf32, #tpu.memory_space<vmem>>, %arg7: memref<3x128x128xf32, #tpu.memory_space<vmem>>, %arg8: memref<1x128xf32, #tpu.memory_space<vmem>>, %arg9: memref<3x128x128xf32, #tpu.memory_space<vmem>>, %arg10: memref<1x128xf32, #tpu.memory_space<vmem>>, %arg11: memref<16x128xf32, #tpu.memory_space<vmem>>, %arg12: memref<360x128xf32, #tpu.memory_space<vmem>>) attributes {dimension_semantics = [#tpu.dimension_semantics<parallel>], iteration_bounds = array<i64: 1>, scalar_prefetch = 0 : i64, scratch_operands = 1 : i64, tpu.core_type = #tpu.core_type<tc>, window_params = [{transform_indices = @transform_0, window_bounds = array<i64: 360, 7>}, {pipeline_mode = #tpu.pipeline_mode<synchronous>, transform_indices = @transform_1, window_bounds = array<i64: 352, 1>}, {pipeline_mode = #tpu.pipeline_mode<synchronous>, transform_indices = @transform_2, window_bounds = array<i64: 352, 1>}, {pipeline_mode = #tpu.pipeline_mode<synchronous>, transform_indices = @transform_3, window_bounds = array<i64: 16, 352>}, {pipeline_mode = #tpu.pipeline_mode<synchronous>, transform_indices = @transform_4, window_bounds = array<i64: 3, 7, 128>}, {pipeline_mode = #tpu.pipeline_mode<synchronous>, transform_indices = @transform_5, window_bounds = array<i64: 1, 128>}, {pipeline_mode = #tpu.pipeline_mode<synchronous>, transform_indices = @transform_6, window_bounds = array<i64: 3, 128, 128>}, {pipeline_mode = #tpu.pipeline_mode<synchronous>, transform_indices = @transform_7, window_bounds = array<i64: 1, 128>}, {pipeline_mode = #tpu.pipeline_mode<synchronous>, transform_indices = @transform_8, window_bounds = array<i64: 3, 128, 128>}, {pipeline_mode = #tpu.pipeline_mode<synchronous>, transform_indices = @transform_9, window_bounds = array<i64: 1, 128>}, {transform_indices = @transform_10, window_bounds = array<i64: 16, 128>}]} {
    %cst = arith.constant 0.000000e+00 : f32
    %0 = vector.broadcast %cst : f32 to vector<8x128xf32>
    %c352 = arith.constant 352 : index
    %c0 = arith.constant 0 : index
    %1 = vector.load %arg12[%c352, %c0] : memref<360x128xf32, #tpu.memory_space<vmem>>, vector<8x128xf32>
    tpu.vector_store %arg12[%c352, %c0], %0 {strides = array<i32>} : memref<360x128xf32, #tpu.memory_space<vmem>>, vector<8x128xf32>,
    %c0_0 = arith.constant 0 : index
    %c0_1 = arith.constant 0 : index
    %2 = vector.load %arg1[%c0_0, %c0_1] : memref<360x7xf32, #tpu.memory_space<vmem>>, vector<352x7xf32>
    %c0_2 = arith.constant 0 : index
    %c0_3 = arith.constant 0 : index
    %c0_4 = arith.constant 0 : index
    %3 = vector.load %arg5[%c0_2, %c0_3, %c0_4] : memref<3x7x128xf32, #tpu.memory_space<vmem>>, vector<1x7x128xf32>
    %4 = vector.shape_cast %3 : vector<1x7x128xf32> to vector<7x128xf32>
    %cst_5 = arith.constant dense<0.000000e+00> : vector<352x128xf32>
    %5 = tpu.matmul %2, %4, %cst_5 {dimension_numbers = #tpu.dot_dimension_numbers<[1], [0], [0], [1], [0, 0, 1, 1], [], []>} : vector<352x7xf32>, vector<7x128xf32>, vector<352x128xf32> -> vector<352x128xf32>
    %c1 = arith.constant 1 : index
    %c0_6 = arith.constant 0 : index
    %6 = vector.load %arg1[%c1, %c0_6] : memref<360x7xf32, #tpu.memory_space<vmem>>, vector<352x7xf32>
    %c1_7 = arith.constant 1 : index
    %c0_8 = arith.constant 0 : index
    %c0_9 = arith.constant 0 : index
    %7 = vector.load %arg5[%c1_7, %c0_8, %c0_9] : memref<3x7x128xf32, #tpu.memory_space<vmem>>, vector<1x7x128xf32>
    %8 = vector.shape_cast %7 : vector<1x7x128xf32> to vector<7x128xf32>
    %cst_10 = arith.constant dense<0.000000e+00> : vector<352x128xf32>
    %9 = tpu.matmul %6, %8, %cst_10 {dimension_numbers = #tpu.dot_dimension_numbers<[1], [0], [0], [1], [0, 0, 1, 1], [], []>} : vector<352x7xf32>, vector<7x128xf32>, vector<352x128xf32> -> vector<352x128xf32>
    %10 = arith.addf %5, %9 : vector<352x128xf32>
    %c2 = arith.constant 2 : index
    %c0_11 = arith.constant 0 : index
    %11 = vector.load %arg1[%c2, %c0_11] : memref<360x7xf32, #tpu.memory_space<vmem>>, vector<352x7xf32>
    %c2_12 = arith.constant 2 : index
    %c0_13 = arith.constant 0 : index
    %c0_14 = arith.constant 0 : index
    %12 = vector.load %arg5[%c2_12, %c0_13, %c0_14] : memref<3x7x128xf32, #tpu.memory_space<vmem>>, vector<1x7x128xf32>
    %13 = vector.shape_cast %12 : vector<1x7x128xf32> to vector<7x128xf32>
    %cst_15 = arith.constant dense<0.000000e+00> : vector<352x128xf32>
    %14 = tpu.matmul %11, %13, %cst_15 {dimension_numbers = #tpu.dot_dimension_numbers<[1], [0], [0], [1], [0, 0, 1, 1], [], []>} : vector<352x7xf32>, vector<7x128xf32>, vector<352x128xf32> -> vector<352x128xf32>
    %15 = arith.addf %10, %14 : vector<352x128xf32>
    %c0_16 = arith.constant 0 : index
    %c0_17 = arith.constant 0 : index
    %16 = vector.load %arg6[%c0_16, %c0_17] : memref<1x128xf32, #tpu.memory_space<vmem>>, vector<1x128xf32>
    %17 = vector.broadcast %16 : vector<1x128xf32> to vector<352x128xf32>
    %18 = arith.addf %15, %17 : vector<352x128xf32>
    %cst_18 = arith.constant 0.000000e+00 : f32
    %19 = vector.broadcast %cst_18 : f32 to vector<352x128xf32>
    %20 = arith.maximumf %18, %19 : vector<352x128xf32>
    %c0_19 = arith.constant 0 : index
    %c0_20 = arith.constant 0 : index
    %21 = vector.load %arg2[%c0_19, %c0_20] : memref<352x1xf32, #tpu.memory_space<vmem>>, vector<352x1xf32>
    %22 = vector.broadcast %21 : vector<352x1xf32> to vector<352x128xf32>
    %23 = arith.mulf %20, %22 : vector<352x128xf32>
    %c0_21 = arith.constant 0 : index
    %c0_22 = arith.constant 0 : index
    %24 = vector.load %arg12[%c0_21, %c0_22] : memref<360x128xf32, #tpu.memory_space<vmem>>, vector<352x128xf32>
    tpu.vector_store %arg12[%c0_21, %c0_22], %23 {strides = array<i32>} : memref<360x128xf32, #tpu.memory_space<vmem>>, vector<352x128xf32>,
    %c0_23 = arith.constant 0 : index
    %c0_24 = arith.constant 0 : index
    %25 = vector.load %arg12[%c0_23, %c0_24] : memref<360x128xf32, #tpu.memory_space<vmem>>, vector<352x128xf32>
    %c0_25 = arith.constant 0 : index
    %c0_26 = arith.constant 0 : index
    %c0_27 = arith.constant 0 : index
    %26 = vector.load %arg7[%c0_25, %c0_26, %c0_27] : memref<3x128x128xf32, #tpu.memory_space<vmem>>, vector<1x128x128xf32>
    %27 = vector.shape_cast %26 : vector<1x128x128xf32> to vector<128x128xf32>
    %cst_28 = arith.constant dense<0.000000e+00> : vector<352x128xf32>
    %28 = tpu.matmul %25, %27, %cst_28 {dimension_numbers = #tpu.dot_dimension_numbers<[1], [0], [0], [1], [0, 0, 1, 1], [], []>} : vector<352x128xf32>, vector<128x128xf32>, vector<352x128xf32> -> vector<352x128xf32>
    %c1_29 = arith.constant 1 : index
    %c0_30 = arith.constant 0 : index
    %29 = vector.load %arg12[%c1_29, %c0_30] : memref<360x128xf32, #tpu.memory_space<vmem>>, vector<352x128xf32>
    %c1_31 = arith.constant 1 : index
    %c0_32 = arith.constant 0 : index
    %c0_33 = arith.constant 0 : index
    %30 = vector.load %arg7[%c1_31, %c0_32, %c0_33] : memref<3x128x128xf32, #tpu.memory_space<vmem>>, vector<1x128x128xf32>
    %31 = vector.shape_cast %30 : vector<1x128x128xf32> to vector<128x128xf32>
    %cst_34 = arith.constant dense<0.000000e+00> : vector<352x128xf32>
    %32 = tpu.matmul %29, %31, %cst_34 {dimension_numbers = #tpu.dot_dimension_numbers<[1], [0], [0], [1], [0, 0, 1, 1], [], []>} : vector<352x128xf32>, vector<128x128xf32>, vector<352x128xf32> -> vector<352x128xf32>
    %33 = arith.addf %28, %32 : vector<352x128xf32>
    %c2_35 = arith.constant 2 : index
    %c0_36 = arith.constant 0 : index
    %34 = vector.load %arg12[%c2_35, %c0_36] : memref<360x128xf32, #tpu.memory_space<vmem>>, vector<352x128xf32>
    %c2_37 = arith.constant 2 : index
    %c0_38 = arith.constant 0 : index
    %c0_39 = arith.constant 0 : index
    %35 = vector.load %arg7[%c2_37, %c0_38, %c0_39] : memref<3x128x128xf32, #tpu.memory_space<vmem>>, vector<1x128x128xf32>
    %36 = vector.shape_cast %35 : vector<1x128x128xf32> to vector<128x128xf32>
    %cst_40 = arith.constant dense<0.000000e+00> : vector<352x128xf32>
    %37 = tpu.matmul %34, %36, %cst_40 {dimension_numbers = #tpu.dot_dimension_numbers<[1], [0], [0], [1], [0, 0, 1, 1], [], []>} : vector<352x128xf32>, vector<128x128xf32>, vector<352x128xf32> -> vector<352x128xf32>
    %38 = arith.addf %33, %37 : vector<352x128xf32>
    %c0_41 = arith.constant 0 : index
    %c0_42 = arith.constant 0 : index
    %39 = vector.load %arg8[%c0_41, %c0_42] : memref<1x128xf32, #tpu.memory_space<vmem>>, vector<1x128xf32>
    %40 = vector.broadcast %39 : vector<1x128xf32> to vector<352x128xf32>
    %41 = arith.addf %38, %40 : vector<352x128xf32>
    %cst_43 = arith.constant 0.000000e+00 : f32
    %42 = vector.broadcast %cst_43 : f32 to vector<352x128xf32>
    %43 = arith.maximumf %41, %42 : vector<352x128xf32>
    %c0_44 = arith.constant 0 : index
    %c0_45 = arith.constant 0 : index
    %44 = vector.load %arg3[%c0_44, %c0_45] : memref<352x1xf32, #tpu.memory_space<vmem>>, vector<352x1xf32>
    %45 = vector.broadcast %44 : vector<352x1xf32> to vector<352x128xf32>
    %46 = arith.mulf %43, %45 : vector<352x128xf32>
    %c0_46 = arith.constant 0 : index
    %c0_47 = arith.constant 0 : index
    %47 = vector.load %arg12[%c0_46, %c0_47] : memref<360x128xf32, #tpu.memory_space<vmem>>, vector<352x128xf32>
    tpu.vector_store %arg12[%c0_46, %c0_47], %46 {strides = array<i32>} : memref<360x128xf32, #tpu.memory_space<vmem>>, vector<352x128xf32>,
    %c0_48 = arith.constant 0 : index
    %c0_49 = arith.constant 0 : index
    %48 = vector.load %arg12[%c0_48, %c0_49] : memref<360x128xf32, #tpu.memory_space<vmem>>, vector<352x128xf32>
    %c0_50 = arith.constant 0 : index
    %c0_51 = arith.constant 0 : index
    %c0_52 = arith.constant 0 : index
    %49 = vector.load %arg9[%c0_50, %c0_51, %c0_52] : memref<3x128x128xf32, #tpu.memory_space<vmem>>, vector<1x128x128xf32>
    %50 = vector.shape_cast %49 : vector<1x128x128xf32> to vector<128x128xf32>
    %cst_53 = arith.constant dense<0.000000e+00> : vector<352x128xf32>
    %51 = tpu.matmul %48, %50, %cst_53 {dimension_numbers = #tpu.dot_dimension_numbers<[1], [0], [0], [1], [0, 0, 1, 1], [], []>} : vector<352x128xf32>, vector<128x128xf32>, vector<352x128xf32> -> vector<352x128xf32>
    %c1_54 = arith.constant 1 : index
    %c0_55 = arith.constant 0 : index
    %52 = vector.load %arg12[%c1_54, %c0_55] : memref<360x128xf32, #tpu.memory_space<vmem>>, vector<352x128xf32>
    %c1_56 = arith.constant 1 : index
    %c0_57 = arith.constant 0 : index
    %c0_58 = arith.constant 0 : index
    %53 = vector.load %arg9[%c1_56, %c0_57, %c0_58] : memref<3x128x128xf32, #tpu.memory_space<vmem>>, vector<1x128x128xf32>
    %54 = vector.shape_cast %53 : vector<1x128x128xf32> to vector<128x128xf32>
    %cst_59 = arith.constant dense<0.000000e+00> : vector<352x128xf32>
    %55 = tpu.matmul %52, %54, %cst_59 {dimension_numbers = #tpu.dot_dimension_numbers<[1], [0], [0], [1], [0, 0, 1, 1], [], []>} : vector<352x128xf32>, vector<128x128xf32>, vector<352x128xf32> -> vector<352x128xf32>
    %56 = arith.addf %51, %55 : vector<352x128xf32>
    %c2_60 = arith.constant 2 : index
    %c0_61 = arith.constant 0 : index
    %57 = vector.load %arg12[%c2_60, %c0_61] : memref<360x128xf32, #tpu.memory_space<vmem>>, vector<352x128xf32>
    %c2_62 = arith.constant 2 : index
    %c0_63 = arith.constant 0 : index
    %c0_64 = arith.constant 0 : index
    %58 = vector.load %arg9[%c2_62, %c0_63, %c0_64] : memref<3x128x128xf32, #tpu.memory_space<vmem>>, vector<1x128x128xf32>
    %59 = vector.shape_cast %58 : vector<1x128x128xf32> to vector<128x128xf32>
    %cst_65 = arith.constant dense<0.000000e+00> : vector<352x128xf32>
    %60 = tpu.matmul %57, %59, %cst_65 {dimension_numbers = #tpu.dot_dimension_numbers<[1], [0], [0], [1], [0, 0, 1, 1], [], []>} : vector<352x128xf32>, vector<128x128xf32>, vector<352x128xf32> -> vector<352x128xf32>
    %61 = arith.addf %56, %60 : vector<352x128xf32>
    %c0_66 = arith.constant 0 : index
    %c0_67 = arith.constant 0 : index
    %62 = vector.load %arg10[%c0_66, %c0_67] : memref<1x128xf32, #tpu.memory_space<vmem>>, vector<1x128xf32>
    %63 = vector.broadcast %62 : vector<1x128xf32> to vector<352x128xf32>
    %64 = arith.addf %61, %63 : vector<352x128xf32>
    %cst_68 = arith.constant 0.000000e+00 : f32
    %65 = vector.broadcast %cst_68 : f32 to vector<352x128xf32>
    %66 = arith.maximumf %64, %65 : vector<352x128xf32>
    %c0_69 = arith.constant 0 : index
    %c0_70 = arith.constant 0 : index
    %67 = vector.load %arg4[%c0_69, %c0_70] : memref<16x352xf32, #tpu.memory_space<vmem>>, vector<16x352xf32>
    %cst_71 = arith.constant dense<0.000000e+00> : vector<16x128xf32>
    %68 = tpu.matmul %67, %66, %cst_71 {dimension_numbers = #tpu.dot_dimension_numbers<[1], [0], [0], [1], [0, 0, 1, 1], [], []>} : vector<16x352xf32>, vector<352x128xf32>, vector<16x128xf32> -> vector<16x128xf32>
    %c0_72 = arith.constant 0 : index
    %c0_73 = arith.constant 0 : index
    %69 = vector.load %arg11[%c0_72, %c0_73] : memref<16x128xf32, #tpu.memory_space<vmem>>, vector<16x128xf32>
    tpu.vector_store %arg11[%c0_72, %c0_73], %68 {strides = array<i32>} : memref<16x128xf32, #tpu.memory_space<vmem>>, vector<16x128xf32>,
    return
  }
  func.func @transform_0(%arg0: i32) -> (i32, i32) {
    %c0_i32 = arith.constant 0 : i32
    %c0_i32_0 = arith.constant 0 : i32
    return %arg0, %c0_i32 : i32, i32
  }
  func.func @transform_1(%arg0: i32) -> (i32, i32) {
    %c0_i32 = arith.constant 0 : i32
    %c0_i32_0 = arith.constant 0 : i32
    %c0_i32_1 = arith.constant 0 : i32
    return %c0_i32, %c0_i32_0 : i32, i32
  }
  func.func @transform_2(%arg0: i32) -> (i32, i32) {
    %c0_i32 = arith.constant 0 : i32
    %c0_i32_0 = arith.constant 0 : i32
    %c0_i32_1 = arith.constant 0 : i32
    return %c0_i32, %c0_i32_0 : i32, i32
  }
  func.func @transform_3(%arg0: i32) -> (i32, i32) {
    %c0_i32 = arith.constant 0 : i32
    %c0_i32_0 = arith.constant 0 : i32
    %c0_i32_1 = arith.constant 0 : i32
    return %c0_i32, %c0_i32_0 : i32, i32
  }
  func.func @transform_4(%arg0: i32) -> (i32, i32, i32) {
    %c0_i32 = arith.constant 0 : i32
    %c0_i32_0 = arith.constant 0 : i32
    %c0_i32_1 = arith.constant 0 : i32
    %c0_i32_2 = arith.constant 0 : i32
    return %c0_i32, %c0_i32_0, %c0_i32_1 : i32, i32, i32
  }
  func.func @transform_5(%arg0: i32) -> (i32, i32) {
    %c0_i32 = arith.constant 0 : i32
    %c0_i32_0 = arith.constant 0 : i32
    %c0_i32_1 = arith.constant 0 : i32
    return %c0_i32, %c0_i32_0 : i32, i32
  }
  func.func @transform_6(%arg0: i32) -> (i32, i32, i32) {
    %c0_i32 = arith.constant 0 : i32
    %c0_i32_0 = arith.constant 0 : i32
    %c0_i32_1 = arith.constant 0 : i32
    %c0_i32_2 = arith.constant 0 : i32
    return %c0_i32, %c0_i32_0, %c0_i32_1 : i32, i32, i32
  }
  func.func @transform_7(%arg0: i32) -> (i32, i32) {
    %c0_i32 = arith.constant 0 : i32
    %c0_i32_0 = arith.constant 0 : i32
    %c0_i32_1 = arith.constant 0 : i32
    return %c0_i32, %c0_i32_0 : i32, i32
  }
  func.func @transform_8(%arg0: i32) -> (i32, i32, i32) {
    %c0_i32 = arith.constant 0 : i32
    %c0_i32_0 = arith.constant 0 : i32
    %c0_i32_1 = arith.constant 0 : i32
    %c0_i32_2 = arith.constant 0 : i32
    return %c0_i32, %c0_i32_0, %c0_i32_1 : i32, i32, i32
  }
  func.func @transform_9(%arg0: i32) -> (i32, i32) {
    %c0_i32 = arith.constant 0 : i32
    %c0_i32_0 = arith.constant 0 : i32
    %c0_i32_1 = arith.constant 0 : i32
    return %c0_i32, %c0_i32_0 : i32, i32
  }
  func.func @transform_10(%arg0: i32) -> (i32, i32) {
    %c0_i32 = arith.constant 0 : i32
    %c0_i32_0 = arith.constant 0 : i32
    return %arg0, %c0_i32 : i32, i32
  }
}

</mosaic_0001>

<bundles_post_ra>
// kernel: cnn1d_encoder.1
= control target key start
LH: loop header
LB: loop body
LE: loop exit
PB: predicated region body
PF: predicated region fallthrough
CT: control target
= control target key end

     0   :  { %vm260_vm0 = vcmask 1046528   ;;  %vm127_vm1 = vcmask 56320   ;;  %v6891_v3 = vmov 0   ;;  %vm4636_vm2 = vcmask 785408   ;;  %s8846_s4 = inlined_call_operand.vmem [shape: f32[3,7,128], index: 4, kind: input, shape index: {}]   ;;  %s8847_s0 = inlined_call_operand.vmem [shape: f32[360,7], index: 0, kind: input, shape index: {}]   ;;  %s8848_s1 = inlined_call_operand.vmem [shape: f32[352,1], index: 1, kind: input, shape index: {}]   ;;  %s8849_s2 = inlined_call_operand.vmem [shape: f32[352,1], index: 2, kind: input, shape index: {}]   ;;  %s8850_s6 = inlined_call_operand.vmem [shape: f32[3,128,128], index: 6, kind: input, shape index: {}]   ;;  %s8851_s5 = inlined_call_operand.vmem [shape: f32[1,128], index: 5, kind: input, shape index: {}]   ;;  %s8852_s8 = inlined_call_operand.vmem [shape: f32[3,128,128], index: 8, kind: input, shape index: {}]   ;;  %s8853_s7 = inlined_call_operand.vmem [shape: f32[1,128], index: 7, kind: input, shape index: {}]   ;;  %s8854_s3 = inlined_call_operand.vmem [shape: f32[16,352], index: 3, kind: input, shape index: {}]   ;;  %s8855_s9 = inlined_call_operand.vmem [shape: f32[1,128], index: 9, kind: input, shape index: {}]   ;;  %s8856_s10 = inlined_call_operand.vmem [shape: f32[16,128], index: 10, kind: output, shape index: {}]  }
   0x1   :  { %v4799_v0 = vld [vmem:[%s8846_s4 + $0x8] sm:$0x7f]  ;;  %6889 = vset.pattern.permute.xlu0 %v6891_v3  ;;  %6890 = vset.pattern.permute.xlu1 %v6891_v3  ;;  %v83_v6 = vld [vmem:[%s8847_s0 + $0x11] sm:$0xff]  ;;  %v84_v8 = vld [vmem:[%s8847_s0 + $0x19] sm:$0xff] }
   0x2   :  { %v81_v1 = vld [vmem:[%s8847_s0 + $0x1] sm:$0xff]  ;;  %5552 = vmatprep.subr.msk.mxu0 %vm260_vm0, %v4799_v0  ;;  %6619 = vmatprep.subr.msk.mxu1 %vm260_vm0, %v4799_v0  ;;  %v82_v4 = vld [vmem:[%s8847_s0 + $0x9] sm:$0xff]  ;;  %v95_v7 = vld [vmem:[%s8847_s0 + $0x71] sm:$0xff] }
   0x3   :  { %v93_v2 = vld [vmem:[%s8847_s0 + $0x61] sm:$0xff]  ;;  %v94_v5 = vld [vmem:[%s8847_s0 + $0x69] sm:$0xff]  ;;  %5553 = vmatpush3.msk.msra.mxu0 %vm260_vm0, %v4799_v0  ;;  %6620 = vmatpush3.msk.msra.mxu1 %vm260_vm0, %v4799_v0  ;;  %v96_v9 = vld [vmem:[%s8847_s0 + $0x79] sm:$0xff] }
   0x4   :  { %5554 = vmatprep.mubr.msk.f32.mxu0 %vm127_vm1, %v81_v1  ;;  %5572 = vmatprep.mubr.msk.f32.mxu1 %vm127_vm1, %v93_v2  ;;  %v85_v10 = vld [vmem:[%s8847_s0 + $0x21] sm:$0xff]  ;;  %v86_v13 = vld [vmem:[%s8847_s0 + $0x29] sm:$0xff]  ;;  %v87_v15 = vld [vmem:[%s8847_s0 + $0x31] sm:$0xff] }
   0x5   :  { %5555 = vmatmul.mubr.msk.f32.vlgmr.msra.gmra.mrb[0].mxu0 %vm127_vm1, %v82_v4  ;;  %5573 = vmatmul.mubr.msk.f32.vlgmr.msra.gmra.mrb[0].mxu1 %vm127_vm1, %v94_v5  ;;  %v97_v11 = vld [vmem:[%s8847_s0 + $0x81] sm:$0xff]  ;;  %v98_v14 = vld [vmem:[%s8847_s0 + $0x89] sm:$0xff]  ;;  %v99_v16 = vld [vmem:[%s8847_s0 + $0x91] sm:$0xff] }
   0x6   :  { %5557 = vmatprep.mubr.msk.f32.mxu0 %vm127_vm1, %v83_v6  ;;  %5575 = vmatprep.mubr.msk.f32.mxu1 %vm127_vm1, %v95_v7  ;;  %v80_v12 = vld [vmem:[%s8846_s4] sm:$0x7f]  ;;  %v1576_v20 = vld [vmem:[%s8848_s1 + $0x10] sm:$0xff]  ;;  %v1575_v23 = vld [vmem:[%s8848_s1 + $0x8] sm:$0xff] }
   0x7   :  { %5620 = vmatprep.subr.msk.mxu0 %vm260_vm0, %v80_v12  ;;  %v1574_v17 = vld [vmem:[%s8848_s1] sm:$0xff]  ;;  %1630 = vperm.xlu1 %6890, %v1576_v20   ;;  %v1577_v24 = vld [vmem:[%s8848_s1 + $0x18] sm:$0xff]  ;;  %v90_v25 = vld [vmem:[%s8847_s0 + $0x49] sm:$0xff] }
   0x8   :  { %5621 = vmatpush3.msk.msra.mxu0 %vm260_vm0, %v80_v12  ;;  %v88_v18 = vld [vmem:[%s8847_s0 + $0x39] sm:$0xff]  ;;  %v89_v21 = vld [vmem:[%s8847_s0 + $0x41] sm:$0xff]  ;;  %1620 = vperm.xlu0 %6889, %v1574_v17   ;;  %v102_v26 = vld [vmem:[%s8847_s0 + $0xa9] sm:$0xff] }
   0x9   :  { %5558 = vmatmul.mubr.msk.f32.gmra.mrb[2].mxu0 %vm127_vm1, %v84_v8  ;;  %5576 = vmatmul.mubr.msk.f32.gmra.mrb[2].mxu1 %vm127_vm1, %v96_v9  ;;  %v100_v19 = vld [vmem:[%s8847_s0 + $0x99] sm:$0xff]  ;;  %v101_v22 = vld [vmem:[%s8847_s0 + $0xa1] sm:$0xff]  ;;  %v91_v27 = vld [vmem:[%s8847_s0 + $0x51] sm:$0xff] }
   0xa   :  { %5560 = vmatprep.mubr.msk.f32.mxu0 %vm127_vm1, %v85_v10  ;;  %5578 = vmatprep.mubr.msk.f32.mxu1 %vm127_vm1, %v97_v11  ;;  %v103_v28 = vld [vmem:[%s8847_s0 + $0xb1] sm:$0xff]  ;;  %v1578_v29 = vld [vmem:[%s8848_s1 + $0x20] sm:$0xff]  ;;  %v1579_v30 = vld [vmem:[%s8848_s1 + $0x28] sm:$0xff] }
   0xb   :  { %1635 = vperm.xlu1 %6890, %v1577_v24   ;;  %v92_v31 = vld [vmem:[%s8847_s0 + $0x59] sm:$0xff]  ;;  %v105_v33 = vld [vmem:[%s8847_s0 + $0xc1] sm:$0xff]  ;;  %v1580_v35 = vld [vmem:[%s8848_s1 + $0x30] sm:$0xff] }
   0xc   :  { %1625 = vperm.xlu0 %6889, %v1575_v23   ;;  %v104_v32 = vld [vmem:[%s8847_s0 + $0xb9] sm:$0xff]  ;;  %v106_v37 = vld [vmem:[%s8847_s0 + $0xc9] sm:$0xff]  ;;  %v107_v39 = vld [vmem:[%s8847_s0 + $0xd1] sm:$0xff] }
   0xd   :  { %5561 = vmatmul.mubr.msk.f32.gmra.mrb[4].mxu0 %vm127_vm1, %v86_v13  ;;  %5579 = vmatmul.mubr.msk.f32.gmra.mrb[4].mxu1 %vm127_vm1, %v98_v14  ;;  %v36_v34 = vld [vmem:[%s8847_s0] sm:$0xff]  ;;  %v1581_v36 = vld [vmem:[%s8848_s1 + $0x38] sm:$0xff]  ;;  %v37_v38 = vld [vmem:[%s8847_s0 + $0x8] sm:$0xff] }
   0xe   :  { %5563 = vmatprep.mubr.msk.f32.mxu0 %vm127_vm1, %v87_v15  ;;  %5581 = vmatprep.mubr.msk.f32.mxu1 %vm127_vm1, %v99_v16  ;;  %v38_v40 = vld [vmem:[%s8847_s0 + $0x10] sm:$0xff]  ;;  %v1582_v41 = vld [vmem:[%s8848_s1 + $0x40] sm:$0xff]  ;;  %v1583_v42 = vld [vmem:[%s8848_s1 + $0x48] sm:$0xff] }
   0xf   :  { %1645 = vperm.xlu1 %6890, %v1579_v30   ;;  %v4890_v43 = vld [vmem:[%s8846_s4 + $0x10] sm:$0x7f]  ;;  %v108_v44 = vld [vmem:[%s8847_s0 + $0xd9] sm:$0xff]  ;;  %v109_v46 = vld [vmem:[%s8847_s0 + $0xe1] sm:$0xff] }
  0x10   :  { %1640 = vperm.xlu0 %6889, %v1578_v29   ;;  %v39_v45 = vld [vmem:[%s8847_s0 + $0x18] sm:$0xff]  ;;  %v40_v47 = vld [vmem:[%s8847_s0 + $0x20] sm:$0xff]  ;;  %v1584_v48 = vld [vmem:[%s8848_s1 + $0x50] sm:$0xff]  ;;  %6621 = vmatprep.subr.msk.mxu1 %vm260_vm0, %v4890_v43 }
  0x11   :  { %5564 = vmatmul.mubr.msk.f32.gmra.mrb[6].mxu0 %vm127_vm1, %v88_v18  ;;  %5582 = vmatmul.mubr.msk.f32.gmra.mrb[6].mxu1 %vm127_vm1, %v100_v19  ;;  %v1585_v49 = vld [vmem:[%s8848_s1 + $0x58] sm:$0xff]  ;;  %v110_v50 = vld [vmem:[%s8847_s0 + $0xe9] sm:$0xff]  ;;  %v1586_v54 = vld [vmem:[%s8848_s1 + $0x60] sm:$0xff] }
  0x12   :  { %5566 = vmatprep.mubr.msk.f32.mxu0 %vm127_vm1, %v89_v21  ;;  %5584 = vmatprep.mubr.msk.f32.mxu1 %vm127_vm1, %v101_v22  ;;  %v41_v51 = vld [vmem:[%s8847_s0 + $0x28] sm:$0xff]  ;;  %v111_v52 = vld [vmem:[%s8847_s0 + $0xf1] sm:$0xff]  ;;  %v112_v56 = vld [vmem:[%s8847_s0 + $0xf9] sm:$0xff] }
  0x13   :  { %1655 = vperm.xlu1 %6890, %v1581_v36   ;;  %5688 = vmatprep.subr.msk.mxu0 %vm260_vm0, %v4890_v43  ;;  %v42_v53 = vld [vmem:[%s8847_s0 + $0x30] sm:$0xff]  ;;  %v1587_v55 = vld [vmem:[%s8848_s1 + $0x68] sm:$0xff]  ;;  %v43_v57 = vld [vmem:[%s8847_s0 + $0x38] sm:$0xff] }
  0x14   :  { %1650 = vperm.xlu0 %6889, %v1580_v35   ;;  %6622 = vmatpush3.msk.msra.mxu1 %vm260_vm0, %v4890_v43  ;;  %v113_v58 = vld [vmem:[%s8847_s0 + $0x101] sm:$0xff]  ;;  %v1588_v60 = vld [vmem:[%s8848_s1 + $0x70] sm:$0xff]  ;;  %v1589_v61 = vld [vmem:[%s8848_s1 + $0x78] sm:$0xff] }
  0x15   :  { %5567 = vmatmul.mubr.msk.f32.gmra.mrb[8].mxu0 %vm127_vm1, %v90_v25  ;;  %5585 = vmatmul.mubr.msk.f32.gmra.mrb[8].mxu1 %vm127_vm1, %v102_v26  ;;  %v44_v59 = vld [vmem:[%s8847_s0 + $0x40] sm:$0xff]  ;;  %v114_v62 = vld [vmem:[%s8847_s0 + $0x109] sm:$0xff]  ;;  %v115_v0 = vld [vmem:[%s8847_s0 + $0x111] sm:$0xff] }
  0x16   :  { %5569 = vmatprep.mubr.msk.f32.mxu0 %vm127_vm1, %v91_v27  ;;  %5587 = vmatprep.mubr.msk.f32.mxu1 %vm127_vm1, %v103_v28  ;;  %v45_v63 = vld [vmem:[%s8847_s0 + $0x48] sm:$0xff]  ;;  %v46_v1 = vld [vmem:[%s8847_s0 + $0x50] sm:$0xff]  ;;  %v1590_v2 = vld [vmem:[%s8848_s1 + $0x80] sm:$0xff] }
  0x17   :  { %1665 = vperm.xlu1 %6890, %v1583_v42   ;;  %v1591_v3 = vld [vmem:[%s8848_s1 + $0x88] sm:$0xff]  ;;  %v116_v4 = vld [vmem:[%s8847_s0 + $0x119] sm:$0xff]  ;;  %v1592_v8 = vld [vmem:[%s8848_s1 + $0x90] sm:$0xff] }
  0x18   :  { %1660 = vperm.xlu0 %6889, %v1582_v41   ;;  %v47_v5 = vld [vmem:[%s8847_s0 + $0x58] sm:$0xff]  ;;  %v117_v6 = vld [vmem:[%s8847_s0 + $0x121] sm:$0xff]  ;;  %v118_v10 = vld [vmem:[%s8847_s0 + $0x129] sm:$0xff] }
  0x19   :  { %5570 = vmatmul.mubr.msk.f32.gmra.mrb[10].mxu0 %vm127_vm1, %v92_v31  ;;  %5588 = vmatmul.mubr.msk.f32.gmra.mrb[10].mxu1 %vm127_vm1, %v104_v32  ;;  %v48_v7 = vld [vmem:[%s8847_s0 + $0x60] sm:$0xff]  ;;  %v1593_v9 = vld [vmem:[%s8848_s1 + $0x98] sm:$0xff]  ;;  %v49_v11 = vld [vmem:[%s8847_s0 + $0x68] sm:$0xff] }
  0x1a   :  { %5590 = vmatprep.mubr.msk.f32.mxu1 %vm127_vm1, %v105_v33  ;;  %5622 = vmatprep.mubr.msk.f32.mxu0 %vm127_vm1, %v36_v34  ;;  %v119_v12 = vld [vmem:[%s8847_s0 + $0x131] sm:$0xff]  ;;  %v1594_v14 = vld [vmem:[%s8848_s1 + $0xa0] sm:$0xff]  ;;  %v1595_v15 = vld [vmem:[%s8848_s1 + $0xa8] sm:$0xff] }
  0x1b   :  { %1675 = vperm.xlu1 %6890, %v1585_v49   ;;  %v50_v13 = vld [vmem:[%s8847_s0 + $0x70] sm:$0xff]  ;;  %v120_v16 = vld [vmem:[%s8847_s0 + $0x139] sm:$0xff]  ;;  %v121_v18 = vld [vmem:[%s8847_s0 + $0x141] sm:$0xff] }
  0x1c   :  { %1670 = vperm.xlu0 %6889, %v1584_v48   ;;  %v51_v17 = vld [vmem:[%s8847_s0 + $0x78] sm:$0xff]  ;;  %v52_v19 = vld [vmem:[%s8847_s0 + $0x80] sm:$0xff]  ;;  %v1596_v20 = vld [vmem:[%s8848_s1 + $0xb0] sm:$0xff] }
  0x1d   :  { %5591 = vmatmul.mubr.msk.f32.gmra.mrb[12].mxu1 %vm127_vm1, %v106_v37  ;;  %5623 = vmatmul.mubr.msk.f32.vlgmr.msra.gmra.mrb[0].mxu0 %vm127_vm1, %v37_v38  ;;  %v1597_v21 = vld [vmem:[%s8848_s1 + $0xb8] sm:$0xff]  ;;  %v122_v22 = vld [vmem:[%s8847_s0 + $0x149] sm:$0xff]  ;;  %v1598_v26 = vld [vmem:[%s8848_s1 + $0xc0] sm:$0xff] }
  0x1e   :  { %5593 = vmatprep.mubr.msk.f32.mxu1 %vm127_vm1, %v107_v39  ;;  %5625 = vmatprep.mubr.msk.f32.mxu0 %vm127_vm1, %v38_v40  ;;  %v53_v23 = vld [vmem:[%s8847_s0 + $0x88] sm:$0xff]  ;;  %v123_v24 = vld [vmem:[%s8847_s0 + $0x151] sm:$0xff]  ;;  %v124_v28 = vld [vmem:[%s8847_s0 + $0x159] sm:$0xff] }
  0x1f   :  { %5689 = vmatpush3.msk.msra.mxu0 %vm260_vm0, %v4890_v43  ;;  %1685 = vperm.xlu1 %6890, %v1587_v55   ;;  %v54_v25 = vld [vmem:[%s8847_s0 + $0x90] sm:$0xff]  ;;  %v1599_v27 = vld [vmem:[%s8848_s1 + $0xc8] sm:$0xff]  ;;  %v55_v29 = vld [vmem:[%s8847_s0 + $0x98] sm:$0xff] }
  0x20   :  { %1680 = vperm.xlu0 %6889, %v1586_v54   ;;  %v56_v30 = vld [vmem:[%s8847_s0 + $0xa0] sm:$0xff]  ;;  %v1600_v32 = vld [vmem:[%s8848_s1 + $0xd0] sm:$0xff]  ;;  %v1601_v33 = vld [vmem:[%s8848_s1 + $0xd8] sm:$0xff] }
  0x21   :  { %5594 = vmatmul.mubr.msk.f32.gmra.mrb[14].mxu1 %vm127_vm1, %v108_v44  ;;  %5626 = vmatmul.mubr.msk.f32.gmra.mrb[2].mxu0 %vm127_vm1, %v39_v45  ;;  %v985_v31 = vld [vmem:[%s8847_s0 + $0x82] sm:$0xff]  ;;  %v986_v35 = vld [vmem:[%s8847_s0 + $0x8a] sm:$0xff]  ;;  %v987_v37 = vld [vmem:[%s8847_s0 + $0x92] sm:$0xff] }
  0x22   :  { %5596 = vmatprep.mubr.msk.f32.mxu1 %vm127_vm1, %v109_v46  ;;  %5628 = vmatprep.mubr.msk.f32.mxu0 %vm127_vm1, %v40_v47  ;;  %v57_v34 = vld [vmem:[%s8847_s0 + $0xa8] sm:$0xff]  ;;  %v58_v36 = vld [vmem:[%s8847_s0 + $0xb0] sm:$0xff]  ;;  %v1602_v38 = vld [vmem:[%s8848_s1 + $0xe0] sm:$0xff] }
  0x23   :  { %1695 = vperm.xlu1 %6890, %v1589_v61   ;;  %v1603_v39 = vld [vmem:[%s8848_s1 + $0xe8] sm:$0xff]  ;;  %v59_v40 = vld [vmem:[%s8847_s0 + $0xb8] sm:$0xff]  ;;  %v60_v42 = vld [vmem:[%s8847_s0 + $0xc0] sm:$0xff] }
  0x24   :  { %1690 = vperm.xlu0 %6889, %v1588_v60   ;;  %v988_v41 = vld [vmem:[%s8847_s0 + $0x9a] sm:$0xff]  ;;  %v989_v43 = vld [vmem:[%s8847_s0 + $0xa2] sm:$0xff]  ;;  %v1604_v44 = vld [vmem:[%s8848_s1 + $0xf0] sm:$0xff] }
  0x25   :  { %5597 = vmatmul.mubr.msk.f32.gmra.mrb[16].mxu1 %vm127_vm1, %v110_v50  ;;  %5629 = vmatmul.mubr.msk.f32.gmra.mrb[4].mxu0 %vm127_vm1, %v41_v51  ;;  %v1605_v45 = vld [vmem:[%s8848_s1 + $0xf8] sm:$0xff]  ;;  %v61_v46 = vld [vmem:[%s8847_s0 + $0xc8] sm:$0xff]  ;;  %v62_v48 = vld [vmem:[%s8847_s0 + $0xd0] sm:$0xff] }
  0x26   :  { %5599 = vmatprep.mubr.msk.f32.mxu1 %vm127_vm1, %v111_v52  ;;  %5631 = vmatprep.mubr.msk.f32.mxu0 %vm127_vm1, %v42_v53  ;;  %v990_v47 = vld [vmem:[%s8847_s0 + $0xaa] sm:$0xff]  ;;  %v991_v49 = vld [vmem:[%s8847_s0 + $0xb2] sm:$0xff]  ;;  %v1606_v50 = vld [vmem:[%s8848_s1 + $0x100] sm:$0xff] }
  0x27   :  { %1705 = vperm.xlu1 %6890, %v1591_v3   ;;  %v1607_v51 = vld [vmem:[%s8848_s1 + $0x108] sm:$0xff]  ;;  %v63_v52 = vld [vmem:[%s8847_s0 + $0xd8] sm:$0xff]  ;;  %v64_v54 = vld [vmem:[%s8847_s0 + $0xe0] sm:$0xff] }
  0x28   :  { %1700 = vperm.xlu0 %6889, %v1590_v2   ;;  %v992_v53 = vld [vmem:[%s8847_s0 + $0xba] sm:$0xff]  ;;  %v993_v55 = vld [vmem:[%s8847_s0 + $0xc2] sm:$0xff]  ;;  %v66_v60 = vld [vmem:[%s8847_s0 + $0xf0] sm:$0xff] }
  0x29   :  { %5600 = vmatmul.mubr.msk.f32.gmra.mrb[18].mxu1 %vm127_vm1, %v112_v56  ;;  %5632 = vmatmul.mubr.msk.f32.gmra.mrb[6].mxu0 %vm127_vm1, %v43_v57  ;;  %v1608_v56 = vld [vmem:[%s8848_s1 + $0x110] sm:$0xff]  ;;  %v1609_v57 = vld [vmem:[%s8848_s1 + $0x118] sm:$0xff]  ;;  %v68_v2 = vld [vmem:[%s8847_s0 + $0x100] sm:$0xff] }
  0x2a   :  { %5602 = vmatprep.mubr.msk.f32.mxu1 %vm127_vm1, %v113_v58  ;;  %5634 = vmatprep.mubr.msk.f32.mxu0 %vm127_vm1, %v44_v59  ;;  %v65_v58 = vld [vmem:[%s8847_s0 + $0xe8] sm:$0xff]  ;;  %v995_v61 = vld [vmem:[%s8847_s0 + $0xd2] sm:$0xff] }
  0x2b   :  { %1715 = vperm.xlu1 %6890, %v1593_v9   ;;  %v994_v59 = vld [vmem:[%s8847_s0 + $0xca] sm:$0xff]  ;;  %v997_v3 = vld [vmem:[%s8847_s0 + $0xe2] sm:$0xff]  ;;  %v999_v9 = vld [vmem:[%s8847_s0 + $0xf2] sm:$0xff] }
  0x2c   :  { %1710 = vperm.xlu0 %6889, %v1592_v8   ;;  %v70_v8 = vld [vmem:[%s8847_s0 + $0x110] sm:$0xff] }
  0x2d   :  { %5603 = vmatmul.mubr.msk.f32.gmra.mrb[20].mxu1 %vm127_vm1, %v114_v62  ;;  %5635 = vmatmul.mubr.msk.f32.gmra.mrb[8].mxu0 %vm127_vm1, %v45_v63  ;;  %v1610_v62 = vld [vmem:[%s8848_s1 + $0x120] sm:$0xff]  ;;  %v1611_v63 = vld [vmem:[%s8848_s1 + $0x128] sm:$0xff] }
  0x2e   :  { %5605 = vmatprep.mubr.msk.f32.mxu1 %vm127_vm1, %v115_v0  ;;  %5637 = vmatprep.mubr.msk.f32.mxu0 %vm127_vm1, %v46_v1  ;;  %v67_v0 = vld [vmem:[%s8847_s0 + $0xf8] sm:$0xff] }
  0x2f   :  { %1725 = vperm.xlu1 %6890, %v1595_v15   ;;  %v996_v1 = vld [vmem:[%s8847_s0 + $0xda] sm:$0xff]  ;;  %v1001_v15 = vld [vmem:[%s8847_s0 + $0x102] sm:$0xff] }
  0x30   :  { %1720 = vperm.xlu0 %6889, %v1594_v14   ;;  %v72_v14 = vld [vmem:[%s8847_s0 + $0x120] sm:$0xff] }
  0x31   :  { %5606 = vmatmul.mubr.msk.f32.gmra.mrb[22].mxu1 %vm127_vm1, %v116_v4  ;;  %5638 = vmatmul.mubr.msk.f32.gmra.mrb[10].mxu0 %vm127_vm1, %v47_v5  ;;  %v1612_v4 = vld [vmem:[%s8848_s1 + $0x130] sm:$0xff]  ;;  %v1613_v5 = vld [vmem:[%s8848_s1 + $0x138] sm:$0xff] }
  0x32   :  { %5608 = vmatprep.mubr.msk.f32.mxu1 %vm127_vm1, %v117_v6  ;;  %5640 = vmatprep.mubr.msk.f32.mxu0 %vm127_vm1, %v48_v7  ;;  %v69_v6 = vld [vmem:[%s8847_s0 + $0x108] sm:$0xff] }
  0x33   :  { %1735 = vperm.xlu1 %6890, %v1597_v21   ;;  %v998_v7 = vld [vmem:[%s8847_s0 + $0xea] sm:$0xff]  ;;  %v1003_v21 = vld [vmem:[%s8847_s0 + $0x112] sm:$0xff] }
  0x34   :  { %1730 = vperm.xlu0 %6889, %v1596_v20   ;;  %v74_v20 = vld [vmem:[%s8847_s0 + $0x130] sm:$0xff] }
  0x35   :  { %5609 = vmatmul.mubr.msk.f32.gmra.mrb[24].mxu1 %vm127_vm1, %v118_v10  ;;  %5641 = vmatmul.mubr.msk.f32.gmra.mrb[12].mxu0 %vm127_vm1, %v49_v11  ;;  %v1614_v10 = vld [vmem:[%s8848_s1 + $0x140] sm:$0xff]  ;;  %v1615_v11 = vld [vmem:[%s8848_s1 + $0x148] sm:$0xff] }
  0x36   :  { %5611 = vmatprep.mubr.msk.f32.mxu1 %vm127_vm1, %v119_v12  ;;  %5643 = vmatprep.mubr.msk.f32.mxu0 %vm127_vm1, %v50_v13  ;;  %v71_v12 = vld [vmem:[%s8847_s0 + $0x118] sm:$0xff] }
  0x37   :  { %1745 = vperm.xlu1 %6890, %v1599_v27   ;;  %v1000_v13 = vld [vmem:[%s8847_s0 + $0xfa] sm:$0xff]  ;;  %v1005_v27 = vld [vmem:[%s8847_s0 + $0x122] sm:$0xff] }
  0x38   :  { %1740 = vperm.xlu0 %6889, %v1598_v26   ;;  %v76_v26 = vld [vmem:[%s8847_s0 + $0x140] sm:$0xff] }
  0x39   :  { %5612 = vmatmul.mubr.msk.f32.gmra.mrb[26].mxu1 %vm127_vm1, %v120_v16  ;;  %5644 = vmatmul.mubr.msk.f32.gmra.mrb[14].mxu0 %vm127_vm1, %v51_v17  ;;  %v1616_v16 = vld [vmem:[%s8848_s1 + $0x150] sm:$0xff]  ;;  %v1617_v17 = vld [vmem:[%s8848_s1 + $0x158] sm:$0xff] }
  0x3a   :  { %5614 = vmatprep.mubr.msk.f32.mxu1 %vm127_vm1, %v121_v18  ;;  %5646 = vmatprep.mubr.msk.f32.mxu0 %vm127_vm1, %v52_v19  ;;  %v73_v18 = vld [vmem:[%s8847_s0 + $0x128] sm:$0xff] }
  0x3b   :  { %1755 = vperm.xlu1 %6890, %v1601_v33   ;;  %v1002_v19 = vld [vmem:[%s8847_s0 + $0x10a] sm:$0xff]  ;;  %v1007_v33 = vld [vmem:[%s8847_s0 + $0x132] sm:$0xff] }
  0x3c   :  { %1750 = vperm.xlu0 %6889, %v1600_v32   ;;  %v78_v32 = vld [vmem:[%s8847_s0 + $0x150] sm:$0xff] }
  0x3d   :  { %5615 = vmatmul.mubr.msk.f32.gmra.mrb[28].mxu1 %vm127_vm1, %v122_v22  ;;  %5647 = vmatmul.mubr.msk.f32.gmra.mrb[16].mxu0 %vm127_vm1, %v53_v23  ;;  %v3102_v22 = vld [vmem:[%s8849_s2] sm:$0xff]  ;;  %v3103_v23 = vld [vmem:[%s8849_s2 + $0x8] sm:$0xff] }
  0x3e   :  { %5617 = vmatprep.mubr.msk.f32.mxu1 %vm127_vm1, %v123_v24  ;;  %5649 = vmatprep.mubr.msk.f32.mxu0 %vm127_vm1, %v54_v25  ;;  %v75_v24 = vld [vmem:[%s8847_s0 + $0x138] sm:$0xff] }
  0x3f   :  { %1765 = vperm.xlu1 %6890, %v1603_v39   ;;  %v1004_v25 = vld [vmem:[%s8847_s0 + $0x11a] sm:$0xff]  ;;  %v1009_v39 = vld [vmem:[%s8847_s0 + $0x142] sm:$0xff] }
  0x40   :  { %1760 = vperm.xlu0 %6889, %v1602_v38   ;;  %v969_v38 = vld [vmem:[%s8847_s0 + $0x2] sm:$0xff] }
  0x41   :  { %5618 = vmatmul.mubr.msk.f32.gmra.mrb[30].mxu1 %vm127_vm1, %v124_v28  ;;  %5650 = vmatmul.mubr.msk.f32.gmra.mrb[18].mxu0 %vm127_vm1, %v55_v29  ;;  %v3104_v28 = vld [vmem:[%s8849_s2 + $0x10] sm:$0xff]  ;;  %v3105_v29 = vld [vmem:[%s8849_s2 + $0x18] sm:$0xff] }
  0x42   :  { %5652 = vmatprep.mubr.msk.f32.mxu0 %vm127_vm1, %v56_v30  ;;  %5714 = vmatprep.mubr.msk.f32.mxu1 %vm127_vm1, %v985_v31  ;;  %v77_v30 = vld [vmem:[%s8847_s0 + $0x148] sm:$0xff] }
  0x43   :  { %1775 = vperm.xlu1 %6890, %v1605_v45   ;;  %v1006_v31 = vld [vmem:[%s8847_s0 + $0x12a] sm:$0xff]  ;;  %v1011_v45 = vld [vmem:[%s8847_s0 + $0x152] sm:$0xff] }
  0x44   :  { %1770 = vperm.xlu0 %6889, %v1604_v44   ;;  %v971_v44 = vld [vmem:[%s8847_s0 + $0x12] sm:$0xff] }
  0x45   :  { %5653 = vmatmul.mubr.msk.f32.gmra.mrb[20].mxu0 %vm127_vm1, %v57_v34  ;;  %5715 = vmatmul.mubr.msk.f32.vlgmr.msra.gmra.mrb[32].mxu1 %vm127_vm1, %v986_v35  ;;  %v3106_v34 = vld [vmem:[%s8849_s2 + $0x20] sm:$0xff]  ;;  %v3107_v35 = vld [vmem:[%s8849_s2 + $0x28] sm:$0xff] }
  0x46   :  { %5655 = vmatprep.mubr.msk.f32.mxu0 %vm127_vm1, %v58_v36  ;;  %5717 = vmatprep.mubr.msk.f32.mxu1 %vm127_vm1, %v987_v37  ;;  %v79_v36 = vld [vmem:[%s8847_s0 + $0x158] sm:$0xff] }
  0x47   :  { %1785 = vperm.xlu1 %6890, %v1607_v51   ;;  %v1008_v37 = vld [vmem:[%s8847_s0 + $0x13a] sm:$0xff]  ;;  %v3112_v51 = vld [vmem:[%s8849_s2 + $0x50] sm:$0xff] }
  0x48   :  { %1780 = vperm.xlu0 %6889, %v1606_v50   ;;  %v973_v50 = vld [vmem:[%s8847_s0 + $0x22] sm:$0xff] }
  0x49   :  { %5656 = vmatmul.mubr.msk.f32.gmra.mrb[22].mxu0 %vm127_vm1, %v59_v40  ;;  %5718 = vmatmul.mubr.msk.f32.gmra.mrb[34].mxu1 %vm127_vm1, %v988_v41  ;;  %v3108_v40 = vld [vmem:[%s8849_s2 + $0x30] sm:$0xff]  ;;  %v3109_v41 = vld [vmem:[%s8849_s2 + $0x38] sm:$0xff] }
  0x4a   :  { %5658 = vmatprep.mubr.msk.f32.mxu0 %vm127_vm1, %v60_v42  ;;  %5720 = vmatprep.mubr.msk.f32.mxu1 %vm127_vm1, %v989_v43  ;;  %v970_v42 = vld [vmem:[%s8847_s0 + $0xa] sm:$0xff] }
  0x4b   :  { %1795 = vperm.xlu1 %6890, %v1609_v57   ;;  %v1010_v43 = vld [vmem:[%s8847_s0 + $0x14a] sm:$0xff]  ;;  %v976_v57 = vld [vmem:[%s8847_s0 + $0x3a] sm:$0xff] }
  0x4c   :  { %1790 = vperm.xlu0 %6889, %v1608_v56   ;;  %v3115_v56 = vld [vmem:[%s8849_s2 + $0x68] sm:$0xff] }
  0x4d   :  { %5659 = vmatmul.mubr.msk.f32.gmra.mrb[24].mxu0 %vm127_vm1, %v61_v46  ;;  %5721 = vmatmul.mubr.msk.f32.gmra.mrb[36].mxu1 %vm127_vm1, %v990_v47  ;;  %v3110_v46 = vld [vmem:[%s8849_s2 + $0x40] sm:$0xff]  ;;  %v3111_v47 = vld [vmem:[%s8849_s2 + $0x48] sm:$0xff] }
  0x4e   :  { %5661 = vmatprep.mubr.msk.f32.mxu0 %vm127_vm1, %v62_v48  ;;  %5723 = vmatprep.mubr.msk.f32.mxu1 %vm127_vm1, %v991_v49  ;;  %v972_v48 = vld [vmem:[%s8847_s0 + $0x1a] sm:$0xff] }
  0x4f   :  { %1805 = vperm.xlu1 %6890, %v1611_v63   ;;  %v1012_v49 = vld [vmem:[%s8847_s0 + $0x15a] sm:$0xff] }
  0x50   :  { %1800 = vperm.xlu0 %6889, %v1610_v62   ;;  %v979_v62 = vld [vmem:[%s8847_s0 + $0x52] sm:$0xff]  ;;  %v3118_v63 = vld [vmem:[%s8849_s2 + $0x80] sm:$0xff] }
  0x51   :  { %5662 = vmatmul.mubr.msk.f32.gmra.mrb[26].mxu0 %vm127_vm1, %v63_v52  ;;  %5724 = vmatmul.mubr.msk.f32.gmra.mrb[38].mxu1 %vm127_vm1, %v992_v53  ;;  %v3113_v52 = vld [vmem:[%s8849_s2 + $0x58] sm:$0xff]  ;;  %v974_v53 = vld [vmem:[%s8847_s0 + $0x2a] sm:$0xff] }
  0x52   :  { %5664 = vmatprep.mubr.msk.f32.mxu0 %vm127_vm1, %v64_v54  ;;  %5726 = vmatprep.mubr.msk.f32.mxu1 %vm127_vm1, %v993_v55  ;;  %v975_v54 = vld [vmem:[%s8847_s0 + $0x32] sm:$0xff]  ;;  %v3114_v55 = vld [vmem:[%s8849_s2 + $0x60] sm:$0xff] }
  0x53   :  { %1815 = vperm.xlu1 %6890, %v1613_v5   ;;  %v982_v5 = vld [vmem:[%s8847_s0 + $0x6a] sm:$0xff] }
  0x54   :  { %1810 = vperm.xlu0 %6889, %v1612_v4   ;;  %v3121_v4 = vld [vmem:[%s8849_s2 + $0x98] sm:$0xff] }
  0x55   :  { %5665 = vmatmul.mubr.msk.f32.gmra.mrb[28].mxu0 %vm127_vm1, %v65_v58  ;;  %5727 = vmatmul.mubr.msk.f32.gmra.mrb[40].mxu1 %vm127_vm1, %v994_v59  ;;  %v977_v58 = vld [vmem:[%s8847_s0 + $0x42] sm:$0xff]  ;;  %v3116_v59 = vld [vmem:[%s8849_s2 + $0x70] sm:$0xff] }
  0x56   :  { %5667 = vmatprep.mubr.msk.f32.mxu0 %vm127_vm1, %v66_v60  ;;  %5729 = vmatprep.mubr.msk.f32.mxu1 %vm127_vm1, %v995_v61  ;;  %v3117_v60 = vld [vmem:[%s8849_s2 + $0x78] sm:$0xff]  ;;  %v978_v61 = vld [vmem:[%s8847_s0 + $0x4a] sm:$0xff] }
  0x57   :  { %1825 = vperm.xlu1 %6890, %v1615_v11   ;;  %v3125_v11 = vld [vmem:[%s8849_s2 + $0xb8] sm:$0xff] }
  0x58   :  { %1820 = vperm.xlu0 %6889, %v1614_v10   ;;  %v3124_v10 = vld [vmem:[%s8849_s2 + $0xb0] sm:$0xff] }
  0x59   :  { %5668 = vmatmul.mubr.msk.f32.gmra.mrb[30].mxu0 %vm127_vm1, %v67_v0  ;;  %5730 = vmatmul.mubr.msk.f32.gmra.mrb[42].mxu1 %vm127_vm1, %v996_v1  ;;  %v3119_v0 = vld [vmem:[%s8849_s2 + $0x88] sm:$0xff]  ;;  %v980_v1 = vld [vmem:[%s8847_s0 + $0x5a] sm:$0xff] }
  0x5a   :  { %5670 = vmatprep.mubr.msk.f32.mxu0 %vm127_vm1, %v68_v2  ;;  %5732 = vmatprep.mubr.msk.f32.mxu1 %vm127_vm1, %v997_v3  ;;  %v981_v2 = vld [vmem:[%s8847_s0 + $0x62] sm:$0xff]  ;;  %v3120_v3 = vld [vmem:[%s8849_s2 + $0x90] sm:$0xff] }
  0x5b   :  { %1835 = vperm.xlu1 %6890, %v1617_v17   ;;  %v3131_v17 = vld [vmem:[%s8849_s2 + $0xe8] sm:$0xff] }
  0x5c   :  { %1830 = vperm.xlu0 %6889, %v1616_v16   ;;  %v3130_v16 = vld [vmem:[%s8849_s2 + $0xe0] sm:$0xff] }
  0x5d   :  { %5671 = vmatmul.mubr.msk.f32.gmra.mrb[32].mxu0 %vm127_vm1, %v69_v6  ;;  %5733 = vmatmul.mubr.msk.f32.gmra.mrb[44].mxu1 %vm127_vm1, %v998_v7  ;;  %v983_v6 = vld [vmem:[%s8847_s0 + $0x72] sm:$0xff]  ;;  %v3122_v7 = vld [vmem:[%s8849_s2 + $0xa0] sm:$0xff] }
  0x5e   :  { %5673 = vmatprep.mubr.msk.f32.mxu0 %vm127_vm1, %v70_v8  ;;  %5735 = vmatprep.mubr.msk.f32.mxu1 %vm127_vm1, %v999_v9  ;;  %v3123_v8 = vld [vmem:[%s8849_s2 + $0xa8] sm:$0xff]  ;;  %v984_v9 = vld [vmem:[%s8847_s0 + $0x7a] sm:$0xff] }
  0x5f   :  { %3153 = vperm.xlu1 %6890, %v3103_v23   ;;  %v3137_v23 = vld [vmem:[%s8849_s2 + $0x118] sm:$0xff] }
  0x60   :  { %3148 = vperm.xlu0 %6889, %v3102_v22   ;;  %v3136_v22 = vld [vmem:[%s8849_s2 + $0x110] sm:$0xff] }
  0x61   :  { %5674 = vmatmul.mubr.msk.f32.gmra.mrb[34].mxu0 %vm127_vm1, %v71_v12  ;;  %5736 = vmatmul.mubr.msk.f32.gmra.mrb[46].mxu1 %vm127_vm1, %v1000_v13  ;;  %v3126_v12 = vld [vmem:[%s8849_s2 + $0xc0] sm:$0xff]  ;;  %v3127_v13 = vld [vmem:[%s8849_s2 + $0xc8] sm:$0xff] }
  0x62   :  { %5676 = vmatprep.mubr.msk.f32.mxu0 %vm127_vm1, %v72_v14  ;;  %5738 = vmatprep.mubr.msk.f32.mxu1 %vm127_vm1, %v1001_v15  ;;  %v3128_v14 = vld [vmem:[%s8849_s2 + $0xd0] sm:$0xff]  ;;  %v3129_v15 = vld [vmem:[%s8849_s2 + $0xd8] sm:$0xff] }
  0x63   :  { %3163 = vperm.xlu1 %6890, %v3105_v29   ;;  %v3143_v29 = vld [vmem:[%s8849_s2 + $0x148] sm:$0xff] }
  0x64   :  { %3158 = vperm.xlu0 %6889, %v3104_v28   ;;  %v3142_v28 = vld [vmem:[%s8849_s2 + $0x140] sm:$0xff] }
  0x65   :  { %5677 = vmatmul.mubr.msk.f32.gmra.mrb[36].mxu0 %vm127_vm1, %v73_v18  ;;  %5739 = vmatmul.mubr.msk.f32.gmra.mrb[48].mxu1 %vm127_vm1, %v1002_v19  ;;  %v3132_v18 = vld [vmem:[%s8849_s2 + $0xf0] sm:$0xff]  ;;  %v3133_v19 = vld [vmem:[%s8849_s2 + $0xf8] sm:$0xff] }
  0x66   :  { %5679 = vmatprep.mubr.msk.f32.mxu0 %vm127_vm1, %v74_v20  ;;  %5741 = vmatprep.mubr.msk.f32.mxu1 %vm127_vm1, %v1003_v21  ;;  %v3134_v20 = vld [vmem:[%s8849_s2 + $0x100] sm:$0xff]  ;;  %v3135_v21 = vld [vmem:[%s8849_s2 + $0x108] sm:$0xff] }
  0x67   :  { %3173 = vperm.xlu1 %6890, %v3107_v35   ;;  %v4939_v35 = vld [vmem:[%s8850_s6 + $0x90] sm:$0xff] }
  0x68   :  { %3168 = vperm.xlu0 %6889, %v3106_v34  }
  0x69   :  { %5680 = vmatmul.mubr.msk.f32.gmra.mrb[38].mxu0 %vm127_vm1, %v75_v24  ;;  %5742 = vmatmul.mubr.msk.f32.gmra.mrb[50].mxu1 %vm127_vm1, %v1004_v25  ;;  %v3138_v24 = vld [vmem:[%s8849_s2 + $0x120] sm:$0xff]  ;;  %v3139_v25 = vld [vmem:[%s8849_s2 + $0x128] sm:$0xff] }
  0x6a   :  { %5682 = vmatprep.mubr.msk.f32.mxu0 %vm127_vm1, %v76_v26  ;;  %5744 = vmatprep.mubr.msk.f32.mxu1 %vm127_vm1, %v1005_v27  ;;  %v3140_v26 = vld [vmem:[%s8849_s2 + $0x130] sm:$0xff]  ;;  %v3141_v27 = vld [vmem:[%s8849_s2 + $0x138] sm:$0xff] }
  0x6b   :  { %3183 = vperm.xlu1 %6890, %v3109_v41  }
  0x6c   :  { %3178 = vperm.xlu0 %6889, %v3108_v40  }
  0x6d   :  { %5683 = vmatmul.mubr.msk.f32.gmra.mrb[40].mxu0 %vm127_vm1, %v77_v30  ;;  %5745 = vmatmul.mubr.msk.f32.gmra.mrb[52].mxu1 %vm127_vm1, %v1006_v31  ;;  %v3144_v30 = vld [vmem:[%s8849_s2 + $0x150] sm:$0xff]  ;;  %v3145_v31 = vld [vmem:[%s8849_s2 + $0x158] sm:$0xff] }
  0x6e   :  { %5685 = vmatprep.mubr.msk.f32.mxu0 %vm127_vm1, %v78_v32  ;;  %5747 = vmatprep.mubr.msk.f32.mxu1 %vm127_vm1, %v1007_v33  ;;  %v4937_v32 = vld [vmem:[%s8850_s6 + $0x80] sm:$0xff]  ;;  %v4938_v33 = vld [vmem:[%s8850_s6 + $0x88] sm:$0xff] }
  0x6f   :  { %3193 = vperm.xlu1 %6890, %v3111_v47   ;;  %v6371_v34 = vpack.c.bf16 %v4938_v33, %v4937_v32  ;;  %v4946_v47 = vld [vmem:[%s8850_s6 + $0xc8] sm:$0xff] }
  0x70   :  { %3188 = vperm.xlu0 %6889, %v3110_v46   ;;  %v4945_v46 = vld [vmem:[%s8850_s6 + $0xc0] sm:$0xff] }
  0x71   :  { %5686 = vmatmul.mubr.msk.f32.gmra.mrb[42].mxu0 %vm127_vm1, %v79_v36  ;;  %5748 = vmatmul.mubr.msk.f32.gmra.mrb[54].mxu1 %vm127_vm1, %v1008_v37  ;;  %v4940_v36 = vld [vmem:[%s8850_s6 + $0x98] sm:$0xff] }
  0x72   :  { %5690 = vmatprep.mubr.msk.f32.mxu0 %vm127_vm1, %v969_v38  ;;  %5750 = vmatprep.mubr.msk.f32.mxu1 %vm127_vm1, %v1009_v39  ;;  %v6375_v37 = vpack.c.bf16 %v4940_v36, %v4939_v35  ;;  %v4941_v38 = vld [vmem:[%s8850_s6 + $0xa0] sm:$0xff]  ;;  %v4942_v39 = vld [vmem:[%s8850_s6 + $0xa8] sm:$0xff] }
  0x73   :  { %3203 = vperm.xlu1 %6890, %v3113_v52   ;;  %6372 = vmatprep.subr.bf16.mxu1 %v6371_v34  ;;  %v6379_v40 = vpack.c.bf16 %v4942_v39, %v4941_v38  ;;  %v4948_v52 = vld [vmem:[%s8850_s6 + $0xd8] sm:$0xff] }
  0x74   :  { %3198 = vperm.xlu0 %6889, %v3112_v51   ;;  %6374 = vmatpush3.bf16.msra.mxu1 %v6371_v34  ;;  %v4947_v51 = vld [vmem:[%s8850_s6 + $0xd0] sm:$0xff] }
  0x75   :  { %5691 = vmatmul.mubr.msk.f32.vlgmr.msra.gmra.mrb[0].mxu0 %vm127_vm1, %v970_v42  ;;  %5751 = vmatmul.mubr.msk.f32.gmra.mrb[56].mxu1 %vm127_vm1, %v1010_v43  ;;  %v4943_v43 = vld [vmem:[%s8850_s6 + $0xb0] sm:$0xff] }
  0x76   :  { %5693 = vmatprep.mubr.msk.f32.mxu0 %vm127_vm1, %v971_v44  ;;  %5753 = vmatprep.mubr.msk.f32.mxu1 %vm127_vm1, %v1011_v45  ;;  %v4944_v44 = vld [vmem:[%s8850_s6 + $0xb8] sm:$0xff] }
  0x77   :  { %3213 = vperm.xlu1 %6890, %v3115_v56   ;;  %6376 = vmatprep.subr.bf16.mxu1 %v6375_v37  ;;  %v6383_v45 = vpack.c.bf16 %v4944_v44, %v4943_v43  ;;  %v4949_v56 = vld [vmem:[%s8850_s6 + $0xe0] sm:$0xff] }
  0x78   :  { %3208 = vperm.xlu0 %6889, %v3114_v55   ;;  %6378 = vmatpush3.bf16.msra.mxu1 %v6375_v37 }
  0x79   :  { %5694 = vmatmul.mubr.msk.f32.gmra.mrb[2].mxu0 %vm127_vm1, %v972_v48  ;;  %5754 = vmatmul.mubr.msk.f32.gmra.mrb[58].mxu1 %vm127_vm1, %v1012_v49  ;;  %v6387_v49 = vpack.c.bf16 %v4946_v47, %v4945_v46 }
  0x7a   :  { %5696 = vmatprep.mubr.msk.f32.mxu0 %vm127_vm1, %v973_v50  ;;  %6380 = vmatprep.subr.bf16.mxu1 %v6379_v40 }
  0x7b   :  { %3223 = vperm.xlu1 %6890, %v3117_v60   ;;  %v4952_v60 = vld [vmem:[%s8850_s6 + $0xf8] sm:$0xff] }
  0x7c   :  { %3218 = vperm.xlu0 %6889, %v3116_v59   ;;  %6382 = vmatpush3.bf16.msra.mxu1 %v6379_v40  ;;  %v4951_v59 = vld [vmem:[%s8850_s6 + $0xf0] sm:$0xff] }
  0x7d   :  { %5697 = vmatmul.mubr.msk.f32.gmra.mrb[4].mxu0 %vm127_vm1, %v974_v53  ;;  %6384 = vmatprep.subr.bf16.mxu1 %v6383_v45  ;;  %v6391_v53 = vpack.c.bf16 %v4948_v52, %v4947_v51 }
  0x7e   :  { %5699 = vmatprep.mubr.msk.f32.mxu0 %vm127_vm1, %v975_v54 }
  0x7f   :  { %3233 = vperm.xlu1 %6890, %v3119_v0  }
  0x80   :  { %3228 = vperm.xlu0 %6889, %v3118_v63   ;;  %6386 = vmatpush3.bf16.msra.mxu1 %v6383_v45  ;;  %v6399_v63 = vpack.c.bf16 %v4952_v60, %v4951_v59 }
  0x81   :  { %5700 = vmatmul.mubr.msk.f32.gmra.mrb[6].mxu0 %vm127_vm1, %v976_v57  ;;  %6388 = vmatprep.subr.bf16.mxu1 %v6387_v49  ;;  %v4950_v57 = vld [vmem:[%s8850_s6 + $0xe8] sm:$0xff] }
  0x82   :  { %5702 = vmatprep.mubr.msk.f32.mxu0 %vm127_vm1, %v977_v58  ;;  %v6395_v58 = vpack.c.bf16 %v4950_v57, %v4949_v56 }
  0x83   :  { %3243 = vperm.xlu1 %6890, %v3121_v4  }
  0x84   :  { %3238 = vperm.xlu0 %6889, %v3120_v3   ;;  %6390 = vmatpush3.bf16.msra.mxu1 %v6387_v49 }
  0x85   :  { %5703 = vmatmul.mubr.msk.f32.gmra.mrb[8].mxu0 %vm127_vm1, %v978_v61  ;;  %6392 = vmatprep.subr.bf16.mxu1 %v6391_v53  ;;  %v6892_v61 = vmov 0.0  }
  0x86   :  { %5705 = vmatprep.mubr.msk.f32.mxu0 %vm127_vm1, %v979_v62  ;;  %v7779_v42 = vpop.permute.xlu1 %1630  ;;  %35 = vst [vmem:[#allocation2 + $0x160] sm:$0xff] %v6892_v61  ;;  %v1970_v61 = vld [vmem:[%s8850_s6] sm:$0xff] }
  0x87   :  { %3253 = vperm.xlu1 %6890, %v3123_v8   ;;  %v7777_v41 = vpop.permute.xlu0 %1620 }
  0x88   :  { %3248 = vperm.xlu0 %6889, %v3122_v7   ;;  %6394 = vmatpush3.bf16.msra.mxu1 %v6391_v53 }
  0x89   :  { %5706 = vmatmul.mubr.msk.f32.gmra.mrb[10].mxu0 %vm127_vm1, %v980_v1  ;;  %6396 = vmatprep.subr.bf16.mxu1 %v6395_v58 }
  0x8a   :  { %5708 = vmatprep.mubr.msk.f32.mxu0 %vm127_vm1, %v981_v2  ;;  %v7795_v50 = vpop.permute.xlu1 %1635 }
  0x8b   :  { %3263 = vperm.xlu1 %6890, %v3125_v11   ;;  %v7793_v48 = vpop.permute.xlu0 %1625 }
  0x8c   :  { %3258 = vperm.xlu0 %6889, %v3124_v10   ;;  %6398 = vmatpush3.bf16.msra.mxu1 %v6395_v58 }
  0x8d   :  { %5709 = vmatmul.mubr.msk.f32.gmra.mrb[12].mxu0 %vm127_vm1, %v982_v5  ;;  %6400 = vmatprep.subr.bf16.mxu1 %v6399_v63 }
  0x8e   :  { %5711 = vmatprep.mubr.msk.f32.mxu0 %vm127_vm1, %v983_v6  ;;  %v7805_v55 = vpop.permute.xlu1 %1645 }
  0x8f   :  { %3273 = vperm.xlu1 %6890, %v3127_v13   ;;  %v7803_v54 = vpop.permute.xlu0 %1640 }
  0x90   :  { %3268 = vperm.xlu0 %6889, %v3126_v12   ;;  %8858 = vst [vmem:[#allocation3_spill] sm:$0xff] %v7803_v54  ;;  %6402 = vmatpush3.bf16.msra.mxu1 %v6399_v63  ;;  %v1971_v63 = vld [vmem:[%s8850_s6 + $0x8] sm:$0xff] }
  0x91   :  { %5712 = vmatmul.mubr.msk.f32.gmra.mrb[14].mxu0 %vm127_vm1, %v984_v9 }
  0x92   :  { %v7821_v0 = vpop.permute.xlu1 %1655 }
  0x93   :  { %3283 = vperm.xlu1 %6890, %v3129_v15   ;;  %v7819_v62 = vpop.permute.xlu0 %1650  ;;  %8860 = vst [vmem:[#allocation5_spill] sm:$0xff] %v7821_v0 }
  0x94   :  { %3278 = vperm.xlu0 %6889, %v3128_v14   ;;  %8859 = vst [vmem:[#allocation4_spill] sm:$0xff] %v7819_v62 }
  0x96   :  { %v7831_v5 = vpop.permute.xlu1 %1665 }
  0x97   :  { %3293 = vperm.xlu1 %6890, %v3131_v17   ;;  %v7827_v3 = vpop.permute.xlu0 %1660  ;;  %8865 = vst [vmem:[#allocation10_spill] sm:$0xff] %v7831_v5 }
  0x98   :  { %3288 = vperm.xlu0 %6889, %v3130_v16   ;;  %8863 = vst [vmem:[#allocation8_spill] sm:$0xff] %v7827_v3 }
  0x9a   :  { %v7837_v10 = vpop.permute.xlu1 %1675 }
  0x9b   :  { %3303 = vperm.xlu1 %6890, %v3133_v19   ;;  %v7835_v9 = vpop.permute.xlu0 %1670  ;;  %8868 = vst [vmem:[#allocation13_spill] sm:$0xff] %v7837_v10 }
  0x9c   :  { %3298 = vperm.xlu0 %6889, %v3132_v18   ;;  %8867 = vst [vmem:[#allocation12_spill] sm:$0xff] %v7835_v9 }
  0x9e   :  { %v7841_v15 = vpop.permute.xlu1 %1685 }
  0x9f   :  { %3313 = vperm.xlu1 %6890, %v3135_v21   ;;  %v7839_v13 = vpop.permute.xlu0 %1680  ;;  %8870 = vst [vmem:[#allocation15_spill] sm:$0xff] %v7841_v15 }
  0xa0   :  { %3308 = vperm.xlu0 %6889, %v3134_v20   ;;  %8869 = vst [vmem:[#allocation14_spill] sm:$0xff] %v7839_v13 }
  0xa2   :  { %v7849_v20 = vpop.permute.xlu1 %1695 }
  0xa3   :  { %3323 = vperm.xlu1 %6890, %v3137_v23   ;;  %v7847_v19 = vpop.permute.xlu0 %1690  ;;  %8872 = vst [vmem:[#allocation17_spill] sm:$0xff] %v7849_v20 }
  0xa4   :  { %3318 = vperm.xlu0 %6889, %v3136_v22   ;;  %8871 = vst [vmem:[#allocation16_spill] sm:$0xff] %v7847_v19 }
  0xa7   :  { %3333 = vperm.xlu1 %6890, %v3139_v25   ;;  %v7855_v23 = vpop.permute.xlu0 %1700  ;;  %v7859_v25 = vpop.permute.xlu1 %1705 }
  0xa8   :  { %3328 = vperm.xlu0 %6889, %v3138_v24  }
  0xab   :  { %3343 = vperm.xlu1 %6890, %v3141_v27  }
  0xac   :  { %3338 = vperm.xlu0 %6889, %v3140_v26  }
  0xaf   :  { %3353 = vperm.xlu1 %6890, %v3143_v29   ;;  %v7867_v29 = vpop.permute.xlu0 %1710 }
  0xb0   :  { %3348 = vperm.xlu0 %6889, %v3142_v28  }
  0xb3   :  { %3363 = vperm.xlu1 %6890, %v3145_v31   ;;  %v7875_v33 = vpop.permute.xlu0 %1720 }
  0xb4   :  { %3358 = vperm.xlu0 %6889, %v3144_v30   ;;  %v7869_v30 = vpop.permute.xlu1 %1715 }
  0xb7   :  { %v7887_v39 = vpop.permute.xlu0 %1730 }
  0xb8   :  { %v7879_v35 = vpop.permute.xlu1 %1725 }
  0xbb   :  { %v7895_v45 = vpop.permute.xlu0 %1740 }
  0xbc   :  { %v7889_v40 = vpop.permute.xlu1 %1735 }
  0xbf   :  { %v7907_v59 = vpop.permute.xlu0 %1750 }
  0xc0   :  { %v7899_v47 = vpop.permute.xlu1 %1745 }
  0xc4   :  { %v7909_v60 = vpop.permute.xlu1 %1755 }
  0xd8   :  { %v7823_v1 = vpop.f32.mrb[0].mxu1 }
  0xd9   :  { %8861 = vst [vmem:[#allocation6_spill] sm:$0xff] %v7823_v1  ;;  %v7825_v2 = vpop.f32.mrb[1].mxu1 }
  0xda   :  { %8862 = vst [vmem:[#allocation7_spill] sm:$0xff] %v7825_v2 }
  0xdc   :  { %v7829_v4 = vpop.f32.mrb[2].mxu1 }
  0xdd   :  { %8864 = vst [vmem:[#allocation9_spill] sm:$0xff] %v7829_v4  ;;  %v7833_v6 = vpop.f32.mrb[3].mxu1  ;;  %v7927_v4 = vld [vmem:[%s8851_s5] ss:$0 sm:$0xff] }
  0xde   :  { %8866 = vst [vmem:[#allocation11_spill] sm:$0xff] %v7833_v6 }
  0xe0   :  { %v5580_v7 = vpop.f32.mrb[4].mxu1 }
  0xe1   :  { %v410_v8 = vpop.f32.mrb[5].mxu1 }
  0xe4   :  { %v5583_v11 = vpop.f32.mrb[6].mxu1 }
  0xe5   :  { %v420_v12 = vpop.f32.mrb[7].mxu1 }
  0xe8   :  { %v5586_v14 = vpop.f32.mrb[8].mxu1 }
  0xe9   :  { %v430_v16 = vpop.f32.mrb[9].mxu1 }
  0xec   :  { %v7843_v17 = vpop.f32.mrb[10].mxu1 }
  0xed   :  { %v7845_v18 = vpop.f32.mrb[11].mxu1 }
  0xf0   :  { %v7851_v21 = vpop.f32.mrb[12].mxu1 }
  0xf1   :  { %v7853_v22 = vpop.f32.mrb[13].mxu1 }
  0xf4   :  { %v7857_v24 = vpop.f32.mrb[14].mxu1 }
  0xf5   :  { %v7861_v26 = vpop.f32.mrb[15].mxu1 }
  0xf8   :  { %v7863_v27 = vpop.f32.mrb[16].mxu1 }
  0xf9   :  { %v7865_v28 = vpop.f32.mrb[17].mxu1 }
  0xfc   :  { %v7871_v31 = vpop.f32.mrb[18].mxu1 }
  0xfd   :  { %v7873_v32 = vpop.f32.mrb[19].mxu1 }
 0x100   :  { %v7877_v34 = vpop.f32.mrb[20].mxu1 }
 0x101   :  { %v7881_v36 = vpop.f32.mrb[21].mxu1 }
 0x104   :  { %v7883_v37 = vpop.f32.mrb[22].mxu1 }
 0x105   :  { %v7885_v38 = vpop.f32.mrb[23].mxu1 }
 0x108   :  { %v7891_v43 = vpop.f32.mrb[24].mxu1 }
 0x109   :  { %v7893_v44 = vpop.f32.mrb[25].mxu1 }
 0x10c   :  { %v7897_v46 = vpop.f32.mrb[26].mxu1 }
 0x10d   :  { %v7901_v49 = vpop.f32.mrb[27].mxu1 }
 0x110   :  { %v5648_v51 = vpop.f32.mrb[16].mxu0  ;;  %v7903_v52 = vpop.f32.mrb[28].mxu1 }
 0x111   :  { %v836_v53 = vadd.f32 %v5648_v51, %v5580_v7  ;;  %v830_v56 = vpop.f32.mrb[17].mxu0  ;;  %v7905_v57 = vpop.f32.mrb[29].mxu1  ;;  %v7919_v7 = vpack.c.bf16 %v1971_v63, %v1970_v61 }
 0x112   :  { %v831_v58 = vadd.f32 %v830_v56, %v410_v8 }
 0x113   :  { %8873 = vst [vmem:[#allocation18_spill] sm:$0xff] %v7919_v7  ;;  %6404 = vmatprep.subr.bf16.mxu1 %v7919_v7 }
 0x114   :  { %v5651_v19 = vpop.f32.mrb[18].mxu0  ;;  %v7917_v20 = vpop.f32.mrb[30].mxu1 }
 0x115   :  { %v846_v51 = vadd.f32 %v5651_v19, %v5583_v11  ;;  %v840_v13 = vpop.f32.mrb[19].mxu0  ;;  %v7921_v8 = vpop.f32.mrb[31].mxu1 }
 0x116   :  { %v841_v56 = vadd.f32 %v840_v13, %v420_v12  ;;  %v7929_v11 = vpop.permute.xlu0 %1760  ;;  %v7931_v19 = vpop.permute.xlu1 %1765 }
 0x118   :  { %v5654_v15 = vpop.f32.mrb[20].mxu0  ;;  %v5716_v6 = vpop.f32.mrb[32].mxu1 }
 0x119   :  { %v856_v2 = vadd.f32 %v5654_v15, %v5586_v14  ;;  %v1452_v9 = vadd.f32 %v5716_v6, %v836_v53  ;;  %v850_v1 = vpop.f32.mrb[21].mxu0  ;;  %v1296_v10 = vpop.f32.mrb[33].mxu1 }
 0x11a   :  { %v851_v61 = vadd.f32 %v850_v1, %v430_v16  ;;  %v1451_v63 = vadd.f32 %v1296_v10, %v831_v58 }
 0x11b   :  { %v1503_v12 = vadd.f32 %v7927_v4, %v1452_v9 }
 0x11c   :  { %v1502_v13 = vadd.f32 %v7927_v4, %v1451_v63  ;;  %v5657_v3 = vpop.f32.mrb[22].mxu0  ;;  %v5719_v7 = vpop.f32.mrb[34].mxu1 }
 0x11d   :  { %v1547_v5 = vmax.f32 %v1503_v12, 0.0  ;;  %v866_v62 = vadd.f32 %v5657_v3, %v7843_v17  ;;  %v1454_v0 = vadd.f32 %v5719_v7, %v846_v51  ;;  %v860_v14 = vpop.f32.mrb[23].mxu0  ;;  %v1306_v6 = vpop.f32.mrb[35].mxu1 }
 0x11e   :  { %v1546_v15 = vmax.f32 %v1502_v13, 0.0  ;;  %v861_v1 = vadd.f32 %v860_v14, %v7845_v18  ;;  %v1453_v10 = vadd.f32 %v1306_v6, %v841_v56 }
 0x11f   :  { %v1855_v16 = vmul.f32 %v7859_v25, %v1547_v5  ;;  %v1505_v53 = vadd.f32 %v7927_v4, %v1454_v0  ;;  %v7943_v25 = vpop.permute.xlu0 %1770  ;;  %v7945_v0 = vpop.permute.xlu1 %1775 }
 0x120   :  { %v1854_v9 = vmul.f32 %v7855_v23, %v1546_v15  ;;  %v1504_v58 = vadd.f32 %v7927_v4, %v1453_v10  ;;  %v5660_v63 = vpop.f32.mrb[24].mxu0  ;;  %v5722_v54 = vpop.f32.mrb[36].mxu1 }
 0x121   :  { %1899 = vst [vmem:[#allocation2 + $0x88] sm:$0xff] %v1855_v16  ;;  %v1549_v12 = vmax.f32 %v1505_v53, 0.0  ;;  %v876_v3 = vadd.f32 %v5660_v63, %v7851_v21  ;;  %v1456_v17 = vadd.f32 %v5722_v54, %v856_v2  ;;  %v870_v7 = vpop.f32.mrb[25].mxu0  ;;  %v1316_v51 = vpop.f32.mrb[37].mxu1 }
 0x122   :  { %1898 = vst [vmem:[#allocation2 + $0x80] sm:$0xff] %v1854_v9  ;;  %v1548_v18 = vmax.f32 %v1504_v58, 0.0  ;;  %v871_v56 = vadd.f32 %v870_v7, %v7853_v22  ;;  %v1455_v5 = vadd.f32 %v1316_v51, %v851_v61 }
 0x123   :  { %v1857_v23 = vmul.f32 %v7869_v30, %v1549_v12  ;;  %v1507_v13 = vadd.f32 %v7927_v4, %v1456_v17 }
 0x124   :  { %v7950_v14 = vmul.f32 %v7867_v29, %v1548_v18  ;;  %v1506_v54 = vadd.f32 %v7927_v4, %v1455_v5  ;;  %v5663_v2 = vpop.f32.mrb[26].mxu0  ;;  %v5725_v21 = vpop.f32.mrb[38].mxu1 }
 0x125   :  { %1901 = vst [vmem:[#allocation2 + $0x98] sm:$0xff] %v1857_v23  ;;  %v1551_v6 = vmax.f32 %v1507_v13, 0.0  ;;  %v886_v22 = vadd.f32 %v5663_v2, %v7857_v24  ;;  %v1458_v61 = vadd.f32 %v5725_v21, %v866_v62  ;;  %v880_v15 = vpop.f32.mrb[27].mxu0  ;;  %v1326_v10 = vpop.f32.mrb[39].mxu1 }
 0x126   :  { %1900 = vst [vmem:[#allocation2 + $0x90] sm:$0xff] %v7950_v14  ;;  %v1550_v16 = vmax.f32 %v1506_v54, 0.0  ;;  %v881_v30 = vadd.f32 %v880_v15, %v7861_v26  ;;  %v1457_v53 = vadd.f32 %v1326_v10, %v861_v1  ;;  %v7970_v5 = vpop.permute.xlu1 %1785 }
 0x127   :  { %v7957_v29 = vmul.f32 %v7879_v35, %v1551_v6  ;;  %v1509_v9 = vadd.f32 %v7927_v4, %v1458_v61 }
 0x128   :  { %v7961_v58 = vmul.f32 %v7875_v33, %v1550_v16  ;;  %v1508_v63 = vadd.f32 %v7927_v4, %v1457_v53  ;;  %v5666_v24 = vpop.f32.mrb[28].mxu0  ;;  %v5728_v62 = vpop.f32.mrb[40].mxu1 }
 0x129   :  { %1903 = vst [vmem:[#allocation2 + $0xa8] sm:$0xff] %v7957_v29  ;;  %v1553_v12 = vmax.f32 %v1509_v9, 0.0  ;;  %v896_v17 = vadd.f32 %v5666_v24, %v7863_v27  ;;  %v1460_v7 = vadd.f32 %v5728_v62, %v876_v3  ;;  %v890_v26 = vpop.f32.mrb[29].mxu0  ;;  %v1336_v1 = vpop.f32.mrb[41].mxu1 }
 0x12a   :  { %1902 = vst [vmem:[#allocation2 + $0xa0] sm:$0xff] %v7961_v58  ;;  %v1552_v35 = vmax.f32 %v1508_v63, 0.0  ;;  %v891_v51 = vadd.f32 %v890_v26, %v7865_v28  ;;  %v1459_v18 = vadd.f32 %v1336_v1, %v871_v56  ;;  %v7968_v33 = vpop.permute.xlu0 %1780  ;;  %v7998_v26 = vpop.permute.xlu1 %1795 }
 0x12b   :  { %v7973_v23 = vmul.f32 %v7889_v40, %v1553_v12  ;;  %v1511_v13 = vadd.f32 %v7927_v4, %v1460_v7 }
 0x12c   :  { %v7977_v27 = vmul.f32 %v7887_v39, %v1552_v35  ;;  %v1510_v3 = vadd.f32 %v7927_v4, %v1459_v18  ;;  %v5669_v54 = vpop.f32.mrb[30].mxu0  ;;  %v5731_v2 = vpop.f32.mrb[42].mxu1 }
 0x12d   :  { %1905 = vst [vmem:[#allocation2 + $0xb8] sm:$0xff] %v7973_v23  ;;  %v1555_v28 = vmax.f32 %v1511_v13, 0.0  ;;  %v906_v56 = vadd.f32 %v5669_v54, %v7871_v31  ;;  %v1462_v21 = vadd.f32 %v5731_v2, %v886_v22  ;;  %v900_v6 = vpop.f32.mrb[31].mxu0  ;;  %v1346_v61 = vpop.f32.mrb[43].mxu1 }
 0x12e   :  { %1904 = vst [vmem:[#allocation2 + $0xb0] sm:$0xff] %v7977_v27  ;;  %v1554_v40 = vmax.f32 %v1510_v3, 0.0  ;;  %v901_v15 = vadd.f32 %v900_v6, %v7873_v32  ;;  %v1461_v10 = vadd.f32 %v1346_v61, %v881_v30 }
 0x12f   :  { %v7985_v39 = vmul.f32 %v7899_v47, %v1555_v28  ;;  %v1513_v16 = vadd.f32 %v7927_v4, %v1462_v21 }
 0x130   :  { %v7989_v53 = vmul.f32 %v7895_v45, %v1554_v40  ;;  %v1512_v9 = vadd.f32 %v7927_v4, %v1461_v10  ;;  %v5672_v31 = vpop.f32.mrb[32].mxu0  ;;  %v5734_v22 = vpop.f32.mrb[44].mxu1 }
 0x131   :  { %1907 = vst [vmem:[#allocation2 + $0xc8] sm:$0xff] %v7985_v39  ;;  %v1557_v63 = vmax.f32 %v1513_v16, 0.0  ;;  %v916_v24 = vadd.f32 %v5672_v31, %v7877_v34  ;;  %v1464_v62 = vadd.f32 %v5734_v22, %v896_v17  ;;  %v910_v32 = vpop.f32.mrb[33].mxu0  ;;  %v1356_v30 = vpop.f32.mrb[45].mxu1 }
 0x132   :  { %1906 = vst [vmem:[#allocation2 + $0xc0] sm:$0xff] %v7989_v53  ;;  %v1556_v47 = vmax.f32 %v1512_v9, 0.0  ;;  %v911_v12 = vadd.f32 %v910_v32, %v7881_v36  ;;  %v1463_v7 = vadd.f32 %v1356_v30, %v891_v51  ;;  %v7996_v45 = vpop.permute.xlu0 %1790 }
 0x133   :  { %v8001_v1 = vmul.f32 %v7909_v60, %v1557_v63  ;;  %v1515_v35 = vadd.f32 %v7927_v4, %v1464_v62  ;;  %v1806_v63 = vpop.permute.xlu1 %1805 }
 0x134   :  { %v8005_v34 = vmul.f32 %v7907_v59, %v1556_v47  ;;  %v1514_v17 = vadd.f32 %v7927_v4, %v1463_v7  ;;  %v5675_v18 = vpop.f32.mrb[34].mxu0  ;;  %v5737_v13 = vpop.f32.mrb[46].mxu1 }
 0x135   :  { %1909 = vst [vmem:[#allocation2 + $0xd8] sm:$0xff] %v8001_v1  ;;  %v1559_v36 = vmax.f32 %v1515_v35, 0.0  ;;  %v926_v51 = vadd.f32 %v5675_v18, %v7883_v37  ;;  %v1466_v3 = vadd.f32 %v5737_v13, %v906_v56  ;;  %v920_v54 = vpop.f32.mrb[35].mxu0  ;;  %v1366_v2 = vpop.f32.mrb[47].mxu1 }
 0x136   :  { %1908 = vst [vmem:[#allocation2 + $0xd0] sm:$0xff] %v8005_v34  ;;  %v1558_v60 = vmax.f32 %v1514_v17, 0.0  ;;  %v921_v28 = vadd.f32 %v920_v54, %v7885_v38  ;;  %v1465_v21 = vadd.f32 %v1366_v2, %v901_v15 }
 0x137   :  { %v8013_v59 = vmul.f32 %v7931_v19, %v1559_v36  ;;  %v1517_v6 = vadd.f32 %v7927_v4, %v1466_v3 }
 0x138   :  { %v8017_v61 = vmul.f32 %v7929_v11, %v1558_v60  ;;  %v1516_v40 = vadd.f32 %v7927_v4, %v1465_v21  ;;  %v5678_v37 = vpop.f32.mrb[36].mxu0  ;;  %v5740_v56 = vpop.f32.mrb[48].mxu1 }
 0x139   :  { %1911 = vst [vmem:[#allocation2 + $0xe8] sm:$0xff] %v8013_v59  ;;  %v1561_v10 = vmax.f32 %v1517_v6, 0.0  ;;  %v936_v16 = vadd.f32 %v5678_v37, %v7891_v43  ;;  %v1468_v9 = vadd.f32 %v5740_v56, %v916_v24  ;;  %v930_v38 = vpop.f32.mrb[37].mxu0  ;;  %v1376_v15 = vpop.f32.mrb[49].mxu1 }
 0x13a   :  { %1910 = vst [vmem:[#allocation2 + $0xe0] sm:$0xff] %v8017_v61  ;;  %v1560_v19 = vmax.f32 %v1516_v40, 0.0  ;;  %v931_v31 = vadd.f32 %v930_v38, %v7893_v44  ;;  %v1467_v22 = vadd.f32 %v1376_v15, %v911_v12  ;;  %v1801_v11 = vpop.permute.xlu0 %1800  ;;  %v1816_v37 = vpop.permute.xlu1 %1815 }
 0x13b   :  { %v8025_v62 = vmul.f32 %v7945_v0, %v1561_v10  ;;  %v1519_v32 = vadd.f32 %v7927_v4, %v1468_v9 }
 0x13c   :  { %v8029_v30 = vmul.f32 %v7943_v25, %v1560_v19  ;;  %v1518_v43 = vadd.f32 %v7927_v4, %v1467_v22  ;;  %v5681_v24 = vpop.f32.mrb[38].mxu0  ;;  %v5743_v47 = vpop.f32.mrb[50].mxu1 }
 0x13d   :  { %1913 = vst [vmem:[#allocation2 + $0xf8] sm:$0xff] %v8025_v62  ;;  %v1563_v7 = vmax.f32 %v1519_v32, 0.0  ;;  %v946_v44 = vadd.f32 %v5681_v24, %v7897_v46  ;;  %v1470_v12 = vadd.f32 %v5743_v47, %v926_v51  ;;  %v940_v35 = vpop.f32.mrb[39].mxu0  ;;  %v1386_v17 = vpop.f32.mrb[51].mxu1 }
 0x13e   :  { %1912 = vst [vmem:[#allocation2 + $0xf0] sm:$0xff] %v8029_v30  ;;  %v1562_v0 = vmax.f32 %v1518_v43, 0.0  ;;  %v941_v18 = vadd.f32 %v940_v35, %v7901_v49  ;;  %v1469_v13 = vadd.f32 %v1386_v17, %v921_v28 }
 0x13f   :  { %v8037_v25 = vmul.f32 %v7970_v5, %v1563_v7  ;;  %v1521_v36 = vadd.f32 %v7927_v4, %v1470_v12 }
 0x140   :  { %v8041_v3 = vmul.f32 %v7968_v33, %v1562_v0  ;;  %v1520_v54 = vadd.f32 %v7927_v4, %v1469_v13  ;;  %v5684_v46 = vpop.f32.mrb[40].mxu0  ;;  %v5746_v51 = vpop.f32.mrb[52].mxu1 }
 0x141   :  { %1915 = vst [vmem:[#allocation2 + $0x108] sm:$0xff] %v8037_v25  ;;  %v1565_v2 = vmax.f32 %v1521_v36, 0.0  ;;  %v956_v60 = vadd.f32 %v5684_v46, %v7903_v52  ;;  %v1472_v21 = vadd.f32 %v5746_v51, %v936_v16  ;;  %v950_v49 = vpop.f32.mrb[41].mxu0  ;;  %v1396_v28 = vpop.f32.mrb[53].mxu1 }
 0x142   :  { %1914 = vst [vmem:[#allocation2 + $0x100] sm:$0xff] %v8041_v3  ;;  %v1564_v5 = vmax.f32 %v1520_v54, 0.0  ;;  %v951_v6 = vadd.f32 %v950_v49, %v7905_v57  ;;  %v1471_v40 = vadd.f32 %v1396_v28, %v931_v31  ;;  %v1811_v33 = vpop.permute.xlu0 %1810  ;;  %v1826_v36 = vpop.permute.xlu1 %1825 }
 0x143   :  { %v8049_v56 = vmul.f32 %v7998_v26, %v1565_v2  ;;  %v1523_v10 = vadd.f32 %v7927_v4, %v1472_v21 }
 0x144   :  { %v8053_v9 = vmul.f32 %v7996_v45, %v1564_v5  ;;  %v1522_v52 = vadd.f32 %v7927_v4, %v1471_v40  ;;  %v5687_v16 = vpop.f32.mrb[42].mxu0  ;;  %v5749_v38 = vpop.f32.mrb[54].mxu1 }
 0x145   :  { %1917 = vst [vmem:[#allocation2 + $0x118] sm:$0xff] %v8049_v56  ;;  %v1567_v15 = vmax.f32 %v1523_v10, 0.0  ;;  %v966_v57 = vadd.f32 %v5687_v16, %v7917_v20  ;;  %v1474_v19 = vadd.f32 %v5749_v38, %v946_v44  ;;  %v960_v31 = vpop.f32.mrb[43].mxu0  ;;  %v1406_v22 = vpop.f32.mrb[55].mxu1 }
 0x146   :  { %1916 = vst [vmem:[#allocation2 + $0x110] sm:$0xff] %v8053_v9  ;;  %v1566_v26 = vmax.f32 %v1522_v52, 0.0  ;;  %v961_v32 = vadd.f32 %v960_v31, %v7921_v8  ;;  %v1473_v43 = vadd.f32 %v1406_v22, %v941_v18 }
 0x147   :  { %v8060_v45 = vmul.f32 %v1806_v63, %v1567_v15  ;;  %v1525_v24 = vadd.f32 %v7927_v4, %v1474_v19 }
 0x148   :  { %v8063_v47 = vmul.f32 %v1801_v11, %v1566_v26  ;;  %v1524_v7 = vadd.f32 %v7927_v4, %v1473_v43  ;;  %v5692_v12 = vpop.f32.mrb[0].mxu0  ;;  %v5752_v35 = vpop.f32.mrb[56].mxu1 }
 0x149   :  { %1919 = vst [vmem:[#allocation2 + $0x128] sm:$0xff] %v8060_v45  ;;  %v1569_v20 = vmax.f32 %v1525_v24, 0.0  ;;  %v1487_v44 = vadd.f32 %v5692_v12, %v7927_v4  ;;  %v1476_v17 = vadd.f32 %v5752_v35, %v956_v60  ;;  %v1216_v0 = vpop.f32.mrb[1].mxu0  ;;  %v1416_v13 = vpop.f32.mrb[57].mxu1 }
 0x14a   :  { %1918 = vst [vmem:[#allocation2 + $0x120] sm:$0xff] %v8063_v47  ;;  %v1568_v8 = vmax.f32 %v1524_v7, 0.0  ;;  %v1486_v63 = vadd.f32 %v7927_v4, %v1216_v0  ;;  %v1475_v18 = vadd.f32 %v1416_v13, %v951_v6  ;;  %v1821_v11 = vpop.permute.xlu0 %1820  ;;  %v1836_v12 = vpop.permute.xlu1 %1835 }
 0x14b   :  { %v8070_v54 = vmul.f32 %v1816_v37, %v1569_v20  ;;  %v1531_v46 = vmax.f32 %v1487_v44, 0.0  ;;  %v1527_v51 = vadd.f32 %v7927_v4, %v1476_v17 }
 0x14c   :  { %v8073_v2 = vmul.f32 %v1811_v33, %v1568_v8  ;;  %v1530_v21 = vmax.f32 %v1486_v63, 0.0  ;;  %v1526_v60 = vadd.f32 %v7927_v4, %v1475_v18  ;;  %v5695_v49 = vpop.f32.mrb[2].mxu0  ;;  %v5755_v28 = vpop.f32.mrb[58].mxu1 }
 0x14d   :  { %1921 = vst [vmem:[#allocation2 + $0x138] sm:$0xff] %v8070_v54  ;;  %v8078_v5 = vmul.f32 %v7793_v48, %v1531_v46  ;;  %v1571_v6 = vmax.f32 %v1527_v51, 0.0  ;;  %v1489_v40 = vadd.f32 %v5695_v49, %v7927_v4  ;;  %v1478_v37 = vadd.f32 %v5755_v28, %v966_v57  ;;  %v1226_v10 = vpop.f32.mrb[3].mxu0  ;;  %v1426_v52 = vpop.f32.mrb[59].mxu1  ;;  %v1972_v49 = vld [vmem:[%s8850_s6 + $0x10] sm:$0xff] }
 0x14e   :  { %1920 = vst [vmem:[#allocation2 + $0x130] sm:$0xff] %v8073_v2  ;;  %v8083_v33 = vmul.f32 %v7777_v41, %v1530_v21  ;;  %v1570_v16 = vmax.f32 %v1526_v60, 0.0  ;;  %v1488_v38 = vadd.f32 %v7927_v4, %v1226_v10  ;;  %v1477_v15 = vadd.f32 %v1426_v52, %v961_v32  ;;  %v1831_v17 = vpop.permute.xlu0 %1830 }
 0x14f   :  { %1883 = vst [vmem:[#allocation2 + $0x8] sm:$0xff] %v8078_v5  ;;  %v8087_v19 = vmul.f32 %v1826_v36, %v1571_v6  ;;  %v1533_v48 = vmax.f32 %v1489_v40, 0.0  ;;  %v1529_v31 = vadd.f32 %v7927_v4, %v1478_v37  ;;  %v8874_v36 = vld [vmem:[#allocation3_spill] sm:$0xff]  ;;  %v8875_v40 = vld [vmem:[#allocation5_spill] sm:$0xff] }
 0x150   :  { %1882 = vst [vmem:[#allocation2] sm:$0xff] %v8083_v33  ;;  %v8091_v57 = vmul.f32 %v1821_v11, %v1570_v16  ;;  %v1532_v22 = vmax.f32 %v1488_v38, 0.0  ;;  %v1528_v26 = vadd.f32 %v7927_v4, %v1477_v15  ;;  %v5698_v41 = vpop.f32.mrb[4].mxu0  ;;  %v8876_v16 = vld [vmem:[#allocation4_spill] sm:$0xff] }
 0x151   :  { %1923 = vst [vmem:[#allocation2 + $0x148] sm:$0xff] %v8087_v19  ;;  %v8096_v43 = vmul.f32 %v7795_v50, %v1533_v48  ;;  %v1573_v32 = vmax.f32 %v1529_v31, 0.0  ;;  %v1491_v24 = vadd.f32 %v5698_v41, %v7927_v4  ;;  %v1236_v7 = vpop.f32.mrb[5].mxu0  ;;  %v1974_v31 = vld [vmem:[%s8850_s6 + $0x20] sm:$0xff] }
 0x152   :  { %1922 = vst [vmem:[#allocation2 + $0x140] sm:$0xff] %v8091_v57  ;;  %v8101_v35 = vmul.f32 %v7779_v42, %v1532_v22  ;;  %v1572_v20 = vmax.f32 %v1528_v26, 0.0  ;;  %v1490_v44 = vadd.f32 %v7927_v4, %v1236_v7 }
 0x153   :  { %1885 = vst [vmem:[#allocation2 + $0x18] sm:$0xff] %v8096_v43  ;;  %v8105_v0 = vmul.f32 %v1836_v12, %v1573_v32  ;;  %v1535_v50 = vmax.f32 %v1491_v24, 0.0  ;;  %v1975_v32 = vld [vmem:[%s8850_s6 + $0x28] sm:$0xff]  ;;  %v8877_v12 = vld [vmem:[#allocation10_spill] sm:$0xff] }
 0x154   :  { %1884 = vst [vmem:[#allocation2 + $0x10] sm:$0xff] %v8101_v35  ;;  %v8108_v13 = vmul.f32 %v1831_v17, %v1572_v20  ;;  %v1534_v8 = vmax.f32 %v1490_v44, 0.0  ;;  %v5701_v63 = vpop.f32.mrb[6].mxu0 }
 0x155   :  { %1925 = vst [vmem:[#allocation2 + $0x158] sm:$0xff] %v8105_v0  ;;  %v8112_v42 = vmul.f32 %v7805_v55, %v1535_v50  ;;  %v1493_v18 = vadd.f32 %v5701_v63, %v7927_v4  ;;  %v1246_v11 = vpop.f32.mrb[7].mxu0  ;;  %v1973_v55 = vld [vmem:[%s8850_s6 + $0x18] sm:$0xff]  ;;  %v8878_v50 = vld [vmem:[#allocation18_spill] sm:$0xff] }
 0x156   :  { %1924 = vst [vmem:[#allocation2 + $0x150] sm:$0xff] %v8108_v13  ;;  %v8117_v46 = vmul.f32 %v8874_v36, %v1534_v8  ;;  %v1492_v51 = vadd.f32 %v7927_v4, %v1246_v11  ;;  %v6407_v48 = vpack.c.bf16 %v1973_v55, %v1972_v49  ;;  %v8879_v8 = vld [vmem:[#allocation8_spill] sm:$0xff]  ;;  %v6411_v11 = vpack.c.bf16 %v1975_v32, %v1974_v31  ;;  %v1977_v49 = vld [vmem:[%s8850_s6 + $0x38] sm:$0xff]  ;;  %v1978_v32 = vld [vmem:[%s8850_s6 + $0x40] sm:$0xff] }
 0x157   :  { %1887 = vst [vmem:[#allocation2 + $0x28] sm:$0xff] %v8112_v42  ;;  %v1537_v21 = vmax.f32 %v1493_v18, 0.0  ;;  %v1986_v60 = vld [vmem:[#allocation2 + $0x1] sm:$0xff]  ;;  %v1976_v36 = vld [vmem:[%s8850_s6 + $0x30] sm:$0xff] }
 0x158   :  { %1886 = vst [vmem:[#allocation2 + $0x20] sm:$0xff] %v8117_v46  ;;  %v1536_v28 = vmax.f32 %v1492_v51, 0.0  ;;  %v5704_v6 = vpop.f32.mrb[8].mxu0  ;;  %5788 = vmatprep.mubr.f32.mxu1 %v1986_v60 }
 0x159   :  { %v8129_v37 = vmul.f32 %v8875_v40, %v1537_v21  ;;  %v1495_v10 = vadd.f32 %v5704_v6, %v7927_v4  ;;  %v1256_v52 = vpop.f32.mrb[9].mxu0  ;;  %v8880_v6 = vld [vmem:[#allocation13_spill] sm:$0xff] }
 0x15a   :  { %v8133_v38 = vmul.f32 %v8876_v16, %v1536_v28  ;;  %v1494_v15 = vadd.f32 %v7927_v4, %v1256_v52 }
 0x15b   :  { %1889 = vst [vmem:[#allocation2 + $0x38] sm:$0xff] %v8129_v37  ;;  %v1539_v22 = vmax.f32 %v1495_v10, 0.0  ;;  %v1987_v26 = vld [vmem:[#allocation2 + $0x9] sm:$0xff]  ;;  %v1988_v41 = vld [vmem:[#allocation2 + $0x11] sm:$0xff]  ;;  %v8881_v10 = vld [vmem:[#allocation6_spill] sm:$0xff] }
 0x15c   :  { %1888 = vst [vmem:[#allocation2 + $0x30] sm:$0xff] %v8133_v38  ;;  %v1538_v24 = vmax.f32 %v1494_v15, 0.0  ;;  %v5707_v7 = vpop.f32.mrb[10].mxu0  ;;  %5789 = vmatmul.mubr.f32.vlgmr.msra.gmra.mrb[60].mxu1 %v1987_v26  ;;  %v8882_v15 = vld [vmem:[#allocation12_spill] sm:$0xff] }
 0x15d   :  { %v8145_v20 = vmul.f32 %v8877_v12, %v1539_v22  ;;  %v1497_v44 = vadd.f32 %v5707_v7, %v7927_v4  ;;  %v1266_v17 = vpop.f32.mrb[11].mxu0  ;;  %5791 = vmatprep.mubr.f32.mxu1 %v1988_v41  ;;  %6406 = vmatpush3.bf16.msra.mxu1 %v8878_v50  ;;  %v8883_v22 = vld [vmem:[#allocation7_spill] sm:$0xff]  ;;  %v6415_v41 = vpack.c.bf16 %v1977_v49, %v1976_v36 }
 0x15e   :  { %v8150_v63 = vmul.f32 %v8879_v8, %v1538_v24  ;;  %v1496_v18 = vadd.f32 %v7927_v4, %v1266_v17  ;;  %6408 = vmatprep.subr.bf16.mxu1 %v6407_v48  ;;  %v8884_v8 = vld [vmem:[#allocation9_spill] sm:$0xff] }
 0x15f   :  { %1891 = vst [vmem:[#allocation2 + $0x48] sm:$0xff] %v8145_v20  ;;  %v1541_v51 = vmax.f32 %v1497_v44, 0.0  ;;  %v1989_v21 = vld [vmem:[#allocation2 + $0x19] sm:$0xff]  ;;  %v1990_v60 = vld [vmem:[#allocation2 + $0x21] sm:$0xff] }
 0x160   :  { %1890 = vst [vmem:[#allocation2 + $0x40] sm:$0xff] %v8150_v63  ;;  %v1540_v55 = vmax.f32 %v1496_v18, 0.0  ;;  %v5710_v28 = vpop.f32.mrb[12].mxu0  ;;  %5792 = vmatmul.mubr.f32.gmra.mrb[62].mxu1 %v1989_v21  ;;  %v8885_v21 = vld [vmem:[#allocation11_spill] sm:$0xff] }
 0x161   :  { %v8162_v40 = vmul.f32 %v8880_v6, %v1541_v51  ;;  %v6623_v52 = vadd.f32 %v5710_v28, %v8881_v10  ;;  %v1276_v16 = vpop.f32.mrb[13].mxu0  ;;  %5794 = vmatprep.mubr.f32.mxu1 %v1990_v60  ;;  %6410 = vmatpush3.bf16.msra.mxu1 %v6407_v48  ;;  %v1979_v48 = vld [vmem:[%s8850_s6 + $0x48] sm:$0xff] }
 0x162   :  { %v8166_v31 = vmul.f32 %v8882_v15, %v1540_v55  ;;  %v6624_v26 = vadd.f32 %v1276_v16, %v8883_v22  ;;  %6412 = vmatprep.subr.bf16.mxu1 %v6411_v11  ;;  %v6419_v49 = vpack.c.bf16 %v1979_v48, %v1978_v32  ;;  %v1980_v55 = vld [vmem:[%s8850_s6 + $0x50] sm:$0xff]  ;;  %v8886_v28 = vld [vmem:[#allocation15_spill] sm:$0xff]  ;;  %v8887_v15 = vld [vmem:[#allocation14_spill] sm:$0xff] }
 0x163   :  { %1893 = vst [vmem:[#allocation2 + $0x58] sm:$0xff] %v8162_v40  ;;  %v1499_v24 = vadd.f32 %v6623_v52, %v7927_v4  ;;  %v1991_v7 = vld [vmem:[#allocation2 + $0x29] sm:$0xff]  ;;  %v1992_v12 = vld [vmem:[#allocation2 + $0x31] sm:$0xff] }
 0x164   :  { %1892 = vst [vmem:[#allocation2 + $0x50] sm:$0xff] %v8166_v31  ;;  %v1498_v44 = vadd.f32 %v6624_v26, %v7927_v4  ;;  %v5713_v17 = vpop.f32.mrb[14].mxu0  ;;  %5795 = vmatmul.mubr.f32.gmra.mrb[64].mxu1 %v1991_v7  ;;  %v8888_v48 = vld [vmem:[#allocation17_spill] sm:$0xff] }
 0x165   :  { %v1543_v50 = vmax.f32 %v1499_v24, 0.0  ;;  %v6625_v18 = vadd.f32 %v5713_v17, %v8884_v8  ;;  %v1286_v36 = vpop.f32.mrb[15].mxu0  ;;  %5797 = vmatprep.mubr.f32.mxu1 %v1992_v12  ;;  %6414 = vmatpush3.bf16.msra.mxu1 %v6411_v11  ;;  %v1981_v11 = vld [vmem:[%s8850_s6 + $0x58] sm:$0xff]  ;;  %v1982_v12 = vld [vmem:[%s8850_s6 + $0x60] sm:$0xff]  ;;  %v8889_v8 = vld [vmem:[#allocation16_spill] sm:$0xff] }
 0x166   :  { %v1542_v51 = vmax.f32 %v1498_v44, 0.0  ;;  %v6626_v60 = vadd.f32 %v1286_v36, %v8885_v21  ;;  %6416 = vmatprep.subr.bf16.mxu1 %v6415_v41  ;;  %v6423_v7 = vpack.c.bf16 %v1981_v11, %v1980_v55  ;;  %v1984_v36 = vld [vmem:[%s8850_s6 + $0x70] sm:$0xff] }
 0x167   :  { %v8185_v6 = vmul.f32 %v8886_v28, %v1543_v50  ;;  %v1501_v10 = vadd.f32 %v6625_v18, %v7927_v4  ;;  %v1993_v52 = vld [vmem:[#allocation2 + $0x39] sm:$0xff]  ;;  %v1994_v16 = vld [vmem:[#allocation2 + $0x41] sm:$0xff] }
 0x168   :  { %v8192_v22 = vmul.f32 %v8887_v15, %v1542_v51  ;;  %v1500_v26 = vadd.f32 %v6626_v60, %v7927_v4  ;;  %5798 = vmatmul.mubr.f32.gmra.mrb[66].mxu1 %v1993_v52  ;;  %v1983_v50 = vld [vmem:[%s8850_s6 + $0x68] sm:$0xff]  ;;  %v1985_v51 = vld [vmem:[%s8850_s6 + $0x78] sm:$0xff] }
 0x169   :  { %1895 = vst [vmem:[#allocation2 + $0x68] sm:$0xff] %v8185_v6  ;;  %v1545_v32 = vmax.f32 %v1501_v10, 0.0  ;;  %5800 = vmatprep.mubr.f32.mxu1 %v1994_v16  ;;  %6418 = vmatpush3.bf16.msra.mxu1 %v6415_v41  ;;  %v6427_v18 = vpack.c.bf16 %v1983_v50, %v1982_v12  ;;  %v6431_v55 = vpack.c.bf16 %v1985_v51, %v1984_v36  ;;  %v4954_v28 = vld [vmem:[%s8850_s6 + $0x108] sm:$0xff] }
 0x16a   :  { %1894 = vst [vmem:[#allocation2 + $0x60] sm:$0xff] %v8192_v22  ;;  %v1544_v24 = vmax.f32 %v1500_v26, 0.0  ;;  %6420 = vmatprep.subr.bf16.mxu1 %v6419_v49  ;;  %v2002_v15 = vld [vmem:[#allocation2 + $0x81] sm:$0xff]  ;;  %v2003_v26 = vld [vmem:[#allocation2 + $0x89] sm:$0xff] }
 0x16b   :  { %v8201_v44 = vmul.f32 %v8888_v48, %v1545_v32  ;;  %v1995_v17 = vld [vmem:[#allocation2 + $0x49] sm:$0xff]  ;;  %v1996_v4 = vld [vmem:[#allocation2 + $0x51] sm:$0xff]  ;;  %v2014_v36 = vld [vmem:[#allocation2 + $0xe1] sm:$0xff] }
 0x16c   :  { %v8207_v41 = vmul.f32 %v8889_v8, %v1544_v24  ;;  %5801 = vmatmul.mubr.f32.gmra.mrb[68].mxu1 %v1995_v17  ;;  %v2004_v32 = vld [vmem:[#allocation2 + $0x91] sm:$0xff]  ;;  %v2005_v24 = vld [vmem:[#allocation2 + $0x99] sm:$0xff]  ;;  %v2007_v12 = vld [vmem:[#allocation2 + $0xa9] sm:$0xff] }
 0x16d   :  { %1897 = vst [vmem:[#allocation2 + $0x78] sm:$0xff] %v8201_v44  ;;  %5803 = vmatprep.mubr.f32.mxu1 %v1996_v4  ;;  %6422 = vmatpush3.bf16.msra.mxu1 %v6419_v49  ;;  %v4953_v49 = vld [vmem:[%s8850_s6 + $0x100] sm:$0xff]  ;;  %v2008_v48 = vld [vmem:[#allocation2 + $0xb1] sm:$0xff]  ;;  %v2011_v50 = vld [vmem:[#allocation2 + $0xc9] sm:$0xff] }
 0x16e   :  { %1896 = vst [vmem:[#allocation2 + $0x70] sm:$0xff] %v8207_v41  ;;  %6424 = vmatprep.subr.bf16.mxu1 %v6423_v7  ;;  %v8223_v16 = vpack.c.bf16 %v4954_v28, %v4953_v49  ;;  %v2009_v17 = vld [vmem:[#allocation2 + $0xb9] sm:$0xff]  ;;  %v2010_v4 = vld [vmem:[#allocation2 + $0xc1] sm:$0xff]  ;;  %v2012_v8 = vld [vmem:[#allocation2 + $0xd1] sm:$0xff] }
 0x16f   :  { %v2015_v51 = vld [vmem:[#allocation2 + $0xe9] sm:$0xff]  ;;  %v2020_v28 = vld [vmem:[#allocation2 + $0x111] sm:$0xff] }
 0x170   :  { %v2019_v49 = vld [vmem:[#allocation2 + $0x109] sm:$0xff] }
 0x171   :  { %v1997_v21 = vld [vmem:[#allocation2 + $0x59] sm:$0xff]  ;;  %v1998_v60 = vld [vmem:[#allocation2 + $0x61] sm:$0xff]  ;;  %6426 = vmatpush3.bf16.msra.mxu1 %v6423_v7 }
 0x172   :  { %5804 = vmatmul.mubr.f32.gmra.mrb[70].mxu1 %v1997_v21  ;;  %6428 = vmatprep.subr.bf16.mxu1 %v6427_v18  ;;  %v2006_v7 = vld [vmem:[#allocation2 + $0xa1] sm:$0xff]  ;;  %v2016_v21 = vld [vmem:[#allocation2 + $0xf1] sm:$0xff] }
 0x173   :  { %5806 = vmatprep.mubr.f32.mxu1 %v1998_v60  ;;  %v2017_v60 = vld [vmem:[#allocation2 + $0xf9] sm:$0xff] }
 0x174   :  { %v2001_v11 = vld [vmem:[#allocation2 + $0x79] sm:$0xff] }
 0x175   :  { %v1999_v10 = vld [vmem:[#allocation2 + $0x69] sm:$0xff]  ;;  %v2000_v52 = vld [vmem:[#allocation2 + $0x71] sm:$0xff]  ;;  %6430 = vmatpush3.bf16.msra.mxu1 %v6427_v18  ;;  %v2013_v18 = vld [vmem:[#allocation2 + $0xd9] sm:$0xff] }
 0x176   :  { %5807 = vmatmul.mubr.f32.gmra.mrb[72].mxu1 %v1999_v10  ;;  %6432 = vmatprep.subr.bf16.mxu1 %v6431_v55  ;;  %v2021_v10 = vld [vmem:[#allocation2 + $0x119] sm:$0xff] }
 0x177   :  { %5809 = vmatprep.mubr.f32.mxu1 %v2000_v52  ;;  %v2022_v52 = vld [vmem:[#allocation2 + $0x121] sm:$0xff] }
 0x179   :  { %6434 = vmatpush3.bf16.msra.mxu1 %v6431_v55  ;;  %v2018_v55 = vld [vmem:[#allocation2 + $0x101] sm:$0xff] }
 0x17a   :  { %5810 = vmatmul.mubr.f32.gmra.mrb[74].mxu1 %v2001_v11  ;;  %6436 = vmatprep.subr.bf16.mxu1 %v8223_v16  ;;  %v2023_v11 = vld [vmem:[#allocation2 + $0x129] sm:$0xff] }
 0x17b   :  { %5812 = vmatprep.mubr.f32.mxu1 %v2002_v15  ;;  %v2024_v15 = vld [vmem:[#allocation2 + $0x131] sm:$0xff] }
 0x17e   :  { %5813 = vmatmul.mubr.f32.gmra.mrb[76].mxu1 %v2003_v26  ;;  %v2025_v26 = vld [vmem:[#allocation2 + $0x139] sm:$0xff] }
 0x17f   :  { %5815 = vmatprep.mubr.f32.mxu1 %v2004_v32  ;;  %v2026_v32 = vld [vmem:[#allocation2 + $0x141] sm:$0xff] }
 0x182   :  { %5816 = vmatmul.mubr.f32.gmra.mrb[78].mxu1 %v2005_v24  ;;  %v2027_v24 = vld [vmem:[#allocation2 + $0x149] sm:$0xff] }
 0x183   :  { %5818 = vmatprep.mubr.f32.mxu1 %v2006_v7  ;;  %v2028_v7 = vld [vmem:[#allocation2 + $0x151] sm:$0xff] }
 0x186   :  { %5819 = vmatmul.mubr.f32.gmra.mrb[80].mxu1 %v2007_v12  ;;  %v2029_v12 = vld [vmem:[#allocation2 + $0x159] sm:$0xff] }
 0x187   :  { %5821 = vmatprep.mubr.f32.mxu1 %v2008_v48  ;;  %v4955_v48 = vld [vmem:[%s8850_s6 + $0x110] sm:$0xff] }
 0x18a   :  { %5822 = vmatmul.mubr.f32.gmra.mrb[82].mxu1 %v2009_v17  ;;  %v4956_v17 = vld [vmem:[%s8850_s6 + $0x118] sm:$0xff] }
 0x18b   :  { %5824 = vmatprep.mubr.f32.mxu1 %v2010_v4  ;;  %v6439_v4 = vpack.c.bf16 %v4956_v17, %v4955_v48  ;;  %v2648_v48 = vld [vmem:[#allocation2 + $0xfa] sm:$0xff]  ;;  %v2649_v17 = vld [vmem:[#allocation2 + $0x102] sm:$0xff] }
 0x18e   :  { %5825 = vmatmul.mubr.f32.gmra.mrb[84].mxu1 %v2011_v50  ;;  %v4957_v50 = vld [vmem:[%s8850_s6 + $0x120] sm:$0xff] }
 0x18f   :  { %5827 = vmatprep.mubr.f32.mxu1 %v2012_v8  ;;  %v4958_v8 = vld [vmem:[%s8850_s6 + $0x128] sm:$0xff] }
 0x192   :  { %5828 = vmatmul.mubr.f32.gmra.mrb[86].mxu1 %v2013_v18  ;;  %v6443_v18 = vpack.c.bf16 %v4958_v8, %v4957_v50  ;;  %v2651_v50 = vld [vmem:[#allocation2 + $0x112] sm:$0xff]  ;;  %v2652_v8 = vld [vmem:[#allocation2 + $0x11a] sm:$0xff] }
 0x193   :  { %5830 = vmatprep.mubr.f32.mxu1 %v2014_v36  ;;  %v4960_v36 = vld [vmem:[%s8850_s6 + $0x138] sm:$0xff] }
 0x196   :  { %5831 = vmatmul.mubr.f32.gmra.mrb[88].mxu1 %v2015_v51  ;;  %v4964_v51 = vld [vmem:[%s8850_s6 + $0x158] sm:$0xff] }
 0x197   :  { %5833 = vmatprep.mubr.f32.mxu1 %v2016_v21  ;;  %v4966_v21 = vld [vmem:[%s8850_s6 + $0x168] sm:$0xff] }
 0x19a   :  { %5834 = vmatmul.mubr.f32.gmra.mrb[90].mxu1 %v2017_v60  ;;  %v4968_v60 = vld [vmem:[%s8850_s6 + $0x178] sm:$0xff] }
 0x19b   :  { %5836 = vmatprep.mubr.f32.mxu1 %v2018_v55  ;;  %v1943_v55 = vld [vmem:[#allocation2 + $0x88] sm:$0xff] }
 0x19e   :  { %5837 = vmatmul.mubr.f32.gmra.mrb[92].mxu1 %v2019_v49  ;;  %v2637_v49 = vld [vmem:[#allocation2 + $0xa2] sm:$0xff] }
 0x19f   :  { %5839 = vmatprep.mubr.f32.mxu1 %v2020_v28  ;;  %v2638_v28 = vld [vmem:[#allocation2 + $0xaa] sm:$0xff] }
 0x1a2   :  { %5840 = vmatmul.mubr.f32.gmra.mrb[94].mxu1 %v2021_v10  ;;  %v2639_v10 = vld [vmem:[#allocation2 + $0xb2] sm:$0xff] }
 0x1a3   :  { %5842 = vmatprep.mubr.f32.mxu1 %v2022_v52  ;;  %v2640_v52 = vld [vmem:[#allocation2 + $0xba] sm:$0xff] }
 0x1a6   :  { %5843 = vmatmul.mubr.f32.gmra.mrb[96].mxu1 %v2023_v11  ;;  %v2641_v11 = vld [vmem:[#allocation2 + $0xc2] sm:$0xff] }
 0x1a7   :  { %5845 = vmatprep.mubr.f32.mxu1 %v2024_v15  ;;  %v2642_v15 = vld [vmem:[#allocation2 + $0xca] sm:$0xff] }
 0x1aa   :  { %5846 = vmatmul.mubr.f32.gmra.mrb[98].mxu1 %v2025_v26  ;;  %v2643_v26 = vld [vmem:[#allocation2 + $0xd2] sm:$0xff] }
 0x1ab   :  { %5848 = vmatprep.mubr.f32.mxu1 %v2026_v32  ;;  %v2644_v32 = vld [vmem:[#allocation2 + $0xda] sm:$0xff] }
 0x1ae   :  { %5849 = vmatmul.mubr.f32.gmra.mrb[100].mxu1 %v2027_v24  ;;  %v2645_v24 = vld [vmem:[#allocation2 + $0xe2] sm:$0xff] }
 0x1af   :  { %5851 = vmatprep.mubr.f32.mxu1 %v2028_v7  ;;  %v2646_v7 = vld [vmem:[#allocation2 + $0xea] sm:$0xff] }
 0x1b2   :  { %5852 = vmatmul.mubr.f32.gmra.mrb[102].mxu1 %v2029_v12  ;;  %v2647_v12 = vld [vmem:[#allocation2 + $0xf2] sm:$0xff] }
 0x1b3   :  { %5886 = vmatprep.mubr.f32.mxu1 %v8083_v33  ;;  %v4959_v33 = vld [vmem:[%s8850_s6 + $0x130] sm:$0xff] }
 0x1b6   :  { %5887 = vmatmul.mubr.f32.vlgmr.msra.gmra.mrb[60].mxu1 %v8078_v5  ;;  %v6447_v5 = vpack.c.bf16 %v4960_v36, %v4959_v33  ;;  %v2654_v33 = vld [vmem:[#allocation2 + $0x12a] sm:$0xff]  ;;  %v2655_v36 = vld [vmem:[#allocation2 + $0x132] sm:$0xff] }
 0x1b7   :  { %5889 = vmatprep.mubr.f32.mxu1 %v8101_v35  ;;  %6438 = vmatpush3.bf16.msra.mxu1 %v8223_v16  ;;  %v4961_v35 = vld [vmem:[%s8850_s6 + $0x140] sm:$0xff]  ;;  %v4962_v16 = vld [vmem:[%s8850_s6 + $0x148] sm:$0xff] }
 0x1b8   :  { %6440 = vmatprep.subr.bf16.mxu1 %v6439_v4 }
 0x1ba   :  { %5890 = vmatmul.mubr.f32.gmra.mrb[62].mxu1 %v8096_v43  ;;  %v6451_v43 = vpack.c.bf16 %v4962_v16, %v4961_v35  ;;  %v2657_v35 = vld [vmem:[#allocation2 + $0x142] sm:$0xff]  ;;  %v2658_v16 = vld [vmem:[#allocation2 + $0x14a] sm:$0xff] }
 0x1bb   :  { %5892 = vmatprep.mubr.f32.mxu1 %v8117_v46  ;;  %6442 = vmatpush3.bf16.msra.mxu1 %v6439_v4  ;;  %v4963_v46 = vld [vmem:[%s8850_s6 + $0x150] sm:$0xff] }
 0x1bc   :  { %6444 = vmatprep.subr.bf16.mxu1 %v6443_v18  ;;  %v2650_v4 = vld [vmem:[#allocation2 + $0x10a] sm:$0xff] }
 0x1be   :  { %5893 = vmatmul.mubr.f32.gmra.mrb[64].mxu1 %v8112_v42  ;;  %v6455_v42 = vpack.c.bf16 %v4964_v51, %v4963_v46  ;;  %v4976_v46 = vld [vmem:[%s8852_s8 + $0xb0] sm:$0xff]  ;;  %v4977_v51 = vld [vmem:[%s8852_s8 + $0xb8] sm:$0xff] }
 0x1bf   :  { %5895 = vmatprep.mubr.f32.mxu1 %v8133_v38  ;;  %6446 = vmatpush3.bf16.msra.mxu1 %v6443_v18  ;;  %v4965_v38 = vld [vmem:[%s8850_s6 + $0x160] sm:$0xff] }
 0x1c0   :  { %6448 = vmatprep.subr.bf16.mxu1 %v6447_v5  ;;  %v2653_v18 = vld [vmem:[#allocation2 + $0x122] sm:$0xff] }
 0x1c2   :  { %5896 = vmatmul.mubr.f32.gmra.mrb[66].mxu1 %v8129_v37  ;;  %v6459_v37 = vpack.c.bf16 %v4966_v21, %v4965_v38  ;;  %v2660_v38 = vld [vmem:[#allocation2 + $0x15a] sm:$0xff] }
 0x1c3   :  { %5898 = vmatprep.mubr.f32.mxu1 %v8150_v63  ;;  %6450 = vmatpush3.bf16.msra.mxu1 %v6447_v5  ;;  %v4967_v63 = vld [vmem:[%s8850_s6 + $0x170] sm:$0xff]  ;;  %v2656_v5 = vld [vmem:[#allocation2 + $0x13a] sm:$0xff] }
 0x1c4   :  { %6452 = vmatprep.subr.bf16.mxu1 %v6451_v43  ;;  %v4978_v21 = vld [vmem:[%s8852_s8 + $0xc0] sm:$0xff] }
 0x1c6   :  { %5899 = vmatmul.mubr.f32.gmra.mrb[68].mxu1 %v8145_v20  ;;  %v6463_v20 = vpack.c.bf16 %v4968_v60, %v4967_v63  ;;  %v4980_v60 = vld [vmem:[%s8852_s8 + $0xd0] sm:$0xff] }
 0x1c7   :  { %5901 = vmatprep.mubr.f32.mxu1 %v8166_v31  ;;  %6454 = vmatpush3.bf16.msra.mxu1 %v6451_v43  ;;  %v1942_v31 = vld [vmem:[#allocation2 + $0x80] sm:$0xff]  ;;  %v2659_v43 = vld [vmem:[#allocation2 + $0x152] sm:$0xff] }
 0x1c8   :  { %6456 = vmatprep.subr.bf16.mxu1 %v6455_v42 }
 0x1ca   :  { %5902 = vmatmul.mubr.f32.gmra.mrb[70].mxu1 %v8162_v40  ;;  %v1945_v40 = vld [vmem:[#allocation2 + $0x98] sm:$0xff] }
 0x1cb   :  { %5904 = vmatprep.mubr.f32.mxu1 %v8192_v22  ;;  %6458 = vmatpush3.bf16.msra.mxu1 %v6455_v42  ;;  %v6479_v42 = vpack.c.bf16 %v4977_v51, %v4976_v46 }
 0x1cc   :  { %6460 = vmatprep.subr.bf16.mxu1 %v6459_v37 }
 0x1ce   :  { %5905 = vmatmul.mubr.f32.gmra.mrb[72].mxu1 %v8185_v6  ;;  %v4970_v6 = vld [vmem:[%s8852_s8 + $0x80] sm:$0xff] }
 0x1cf   :  { %5907 = vmatprep.mubr.f32.mxu1 %v8207_v41  ;;  %6462 = vmatpush3.bf16.msra.mxu1 %v6459_v37  ;;  %v2636_v41 = vld [vmem:[#allocation2 + $0x9a] sm:$0xff]  ;;  %v4979_v37 = vld [vmem:[%s8852_s8 + $0xc8] sm:$0xff] }
 0x1d0   :  { %6464 = vmatprep.subr.bf16.mxu1 %v6463_v20  ;;  %v6483_v63 = vpack.c.bf16 %v4979_v37, %v4978_v21  ;;  %v3500_v21 = vld [vmem:[%s8852_s8 + $0x10] sm:$0xff]  ;;  %v3501_v37 = vld [vmem:[%s8852_s8 + $0x18] sm:$0xff] }
 0x1d2   :  { %5908 = vmatmul.mubr.f32.gmra.mrb[74].mxu1 %v8201_v44 }
 0x1d3   :  { %5910 = vmatprep.mubr.f32.mxu1 %v1942_v31  ;;  %6466 = vmatpush3.bf16.msra.mxu1 %v6463_v20  ;;  %v4981_v20 = vld [vmem:[%s8852_s8 + $0xd8] sm:$0xff] }
 0x1d4   :  { %v6487_v31 = vpack.c.bf16 %v4981_v20, %v4980_v60 }
 0x1d6   :  { %5911 = vmatmul.mubr.f32.gmra.mrb[76].mxu1 %v1943_v55  ;;  %v4982_v55 = vld [vmem:[%s8852_s8 + $0xe0] sm:$0xff] }
 0x1d7   :  { %5913 = vmatprep.mubr.f32.mxu1 %v7950_v14  ;;  %v4971_v14 = vld [vmem:[%s8852_s8 + $0x88] sm:$0xff] }
 0x1d8   :  { %v6467_v22 = vpack.c.bf16 %v4971_v14, %v4970_v6  ;;  %v4984_v14 = vld [vmem:[%s8852_s8 + $0xf0] sm:$0xff] }
 0x1da   :  { %5914 = vmatmul.mubr.f32.gmra.mrb[78].mxu1 %v1945_v40  ;;  %6468 = vmatprep.subr.bf16.mxu0 %v6467_v22  ;;  %v4983_v40 = vld [vmem:[%s8852_s8 + $0xe8] sm:$0xff] }
 0x1db   :  { %5916 = vmatprep.mubr.f32.mxu1 %v7961_v58  ;;  %v4972_v58 = vld [vmem:[%s8852_s8 + $0x90] sm:$0xff]  ;;  %6470 = vmatpush3.bf16.msra.mxu0 %v6467_v22  ;;  %v6491_v6 = vpack.c.bf16 %v4983_v40, %v4982_v55 }
 0x1de   :  { %5917 = vmatmul.mubr.f32.gmra.mrb[80].mxu1 %v7957_v29  ;;  %v4973_v29 = vld [vmem:[%s8852_s8 + $0x98] sm:$0xff] }
 0x1df   :  { %5919 = vmatprep.mubr.f32.mxu1 %v7977_v27  ;;  %v4974_v27 = vld [vmem:[%s8852_s8 + $0xa0] sm:$0xff] }
 0x1e2   :  { %5920 = vmatmul.mubr.f32.gmra.mrb[82].mxu1 %v7973_v23  ;;  %v6471_v23 = vpack.c.bf16 %v4973_v29, %v4972_v58  ;;  %v4985_v58 = vld [vmem:[%s8852_s8 + $0xf8] sm:$0xff]  ;;  %v3498_v29 = vld [vmem:[%s8852_s8] sm:$0xff] }
 0x1e3   :  { %5922 = vmatprep.mubr.f32.mxu1 %v7989_v53  ;;  %v4975_v53 = vld [vmem:[%s8852_s8 + $0xa8] sm:$0xff]  ;;  %v6495_v22 = vpack.c.bf16 %v4985_v58, %v4984_v14 }
 0x1e4   :  { %6472 = vmatprep.subr.bf16.mxu0 %v6471_v23  ;;  %v6475_v44 = vpack.c.bf16 %v4975_v53, %v4974_v27  ;;  %v3154_v53 = vpop.permute.xlu1 %3153 }
 0x1e5   :  { %6474 = vmatpush3.bf16.msra.mxu0 %v6471_v23  ;;  %v3499_v23 = vld [vmem:[%s8852_s8 + $0x8] sm:$0xff] }
 0x1e6   :  { %5923 = vmatmul.mubr.f32.gmra.mrb[84].mxu1 %v7985_v39  ;;  %6476 = vmatprep.subr.bf16.mxu0 %v6475_v44  ;;  %v2617_v39 = vld [vmem:[#allocation2 + $0x2] sm:$0xff]  ;;  %v8364_v27 = vpack.c.bf16 %v3499_v23, %v3498_v29 }
 0x1e7   :  { %5925 = vmatprep.mubr.f32.mxu1 %v8005_v34  ;;  %v2619_v34 = vld [vmem:[#allocation2 + $0x12] sm:$0xff]  ;;  %v3502_v29 = vld [vmem:[%s8852_s8 + $0x20] sm:$0xff] }
 0x1e9   :  { %6478 = vmatpush3.bf16.msra.mxu0 %v6475_v44  ;;  %v3149_v44 = vpop.permute.xlu0 %3148 }
 0x1ea   :  { %5926 = vmatmul.mubr.f32.gmra.mrb[86].mxu1 %v8001_v1  ;;  %v2618_v1 = vld [vmem:[#allocation2 + $0xa] sm:$0xff]  ;;  %6480 = vmatprep.subr.bf16.mxu0 %v6479_v42 }
 0x1eb   :  { %5928 = vmatprep.mubr.f32.mxu1 %v8017_v61  ;;  %v2621_v61 = vld [vmem:[#allocation2 + $0x22] sm:$0xff] }
 0x1ed   :  { %6482 = vmatpush3.bf16.msra.mxu0 %v6479_v42 }
 0x1ee   :  { %5929 = vmatmul.mubr.f32.gmra.mrb[88].mxu1 %v8013_v59  ;;  %v2620_v59 = vld [vmem:[#allocation2 + $0x1a] sm:$0xff]  ;;  %6484 = vmatprep.subr.bf16.mxu0 %v6483_v63 }
 0x1ef   :  { %5931 = vmatprep.mubr.f32.mxu1 %v8029_v30  ;;  %v2623_v30 = vld [vmem:[#allocation2 + $0x32] sm:$0xff] }
 0x1f1   :  { %6486 = vmatpush3.bf16.msra.mxu0 %v6483_v63 }
 0x1f2   :  { %5932 = vmatmul.mubr.f32.gmra.mrb[90].mxu1 %v8025_v62  ;;  %v2622_v62 = vld [vmem:[#allocation2 + $0x2a] sm:$0xff]  ;;  %6488 = vmatprep.subr.bf16.mxu0 %v6487_v31 }
 0x1f3   :  { %5934 = vmatprep.mubr.f32.mxu1 %v8041_v3  ;;  %v2625_v3 = vld [vmem:[#allocation2 + $0x42] sm:$0xff] }
 0x1f5   :  { %6490 = vmatpush3.bf16.msra.mxu0 %v6487_v31 }
 0x1f6   :  { %5935 = vmatmul.mubr.f32.gmra.mrb[92].mxu1 %v8037_v25  ;;  %v2624_v25 = vld [vmem:[#allocation2 + $0x3a] sm:$0xff]  ;;  %6492 = vmatprep.subr.bf16.mxu0 %v6491_v6 }
 0x1f7   :  { %5937 = vmatprep.mubr.f32.mxu1 %v8053_v9  ;;  %v2627_v9 = vld [vmem:[#allocation2 + $0x52] sm:$0xff] }
 0x1f9   :  { %6494 = vmatpush3.bf16.msra.mxu0 %v6491_v6 }
 0x1fa   :  { %5938 = vmatmul.mubr.f32.gmra.mrb[94].mxu1 %v8049_v56  ;;  %v2626_v56 = vld [vmem:[#allocation2 + $0x4a] sm:$0xff]  ;;  %6496 = vmatprep.subr.bf16.mxu0 %v6495_v22 }
 0x1fb   :  { %5940 = vmatprep.mubr.f32.mxu1 %v8063_v47  ;;  %v2629_v47 = vld [vmem:[#allocation2 + $0x62] sm:$0xff] }
 0x1fd   :  { %6498 = vmatpush3.bf16.msra.mxu0 %v6495_v22  ;;  %v6503_v22 = vpack.c.bf16 %v3501_v37, %v3500_v21 }
 0x1fe   :  { %5941 = vmatmul.mubr.f32.gmra.mrb[96].mxu1 %v8060_v45  ;;  %v2628_v45 = vld [vmem:[#allocation2 + $0x5a] sm:$0xff]  ;;  %6500 = vmatprep.subr.bf16.mxu0 %v8364_v27 }
 0x1ff   :  { %5943 = vmatprep.mubr.f32.mxu1 %v8073_v2  ;;  %v2631_v2 = vld [vmem:[#allocation2 + $0x72] sm:$0xff] }
 0x202   :  { %5944 = vmatmul.mubr.f32.gmra.mrb[98].mxu1 %v8070_v54  ;;  %v2630_v54 = vld [vmem:[#allocation2 + $0x6a] sm:$0xff] }
 0x203   :  { %5946 = vmatprep.mubr.f32.mxu1 %v8091_v57  ;;  %v2633_v57 = vld [vmem:[#allocation2 + $0x82] sm:$0xff] }
 0x206   :  { %5947 = vmatmul.mubr.f32.gmra.mrb[100].mxu1 %v8087_v19  ;;  %v2632_v19 = vld [vmem:[#allocation2 + $0x7a] sm:$0xff] }
 0x207   :  { %5949 = vmatprep.mubr.f32.mxu1 %v8108_v13  ;;  %v2635_v13 = vld [vmem:[#allocation2 + $0x92] sm:$0xff] }
 0x20a   :  { %5950 = vmatmul.mubr.f32.gmra.mrb[102].mxu1 %v8105_v0  ;;  %v2634_v0 = vld [vmem:[#allocation2 + $0x8a] sm:$0xff] }
 0x20b   :  { %5984 = vmatprep.mubr.f32.mxu1 %v2617_v39  ;;  %v3164_v39 = vpop.permute.xlu1 %3163 }
 0x20e   :  { %5985 = vmatmul.mubr.f32.vlgmr.msra.gmra.mrb[60].mxu1 %v2618_v1  ;;  %v3159_v1 = vpop.permute.xlu0 %3158 }
 0x20f   :  { %5987 = vmatprep.mubr.f32.mxu1 %v2619_v34  ;;  %v3174_v34 = vpop.permute.xlu1 %3173 }
 0x212   :  { %5988 = vmatmul.mubr.f32.gmra.mrb[62].mxu1 %v2620_v59  ;;  %v3169_v59 = vpop.permute.xlu0 %3168 }
 0x213   :  { %5990 = vmatprep.mubr.f32.mxu1 %v2621_v61  ;;  %v3184_v61 = vpop.permute.xlu1 %3183 }
 0x216   :  { %5991 = vmatmul.mubr.f32.gmra.mrb[64].mxu1 %v2622_v62  ;;  %v3179_v62 = vpop.permute.xlu0 %3178 }
 0x217   :  { %5993 = vmatprep.mubr.f32.mxu1 %v2623_v30  ;;  %v8367_v30 = vpop.permute.xlu1 %3193 }
 0x21a   :  { %5994 = vmatmul.mubr.f32.gmra.mrb[66].mxu1 %v2624_v25  ;;  %v8369_v25 = vpop.permute.xlu0 %3188 }
 0x21b   :  { %5996 = vmatprep.mubr.f32.mxu1 %v2625_v3  ;;  %v8371_v3 = vpop.permute.xlu1 %3203 }
 0x21e   :  { %5997 = vmatmul.mubr.f32.gmra.mrb[68].mxu1 %v2626_v56  ;;  %v8373_v56 = vpop.permute.xlu0 %3198 }
 0x21f   :  { %5999 = vmatprep.mubr.f32.mxu1 %v2627_v9  ;;  %v8375_v9 = vpop.permute.xlu1 %3213 }
 0x222   :  { %6000 = vmatmul.mubr.f32.gmra.mrb[70].mxu1 %v2628_v45  ;;  %v8380_v45 = vld [vmem:[%s8853_s7] ss:$0 sm:$0xff] }
 0x223   :  { %6002 = vmatprep.mubr.f32.mxu1 %v2629_v47  ;;  %v8382_v47 = vpop.permute.xlu0 %3208 }
 0x226   :  { %6003 = vmatmul.mubr.f32.gmra.mrb[72].mxu1 %v2630_v54 }
 0x227   :  { %6005 = vmatprep.mubr.f32.mxu1 %v2631_v2 }
 0x22a   :  { %6006 = vmatmul.mubr.f32.gmra.mrb[74].mxu1 %v2632_v19 }
 0x22b   :  { %6008 = vmatprep.mubr.f32.mxu1 %v2633_v57 }
 0x22e   :  { %6009 = vmatmul.mubr.f32.gmra.mrb[76].mxu1 %v2634_v0 }
 0x22f   :  { %6011 = vmatprep.mubr.f32.mxu1 %v2635_v13  ;;  %v8386_v13 = vpop.permute.xlu1 %3223 }
 0x232   :  { %6012 = vmatmul.mubr.f32.gmra.mrb[78].mxu1 %v2636_v41 }
 0x233   :  { %6014 = vmatprep.mubr.f32.mxu1 %v2637_v49 }
 0x236   :  { %6015 = vmatmul.mubr.f32.gmra.mrb[80].mxu1 %v2638_v28  ;;  %v8388_v28 = vpop.permute.xlu0 %3218 }
 0x237   :  { %6017 = vmatprep.mubr.f32.mxu1 %v2639_v10 }
 0x23a   :  { %6018 = vmatmul.mubr.f32.gmra.mrb[82].mxu1 %v2640_v52 }
 0x23b   :  { %6020 = vmatprep.mubr.f32.mxu1 %v2641_v11 }
 0x23e   :  { %6021 = vmatmul.mubr.f32.gmra.mrb[84].mxu1 %v2642_v15 }
 0x23f   :  { %6023 = vmatprep.mubr.f32.mxu1 %v2643_v26 }
 0x242   :  { %6024 = vmatmul.mubr.f32.gmra.mrb[86].mxu1 %v2644_v32 }
 0x243   :  { %6026 = vmatprep.mubr.f32.mxu1 %v2645_v24 }
 0x246   :  { %6027 = vmatmul.mubr.f32.gmra.mrb[88].mxu1 %v2646_v7 }
 0x247   :  { %6029 = vmatprep.mubr.f32.mxu1 %v2647_v12 }
 0x24a   :  { %6030 = vmatmul.mubr.f32.gmra.mrb[90].mxu1 %v2648_v48 }
 0x24b   :  { %6032 = vmatprep.mubr.f32.mxu1 %v2649_v17 }
 0x24e   :  { %6033 = vmatmul.mubr.f32.gmra.mrb[92].mxu1 %v2650_v4  ;;  %v8401_v4 = vpop.permute.xlu1 %3233 }
 0x24f   :  { %6035 = vmatprep.mubr.f32.mxu1 %v2651_v50 }
 0x252   :  { %6036 = vmatmul.mubr.f32.gmra.mrb[94].mxu1 %v2652_v8  ;;  %v8423_v63 = vpop.permute.xlu1 %3243 }
 0x253   :  { %6038 = vmatprep.mubr.f32.mxu1 %v2653_v18  ;;  %v8406_v18 = vpop.permute.xlu0 %3228 }
 0x256   :  { %6039 = vmatmul.mubr.f32.gmra.mrb[96].mxu1 %v2654_v33 }
 0x257   :  { %6041 = vmatprep.mubr.f32.mxu1 %v2655_v36  ;;  %v8426_v31 = vpop.permute.xlu0 %3238 }
 0x25a   :  { %6042 = vmatmul.mubr.f32.gmra.mrb[98].mxu1 %v2656_v5 }
 0x25b   :  { %6044 = vmatprep.mubr.f32.mxu1 %v2657_v35 }
 0x25e   :  { %6045 = vmatmul.mubr.f32.gmra.mrb[100].mxu1 %v2658_v16 }
 0x25f   :  { %6047 = vmatprep.mubr.f32.mxu1 %v2659_v43 }
 0x262   :  { %6048 = vmatmul.mubr.f32.gmra.mrb[102].mxu1 %v2660_v38 }
 0x2e1   :  { %v5986_v54 = vpop.f32.mrb[60].mxu1 }
 0x2e2   :  { %v3015_v2 = vadd.f32 %v5986_v54, %v8380_v45  ;;  %v2744_v19 = vpop.f32.mrb[61].mxu1  ;;  %v8447_v54 = vpop.permute.xlu1 %3253 }
 0x2e3   :  { %v3014_v57 = vadd.f32 %v8380_v45, %v2744_v19 }
 0x2e4   :  { %v3059_v0 = vmax.f32 %v3015_v2, 0.0 }
 0x2e5   :  { %v3058_v41 = vmax.f32 %v3014_v57, 0.0  ;;  %v5989_v49 = vpop.f32.mrb[62].mxu1 }
 0x2e6   :  { %v8390_v10 = vmul.f32 %v3154_v53, %v3059_v0  ;;  %v3017_v52 = vadd.f32 %v5989_v49, %v8380_v45  ;;  %v2754_v11 = vpop.f32.mrb[63].mxu1  ;;  %v8456_v0 = vpop.permute.xlu0 %3248 }
 0x2e7   :  { %v8393_v15 = vmul.f32 %v3149_v44, %v3058_v41  ;;  %v3016_v26 = vadd.f32 %v8380_v45, %v2754_v11 }
 0x2e8   :  { %3411 = vst [vmem:[#allocation2 + $0x8] sm:$0xff] %v8390_v10  ;;  %v3061_v32 = vmax.f32 %v3017_v52, 0.0 }
 0x2e9   :  { %3410 = vst [vmem:[#allocation2] sm:$0xff] %v8393_v15  ;;  %v3060_v24 = vmax.f32 %v3016_v26, 0.0  ;;  %v5992_v7 = vpop.f32.mrb[64].mxu1 }
 0x2ea   :  { %v8398_v12 = vmul.f32 %v3164_v39, %v3061_v32  ;;  %v3019_v48 = vadd.f32 %v5992_v7, %v8380_v45  ;;  %v2764_v17 = vpop.f32.mrb[65].mxu1  ;;  %v3503_v39 = vld [vmem:[%s8852_s8 + $0x28] sm:$0xff] }
 0x2eb   :  { %v8403_v50 = vmul.f32 %v3159_v1, %v3060_v24  ;;  %v3018_v8 = vadd.f32 %v8380_v45, %v2764_v17  ;;  %v6507_v57 = vpack.c.bf16 %v3503_v39, %v3502_v29 }
 0x2ec   :  { %3413 = vst [vmem:[#allocation2 + $0x18] sm:$0xff] %v8398_v12  ;;  %v3063_v33 = vmax.f32 %v3019_v48, 0.0 }
 0x2ed   :  { %3412 = vst [vmem:[#allocation2 + $0x10] sm:$0xff] %v8403_v50  ;;  %v3062_v36 = vmax.f32 %v3018_v8, 0.0  ;;  %v5995_v5 = vpop.f32.mrb[66].mxu1  ;;  %v3506_v8 = vld [vmem:[%s8852_s8 + $0x40] sm:$0xff] }
 0x2ee   :  { %v8410_v35 = vmul.f32 %v3174_v34, %v3063_v33  ;;  %v3021_v16 = vadd.f32 %v5995_v5, %v8380_v45  ;;  %v2774_v43 = vpop.f32.mrb[67].mxu1  ;;  %v3507_v5 = vld [vmem:[%s8852_s8 + $0x48] sm:$0xff] }
 0x2ef   :  { %v8413_v46 = vmul.f32 %v3169_v59, %v3062_v36  ;;  %v3020_v51 = vadd.f32 %v8380_v45, %v2774_v43 }
 0x2f0   :  { %3415 = vst [vmem:[#allocation2 + $0x28] sm:$0xff] %v8410_v35  ;;  %v3065_v42 = vmax.f32 %v3021_v16, 0.0  ;;  %v3514_v38 = vld [vmem:[#allocation2 + $0x1] sm:$0xff]  ;;  %v8478_v16 = vpop.permute.xlu1 %3263 }
 0x2f1   :  { %3414 = vst [vmem:[#allocation2 + $0x20] sm:$0xff] %v8413_v46  ;;  %v3064_v60 = vmax.f32 %v3020_v51, 0.0  ;;  %v5998_v20 = vpop.f32.mrb[68].mxu1  ;;  %6082 = vmatprep.mubr.f32.mxu0 %v3514_v38  ;;  %v8481_v51 = vpop.permute.xlu0 %3258 }
 0x2f2   :  { %v8428_v55 = vmul.f32 %v3184_v61, %v3065_v42  ;;  %v3023_v40 = vadd.f32 %v5998_v20, %v8380_v45  ;;  %v2784_v6 = vpop.f32.mrb[69].mxu1  ;;  %v6515_v20 = vpack.c.bf16 %v3507_v5, %v3506_v8 }
 0x2f3   :  { %v8431_v14 = vmul.f32 %v3179_v62, %v3064_v60  ;;  %v3022_v58 = vadd.f32 %v8380_v45, %v2784_v6 }
 0x2f4   :  { %3417 = vst [vmem:[#allocation2 + $0x38] sm:$0xff] %v8428_v55  ;;  %v3067_v23 = vmax.f32 %v3023_v40, 0.0  ;;  %v3515_v53 = vld [vmem:[#allocation2 + $0x9] sm:$0xff]  ;;  %v3516_v44 = vld [vmem:[#allocation2 + $0x11] sm:$0xff]  ;;  %v8503_v39 = vpop.permute.xlu1 %3273 }
 0x2f5   :  { %3416 = vst [vmem:[#allocation2 + $0x30] sm:$0xff] %v8431_v14  ;;  %v3066_v1 = vmax.f32 %v3022_v58, 0.0  ;;  %v6001_v34 = vpop.f32.mrb[70].mxu1  ;;  %6083 = vmatmul.mubr.f32.vlgmr.msra.gmra.mrb[44].mxu0 %v3515_v53  ;;  %v3508_v40 = vld [vmem:[%s8852_s8 + $0x50] sm:$0xff] }
 0x2f6   :  { %v8443_v59 = vmul.f32 %v8367_v30, %v3067_v23  ;;  %v3025_v61 = vadd.f32 %v6001_v34, %v8380_v45  ;;  %v2794_v62 = vpop.f32.mrb[71].mxu1  ;;  %6085 = vmatprep.mubr.f32.mxu0 %v3516_v44  ;;  %6502 = vmatpush3.bf16.msra.mxu0 %v8364_v27  ;;  %v3504_v30 = vld [vmem:[%s8852_s8 + $0x30] sm:$0xff] }
 0x2f7   :  { %v8450_v2 = vmul.f32 %v8369_v25, %v3066_v1  ;;  %v3024_v19 = vadd.f32 %v8380_v45, %v2794_v62  ;;  %6504 = vmatprep.subr.bf16.mxu0 %v6503_v22  ;;  %v3505_v25 = vld [vmem:[%s8852_s8 + $0x38] sm:$0xff]  ;;  %v3510_v62 = vld [vmem:[%s8852_s8 + $0x60] sm:$0xff] }
 0x2f8   :  { %3419 = vst [vmem:[#allocation2 + $0x48] sm:$0xff] %v8443_v59  ;;  %v3069_v41 = vmax.f32 %v3025_v61, 0.0  ;;  %v3517_v49 = vld [vmem:[#allocation2 + $0x19] sm:$0xff]  ;;  %v3518_v27 = vld [vmem:[#allocation2 + $0x21] sm:$0xff]  ;;  %v6511_v17 = vpack.c.bf16 %v3505_v25, %v3504_v30 }
 0x2f9   :  { %3418 = vst [vmem:[#allocation2 + $0x40] sm:$0xff] %v8450_v2  ;;  %v3068_v52 = vmax.f32 %v3024_v19, 0.0  ;;  %v6004_v11 = vpop.f32.mrb[72].mxu1  ;;  %6086 = vmatmul.mubr.f32.gmra.mrb[46].mxu0 %v3517_v49 }
 0x2fa   :  { %v8464_v26 = vmul.f32 %v8371_v3, %v3069_v41  ;;  %v3027_v32 = vadd.f32 %v6004_v11, %v8380_v45  ;;  %v2804_v24 = vpop.f32.mrb[73].mxu1  ;;  %6088 = vmatprep.mubr.f32.mxu0 %v3518_v27  ;;  %6506 = vmatpush3.bf16.msra.mxu0 %v6503_v22  ;;  %v3509_v22 = vld [vmem:[%s8852_s8 + $0x58] sm:$0xff] }
 0x2fb   :  { %v8468_v7 = vmul.f32 %v8373_v56, %v3068_v52  ;;  %v3026_v48 = vadd.f32 %v8380_v45, %v2804_v24  ;;  %6508 = vmatprep.subr.bf16.mxu0 %v6507_v57  ;;  %v6519_v61 = vpack.c.bf16 %v3509_v22, %v3508_v40  ;;  %v4986_v40 = vld [vmem:[%s8852_s8 + $0x100] sm:$0xff] }
 0x2fc   :  { %3421 = vst [vmem:[#allocation2 + $0x58] sm:$0xff] %v8464_v26  ;;  %v3071_v3 = vmax.f32 %v3027_v32, 0.0  ;;  %v3519_v33 = vld [vmem:[#allocation2 + $0x29] sm:$0xff]  ;;  %v3520_v36 = vld [vmem:[#allocation2 + $0x31] sm:$0xff] }
 0x2fd   :  { %3420 = vst [vmem:[#allocation2 + $0x50] sm:$0xff] %v8468_v7  ;;  %v3070_v56 = vmax.f32 %v3026_v48, 0.0  ;;  %v6007_v43 = vpop.f32.mrb[74].mxu1  ;;  %6089 = vmatmul.mubr.f32.gmra.mrb[48].mxu0 %v3519_v33  ;;  %v3512_v48 = vld [vmem:[%s8852_s8 + $0x70] sm:$0xff]  ;;  %v8534_v33 = vpop.permute.xlu1 %3283 }
 0x2fe   :  { %v8484_v42 = vmul.f32 %v8375_v9, %v3071_v3  ;;  %v3029_v38 = vadd.f32 %v6007_v43, %v8380_v45  ;;  %v2814_v21 = vpop.f32.mrb[75].mxu1  ;;  %6091 = vmatprep.mubr.f32.mxu0 %v3520_v36  ;;  %6510 = vmatpush3.bf16.msra.mxu0 %v6507_v57  ;;  %v3513_v3 = vld [vmem:[%s8852_s8 + $0x78] sm:$0xff] }
 0x2ff   :  { %v8488_v37 = vmul.f32 %v8382_v47, %v3070_v56  ;;  %v3028_v60 = vadd.f32 %v8380_v45, %v2814_v21  ;;  %6512 = vmatprep.subr.bf16.mxu0 %v6511_v17 }
 0x300   :  { %3423 = vst [vmem:[#allocation2 + $0x68] sm:$0xff] %v8484_v42  ;;  %v3073_v9 = vmax.f32 %v3029_v38, 0.0  ;;  %v3521_v6 = vld [vmem:[#allocation2 + $0x39] sm:$0xff]  ;;  %v3522_v58 = vld [vmem:[#allocation2 + $0x41] sm:$0xff] }
 0x301   :  { %3422 = vst [vmem:[#allocation2 + $0x60] sm:$0xff] %v8488_v37  ;;  %v3072_v47 = vmax.f32 %v3028_v60, 0.0  ;;  %v6010_v29 = vpop.f32.mrb[76].mxu1  ;;  %6092 = vmatmul.mubr.f32.gmra.mrb[50].mxu0 %v3521_v6 }
 0x302   :  { %v8500_v23 = vmul.f32 %v8386_v13, %v3073_v9  ;;  %v3031_v53 = vadd.f32 %v6010_v29, %v8380_v45  ;;  %v2824_v44 = vpop.f32.mrb[77].mxu1  ;;  %6094 = vmatprep.mubr.f32.mxu0 %v3522_v58  ;;  %6514 = vmatpush3.bf16.msra.mxu0 %v6511_v17  ;;  %v8512_v13 = vpop.permute.xlu0 %3268  ;;  %v4987_v58 = vld [vmem:[%s8852_s8 + $0x108] sm:$0xff] }
 0x303   :  { %v8506_v1 = vmul.f32 %v8388_v28, %v3072_v47  ;;  %v3030_v34 = vadd.f32 %v8380_v45, %v2824_v44  ;;  %6516 = vmatprep.subr.bf16.mxu0 %v6515_v20  ;;  %v3511_v28 = vld [vmem:[%s8852_s8 + $0x68] sm:$0xff]  ;;  %v3294_v44 = vpop.permute.xlu1 %3293 }
 0x304   :  { %3425 = vst [vmem:[#allocation2 + $0x78] sm:$0xff] %v8500_v23  ;;  %v3075_v19 = vmax.f32 %v3031_v53, 0.0  ;;  %v3523_v57 = vld [vmem:[#allocation2 + $0x49] sm:$0xff]  ;;  %v3524_v30 = vld [vmem:[#allocation2 + $0x51] sm:$0xff]  ;;  %v6523_v24 = vpack.c.bf16 %v3511_v28, %v3510_v62  ;;  %v8563_v62 = vpack.c.bf16 %v4987_v58, %v4986_v40 }
 0x305   :  { %3424 = vst [vmem:[#allocation2 + $0x70] sm:$0xff] %v8506_v1  ;;  %v3074_v41 = vmax.f32 %v3030_v34, 0.0  ;;  %v6013_v49 = vpop.f32.mrb[78].mxu1  ;;  %6095 = vmatmul.mubr.f32.gmra.mrb[52].mxu0 %v3523_v57 }
 0x306   :  { %v8520_v27 = vmul.f32 %v8401_v4, %v3075_v19  ;;  %v3033_v25 = vadd.f32 %v6013_v49, %v8380_v45  ;;  %v2834_v52 = vpop.f32.mrb[79].mxu1  ;;  %6097 = vmatprep.mubr.f32.mxu0 %v3524_v30  ;;  %6518 = vmatpush3.bf16.msra.mxu0 %v6515_v20  ;;  %v8537_v5 = vpop.permute.xlu0 %3278  ;;  %v6527_v20 = vpack.c.bf16 %v3513_v3, %v3512_v48 }
 0x307   :  { %v8524_v11 = vmul.f32 %v8406_v18, %v3074_v41  ;;  %v3032_v32 = vadd.f32 %v8380_v45, %v2834_v52  ;;  %6520 = vmatprep.subr.bf16.mxu0 %v6519_v61 }
 0x308   :  { %3427 = vst [vmem:[#allocation2 + $0x88] sm:$0xff] %v8520_v27  ;;  %v3077_v4 = vmax.f32 %v3033_v25, 0.0  ;;  %v3525_v17 = vld [vmem:[#allocation2 + $0x59] sm:$0xff]  ;;  %v3526_v8 = vld [vmem:[#allocation2 + $0x61] sm:$0xff] }
 0x309   :  { %3426 = vst [vmem:[#allocation2 + $0x80] sm:$0xff] %v8524_v11  ;;  %v3076_v18 = vmax.f32 %v3032_v32, 0.0  ;;  %v6016_v36 = vpop.f32.mrb[80].mxu1  ;;  %6098 = vmatmul.mubr.f32.gmra.mrb[54].mxu0 %v3525_v17  ;;  %v3304_v17 = vpop.permute.xlu1 %3303 }
 0x30a   :  { %v8540_v56 = vmul.f32 %v8423_v63, %v3077_v4  ;;  %v3035_v43 = vadd.f32 %v6016_v36, %v8380_v45  ;;  %v2844_v38 = vpop.f32.mrb[81].mxu1  ;;  %6100 = vmatprep.mubr.f32.mxu0 %v3526_v8  ;;  %6522 = vmatpush3.bf16.msra.mxu0 %v6519_v61  ;;  %v3289_v19 = vpop.permute.xlu0 %3288 }
 0x30b   :  { %v8544_v21 = vmul.f32 %v8426_v31, %v3076_v18  ;;  %v3034_v60 = vadd.f32 %v8380_v45, %v2844_v38  ;;  %6524 = vmatprep.subr.bf16.mxu0 %v6523_v24 }
 0x30c   :  { %3429 = vst [vmem:[#allocation2 + $0x98] sm:$0xff] %v8540_v56  ;;  %v3079_v63 = vmax.f32 %v3035_v43, 0.0  ;;  %v3527_v9 = vld [vmem:[#allocation2 + $0x69] sm:$0xff]  ;;  %v3528_v6 = vld [vmem:[#allocation2 + $0x71] sm:$0xff] }
 0x30d   :  { %3428 = vst [vmem:[#allocation2 + $0x90] sm:$0xff] %v8544_v21  ;;  %v3078_v31 = vmax.f32 %v3034_v60, 0.0  ;;  %v6019_v22 = vpop.f32.mrb[82].mxu1  ;;  %6101 = vmatmul.mubr.f32.gmra.mrb[56].mxu0 %v3527_v9 }
 0x30e   :  { %v8556_v47 = vmul.f32 %v8447_v54, %v3079_v63  ;;  %v3037_v29 = vadd.f32 %v6019_v22, %v8380_v45  ;;  %v2854_v53 = vpop.f32.mrb[83].mxu1  ;;  %6103 = vmatprep.mubr.f32.mxu0 %v3528_v6  ;;  %6526 = vmatpush3.bf16.msra.mxu0 %v6523_v24  ;;  %v3299_v3 = vpop.permute.xlu0 %3298 }
 0x30f   :  { %v8560_v34 = vmul.f32 %v8456_v0, %v3078_v31  ;;  %v3036_v61 = vadd.f32 %v8380_v45, %v2854_v53  ;;  %6528 = vmatprep.subr.bf16.mxu0 %v6527_v20 }
 0x310   :  { %3431 = vst [vmem:[#allocation2 + $0xa8] sm:$0xff] %v8556_v47  ;;  %v3081_v57 = vmax.f32 %v3037_v29, 0.0  ;;  %v3529_v54 = vld [vmem:[#allocation2 + $0x79] sm:$0xff]  ;;  %v3530_v30 = vld [vmem:[#allocation2 + $0x81] sm:$0xff] }
 0x311   :  { %3430 = vst [vmem:[#allocation2 + $0xa0] sm:$0xff] %v8560_v34  ;;  %v3080_v28 = vmax.f32 %v3036_v61, 0.0  ;;  %v6022_v41 = vpop.f32.mrb[84].mxu1  ;;  %6104 = vmatmul.mubr.f32.gmra.mrb[58].mxu0 %v3529_v54 }
 0x312   :  { %v8568_v49 = vmul.f32 %v8478_v16, %v3081_v57  ;;  %v3039_v0 = vadd.f32 %v6022_v41, %v8380_v45  ;;  %v2864_v25 = vpop.f32.mrb[85].mxu1  ;;  %6106 = vmatprep.mubr.f32.mxu0 %v3530_v30  ;;  %6530 = vmatpush3.bf16.msra.mxu0 %v6527_v20  ;;  %v3309_v29 = vpop.permute.xlu0 %3308 }
 0x313   :  { %v8572_v52 = vmul.f32 %v8481_v51, %v3080_v28  ;;  %v3038_v32 = vadd.f32 %v8380_v45, %v2864_v25  ;;  %6532 = vmatprep.subr.bf16.mxu0 %v8563_v62 }
 0x314   :  { %3433 = vst [vmem:[#allocation2 + $0xb8] sm:$0xff] %v8568_v49  ;;  %v3083_v24 = vmax.f32 %v3039_v0, 0.0  ;;  %v3531_v48 = vld [vmem:[#allocation2 + $0x89] sm:$0xff]  ;;  %v3532_v4 = vld [vmem:[#allocation2 + $0x91] sm:$0xff] }
 0x315   :  { %3432 = vst [vmem:[#allocation2 + $0xb0] sm:$0xff] %v8572_v52  ;;  %v3082_v16 = vmax.f32 %v3038_v32, 0.0  ;;  %v6025_v8 = vpop.f32.mrb[86].mxu1  ;;  %6107 = vmatmul.mubr.f32.gmra.mrb[60].mxu0 %v3531_v48 }
 0x316   :  { %v8579_v18 = vmul.f32 %v8503_v39, %v3083_v24  ;;  %v3041_v51 = vadd.f32 %v6025_v8, %v8380_v45  ;;  %v2874_v36 = vpop.f32.mrb[87].mxu1  ;;  %6109 = vmatprep.mubr.f32.mxu0 %v3532_v4 }
 0x317   :  { %v8583_v43 = vmul.f32 %v8512_v13, %v3082_v16  ;;  %v3040_v38 = vadd.f32 %v8380_v45, %v2874_v36  ;;  %v3314_v13 = vpop.permute.xlu1 %3313 }
 0x318   :  { %3435 = vst [vmem:[#allocation2 + $0xc8] sm:$0xff] %v8579_v18  ;;  %v3085_v60 = vmax.f32 %v3041_v51, 0.0  ;;  %v3533_v20 = vld [vmem:[#allocation2 + $0x99] sm:$0xff]  ;;  %v3534_v40 = vld [vmem:[#allocation2 + $0xa1] sm:$0xff] }
 0x319   :  { %3434 = vst [vmem:[#allocation2 + $0xc0] sm:$0xff] %v8583_v43  ;;  %v3084_v63 = vmax.f32 %v3040_v38, 0.0  ;;  %v6028_v9 = vpop.f32.mrb[88].mxu1  ;;  %6110 = vmatmul.mubr.f32.gmra.mrb[62].mxu0 %v3533_v20 }
 0x31a   :  { %v8589_v39 = vmul.f32 %v8534_v33, %v3085_v60  ;;  %v3043_v6 = vadd.f32 %v6028_v9, %v8380_v45  ;;  %v2884_v58 = vpop.f32.mrb[89].mxu1  ;;  %6112 = vmatprep.mubr.f32.mxu0 %v3534_v40 }
 0x31b   :  { %v8593_v31 = vmul.f32 %v8537_v5, %v3084_v63  ;;  %v3042_v22 = vadd.f32 %v8380_v45, %v2884_v58  ;;  %v3324_v48 = vpop.permute.xlu1 %3323 }
 0x31c   :  { %3437 = vst [vmem:[#allocation2 + $0xd8] sm:$0xff] %v8589_v39  ;;  %v3087_v53 = vmax.f32 %v3043_v6, 0.0  ;;  %v3535_v61 = vld [vmem:[#allocation2 + $0xa9] sm:$0xff]  ;;  %v3536_v57 = vld [vmem:[#allocation2 + $0xb1] sm:$0xff] }
 0x31d   :  { %3436 = vst [vmem:[#allocation2 + $0xd0] sm:$0xff] %v8593_v31  ;;  %v3086_v33 = vmax.f32 %v3042_v22, 0.0  ;;  %v6031_v54 = vpop.f32.mrb[90].mxu1  ;;  %6113 = vmatmul.mubr.f32.gmra.mrb[64].mxu0 %v3535_v61 }
 0x31e   :  { %v8598_v30 = vmul.f32 %v3294_v44, %v3087_v53  ;;  %v3045_v28 = vadd.f32 %v6031_v54, %v8380_v45  ;;  %v2894_v41 = vpop.f32.mrb[91].mxu1  ;;  %6115 = vmatprep.mubr.f32.mxu0 %v3536_v57  ;;  %v3319_v44 = vpop.permute.xlu0 %3318 }
 0x31f   :  { %v8601_v5 = vmul.f32 %v3289_v19, %v3086_v33  ;;  %v3044_v0 = vadd.f32 %v8380_v45, %v2894_v41 }
 0x320   :  { %3439 = vst [vmem:[#allocation2 + $0xe8] sm:$0xff] %v8598_v30  ;;  %v3089_v25 = vmax.f32 %v3045_v28, 0.0  ;;  %v3537_v32 = vld [vmem:[#allocation2 + $0xb9] sm:$0xff]  ;;  %v3538_v24 = vld [vmem:[#allocation2 + $0xc1] sm:$0xff] }
 0x321   :  { %3438 = vst [vmem:[#allocation2 + $0xe0] sm:$0xff] %v8601_v5  ;;  %v3088_v4 = vmax.f32 %v3044_v0, 0.0  ;;  %v6034_v16 = vpop.f32.mrb[92].mxu1  ;;  %6116 = vmatmul.mubr.f32.gmra.mrb[66].mxu0 %v3537_v32 }
 0x322   :  { %v8606_v8 = vmul.f32 %v3304_v17, %v3089_v25  ;;  %v3047_v51 = vadd.f32 %v6034_v16, %v8380_v45  ;;  %v2904_v19 = vpop.f32.mrb[93].mxu1  ;;  %6118 = vmatprep.mubr.f32.mxu0 %v3538_v24  ;;  %v3329_v61 = vpop.permute.xlu0 %3328 }
 0x323   :  { %v8609_v36 = vmul.f32 %v3299_v3, %v3088_v4  ;;  %v3046_v38 = vadd.f32 %v8380_v45, %v2904_v19  ;;  %v3334_v3 = vpop.permute.xlu1 %3333 }
 0x324   :  { %3441 = vst [vmem:[#allocation2 + $0xf8] sm:$0xff] %v8606_v8  ;;  %v3091_v60 = vmax.f32 %v3047_v51, 0.0  ;;  %v3539_v20 = vld [vmem:[#allocation2 + $0xc9] sm:$0xff]  ;;  %v3540_v40 = vld [vmem:[#allocation2 + $0xd1] sm:$0xff] }
 0x325   :  { %3440 = vst [vmem:[#allocation2 + $0xf0] sm:$0xff] %v8609_v36  ;;  %v3090_v63 = vmax.f32 %v3046_v38, 0.0  ;;  %v6037_v9 = vpop.f32.mrb[94].mxu1  ;;  %6119 = vmatmul.mubr.f32.gmra.mrb[68].mxu0 %v3539_v20 }
 0x326   :  { %v8614_v17 = vmul.f32 %v3314_v13, %v3091_v60  ;;  %v3049_v6 = vadd.f32 %v6037_v9, %v8380_v45  ;;  %v2914_v58 = vpop.f32.mrb[95].mxu1  ;;  %6121 = vmatprep.mubr.f32.mxu0 %v3540_v40 }
 0x327   :  { %v8617_v22 = vmul.f32 %v3309_v29, %v3090_v63  ;;  %v3048_v53 = vadd.f32 %v8380_v45, %v2914_v58  ;;  %v3344_v51 = vpop.permute.xlu1 %3343 }
 0x328   :  { %3443 = vst [vmem:[#allocation2 + $0x108] sm:$0xff] %v8614_v17  ;;  %v3093_v57 = vmax.f32 %v3049_v6, 0.0  ;;  %v3541_v33 = vld [vmem:[#allocation2 + $0xd9] sm:$0xff]  ;;  %v3542_v54 = vld [vmem:[#allocation2 + $0xe1] sm:$0xff] }
 0x329   :  { %3442 = vst [vmem:[#allocation2 + $0x100] sm:$0xff] %v8617_v22  ;;  %v3092_v28 = vmax.f32 %v3048_v53, 0.0  ;;  %v6040_v13 = vpop.f32.mrb[96].mxu1  ;;  %6122 = vmatmul.mubr.f32.gmra.mrb[70].mxu0 %v3541_v33 }
 0x32a   :  { %v8622_v41 = vmul.f32 %v3324_v48, %v3093_v57  ;;  %v3051_v0 = vadd.f32 %v6040_v13, %v8380_v45  ;;  %v2924_v25 = vpop.f32.mrb[97].mxu1  ;;  %6124 = vmatprep.mubr.f32.mxu0 %v3542_v54  ;;  %v3339_v48 = vpop.permute.xlu0 %3338 }
 0x32b   :  { %v8625_v29 = vmul.f32 %v3319_v44, %v3092_v28  ;;  %v3050_v32 = vadd.f32 %v8380_v45, %v2924_v25 }
 0x32c   :  { %3445 = vst [vmem:[#allocation2 + $0x118] sm:$0xff] %v8622_v41  ;;  %v3095_v24 = vmax.f32 %v3051_v0, 0.0  ;;  %v3543_v4 = vld [vmem:[#allocation2 + $0xe9] sm:$0xff]  ;;  %v3544_v16 = vld [vmem:[#allocation2 + $0xf1] sm:$0xff] }
 0x32d   :  { %3444 = vst [vmem:[#allocation2 + $0x110] sm:$0xff] %v8625_v29  ;;  %v3094_v19 = vmax.f32 %v3050_v32, 0.0  ;;  %v6043_v38 = vpop.f32.mrb[98].mxu1  ;;  %6125 = vmatmul.mubr.f32.gmra.mrb[72].mxu0 %v3543_v4 }
 0x32e   :  { %v8630_v60 = vmul.f32 %v3334_v3, %v3095_v24  ;;  %v3053_v20 = vadd.f32 %v6043_v38, %v8380_v45  ;;  %v2934_v44 = vpop.f32.mrb[99].mxu1  ;;  %6127 = vmatprep.mubr.f32.mxu0 %v3544_v16  ;;  %v3349_v0 = vpop.permute.xlu0 %3348 }
 0x32f   :  { %v8633_v40 = vmul.f32 %v3329_v61, %v3094_v19  ;;  %v3052_v63 = vadd.f32 %v8380_v45, %v2934_v44  ;;  %v3354_v61 = vpop.permute.xlu1 %3353 }
 0x330   :  { %3447 = vst [vmem:[#allocation2 + $0x128] sm:$0xff] %v8630_v60  ;;  %v3097_v9 = vmax.f32 %v3053_v20, 0.0  ;;  %v3545_v6 = vld [vmem:[#allocation2 + $0xf9] sm:$0xff]  ;;  %v3546_v58 = vld [vmem:[#allocation2 + $0x101] sm:$0xff] }
 0x331   :  { %3446 = vst [vmem:[#allocation2 + $0x120] sm:$0xff] %v8633_v40  ;;  %v3096_v53 = vmax.f32 %v3052_v63, 0.0  ;;  %v6046_v57 = vpop.f32.mrb[100].mxu1  ;;  %6128 = vmatmul.mubr.f32.gmra.mrb[74].mxu0 %v3545_v6 }
 0x332   :  { %v8638_v3 = vmul.f32 %v3344_v51, %v3097_v9  ;;  %v3055_v33 = vadd.f32 %v6046_v57, %v8380_v45  ;;  %v2944_v54 = vpop.f32.mrb[101].mxu1  ;;  %6130 = vmatprep.mubr.f32.mxu0 %v3546_v58 }
 0x333   :  { %v8641_v28 = vmul.f32 %v3339_v48, %v3096_v53  ;;  %v3054_v13 = vadd.f32 %v8380_v45, %v2944_v54  ;;  %v3364_v6 = vpop.permute.xlu1 %3363  ;;  %v3359_v53 = vpop.permute.xlu0 %3358 }
 0x334   :  { %3449 = vst [vmem:[#allocation2 + $0x138] sm:$0xff] %v8638_v3  ;;  %v3099_v25 = vmax.f32 %v3055_v33, 0.0  ;;  %v3547_v32 = vld [vmem:[#allocation2 + $0x109] sm:$0xff]  ;;  %v3548_v24 = vld [vmem:[#allocation2 + $0x111] sm:$0xff] }
 0x335   :  { %3448 = vst [vmem:[#allocation2 + $0x130] sm:$0xff] %v8641_v28  ;;  %v3098_v4 = vmax.f32 %v3054_v13, 0.0  ;;  %v6049_v16 = vpop.f32.mrb[102].mxu1  ;;  %6131 = vmatmul.mubr.f32.gmra.mrb[76].mxu0 %v3547_v32 }
 0x336   :  { %v8646_v51 = vmul.f32 %v3354_v61, %v3099_v25  ;;  %v3057_v19 = vadd.f32 %v6049_v16, %v8380_v45  ;;  %v2954_v38 = vpop.f32.mrb[103].mxu1  ;;  %6133 = vmatprep.mubr.f32.mxu0 %v3548_v24  ;;  %v4988_v24 = vld [vmem:[%s8852_s8 + $0x110] sm:$0xff] }
 0x337   :  { %v8649_v48 = vmul.f32 %v3349_v0, %v3098_v4  ;;  %v3056_v20 = vadd.f32 %v8380_v45, %v2954_v38  ;;  %v4989_v4 = vld [vmem:[%s8852_s8 + $0x118] sm:$0xff]  ;;  %v4991_v38 = vld [vmem:[%s8852_s8 + $0x128] sm:$0xff] }
 0x338   :  { %3451 = vst [vmem:[#allocation2 + $0x148] sm:$0xff] %v8646_v51  ;;  %v3101_v44 = vmax.f32 %v3057_v19, 0.0  ;;  %v3549_v63 = vld [vmem:[#allocation2 + $0x119] sm:$0xff]  ;;  %v3550_v9 = vld [vmem:[#allocation2 + $0x121] sm:$0xff]  ;;  %v6535_v16 = vpack.c.bf16 %v4989_v4, %v4988_v24 }
 0x339   :  { %3450 = vst [vmem:[#allocation2 + $0x140] sm:$0xff] %v8649_v48  ;;  %v3100_v58 = vmax.f32 %v3056_v20, 0.0  ;;  %6134 = vmatmul.mubr.f32.gmra.mrb[78].mxu0 %v3549_v63  ;;  %v4990_v19 = vld [vmem:[%s8852_s8 + $0x120] sm:$0xff]  ;;  %v4997_v63 = vld [vmem:[%s8852_s8 + $0x158] sm:$0xff]  ;;  %v4631_v4 = vld [vmem:[%s8854_s3 + $0x8] sm:$0xff] }
 0x33a   :  { %v8654_v57 = vmul.f32 %v3364_v6, %v3101_v44  ;;  %6136 = vmatprep.mubr.f32.mxu0 %v3550_v9  ;;  %v6539_v20 = vpack.c.bf16 %v4991_v38, %v4990_v19  ;;  %v4993_v44 = vld [vmem:[%s8852_s8 + $0x138] sm:$0xff]  ;;  %v4999_v9 = vld [vmem:[%s8852_s8 + $0x168] sm:$0xff]  ;;  %4707 = vmatprep.mubr.f32.mxu1 %v4631_v4 }
 0x33b   :  { %v8656_v33 = vmul.f32 %v3359_v53, %v3100_v58  ;;  %v5001_v6 = vld [vmem:[%s8852_s8 + $0x178] sm:$0xff]  ;;  %v4177_v58 = vld [vmem:[#allocation2 + $0x102] sm:$0xff]  ;;  %v4178_v53 = vld [vmem:[#allocation2 + $0x10a] sm:$0xff] }
 0x33c   :  { %3453 = vst [vmem:[#allocation2 + $0x158] sm:$0xff] %v8654_v57  ;;  %v3551_v54 = vld [vmem:[#allocation2 + $0x129] sm:$0xff]  ;;  %v3552_v45 = vld [vmem:[#allocation2 + $0x131] sm:$0xff] }
 0x33d   :  { %3452 = vst [vmem:[#allocation2 + $0x150] sm:$0xff] %v8656_v33  ;;  %6137 = vmatmul.mubr.f32.gmra.mrb[80].mxu0 %v3551_v54  ;;  %v4181_v54 = vld [vmem:[#allocation2 + $0x122] sm:$0xff] }
 0x33e   :  { %6139 = vmatprep.mubr.f32.mxu0 %v3552_v45  ;;  %v4182_v45 = vld [vmem:[#allocation2 + $0x12a] sm:$0xff] }
 0x340   :  { %v3553_v61 = vld [vmem:[#allocation2 + $0x139] sm:$0xff]  ;;  %v3554_v13 = vld [vmem:[#allocation2 + $0x141] sm:$0xff] }
 0x341   :  { %6140 = vmatmul.mubr.f32.gmra.mrb[82].mxu0 %v3553_v61  ;;  %v4183_v61 = vld [vmem:[#allocation2 + $0x132] sm:$0xff] }
 0x342   :  { %6142 = vmatprep.mubr.f32.mxu0 %v3554_v13  ;;  %v4184_v13 = vld [vmem:[#allocation2 + $0x13a] sm:$0xff] }
 0x343   :  { %v3557_v32 = vld [vmem:[#allocation2 + $0x159] sm:$0xff] }
 0x344   :  { %v3555_v0 = vld [vmem:[#allocation2 + $0x149] sm:$0xff]  ;;  %v3556_v25 = vld [vmem:[#allocation2 + $0x151] sm:$0xff]  ;;  %v4188_v24 = vld [vmem:[#allocation2 + $0x15a] sm:$0xff] }
 0x345   :  { %6143 = vmatmul.mubr.f32.gmra.mrb[84].mxu0 %v3555_v0  ;;  %v4185_v0 = vld [vmem:[#allocation2 + $0x142] sm:$0xff] }
 0x346   :  { %6145 = vmatprep.mubr.f32.mxu0 %v3556_v25  ;;  %v4186_v25 = vld [vmem:[#allocation2 + $0x14a] sm:$0xff] }
 0x349   :  { %6146 = vmatmul.mubr.f32.gmra.mrb[86].mxu0 %v3557_v32  ;;  %v4187_v32 = vld [vmem:[#allocation2 + $0x152] sm:$0xff] }
 0x34a   :  { %6180 = vmatprep.mubr.f32.mxu0 %v8393_v15  ;;  %v4992_v15 = vld [vmem:[%s8852_s8 + $0x130] sm:$0xff] }
 0x34d   :  { %6181 = vmatmul.mubr.f32.vlgmr.msra.gmra.mrb[44].mxu0 %v8390_v10  ;;  %v6543_v10 = vpack.c.bf16 %v4993_v44, %v4992_v15 }
 0x34e   :  { %6183 = vmatprep.mubr.f32.mxu0 %v8403_v50  ;;  %6534 = vmatpush3.bf16.msra.mxu0 %v8563_v62  ;;  %v4994_v50 = vld [vmem:[%s8852_s8 + $0x140] sm:$0xff]  ;;  %v4995_v62 = vld [vmem:[%s8852_s8 + $0x148] sm:$0xff] }
 0x34f   :  { %6536 = vmatprep.subr.bf16.mxu0 %v6535_v16 }
 0x351   :  { %6184 = vmatmul.mubr.f32.gmra.mrb[46].mxu0 %v8398_v12  ;;  %v6547_v12 = vpack.c.bf16 %v4995_v62, %v4994_v50 }
 0x352   :  { %6186 = vmatprep.mubr.f32.mxu0 %v8413_v46  ;;  %6538 = vmatpush3.bf16.msra.mxu0 %v6535_v16  ;;  %v4996_v46 = vld [vmem:[%s8852_s8 + $0x150] sm:$0xff]  ;;  %v8753_v16 = vld [vmem:[%s8855_s9] ss:$0 sm:$0xff] }
 0x353   :  { %6540 = vmatprep.subr.bf16.mxu0 %v6539_v20 }
 0x355   :  { %6187 = vmatmul.mubr.f32.gmra.mrb[48].mxu0 %v8410_v35  ;;  %v6551_v35 = vpack.c.bf16 %v4997_v63, %v4996_v46 }
 0x356   :  { %6189 = vmatprep.mubr.f32.mxu0 %v8431_v14  ;;  %6542 = vmatpush3.bf16.msra.mxu0 %v6539_v20  ;;  %v4998_v14 = vld [vmem:[%s8852_s8 + $0x160] sm:$0xff] }
 0x357   :  { %6544 = vmatprep.subr.bf16.mxu0 %v6543_v10 }
 0x359   :  { %6190 = vmatmul.mubr.f32.gmra.mrb[50].mxu0 %v8428_v55  ;;  %v6555_v55 = vpack.c.bf16 %v4999_v9, %v4998_v14 }
 0x35a   :  { %6192 = vmatprep.mubr.f32.mxu0 %v8450_v2  ;;  %6546 = vmatpush3.bf16.msra.mxu0 %v6543_v10  ;;  %v5000_v2 = vld [vmem:[%s8852_s8 + $0x170] sm:$0xff] }
 0x35b   :  { %6548 = vmatprep.subr.bf16.mxu0 %v6547_v12 }
 0x35d   :  { %6193 = vmatmul.mubr.f32.gmra.mrb[52].mxu0 %v8443_v59  ;;  %v6559_v59 = vpack.c.bf16 %v5001_v6, %v5000_v2 }
 0x35e   :  { %6195 = vmatprep.mubr.f32.mxu0 %v8468_v7  ;;  %6550 = vmatpush3.bf16.msra.mxu0 %v6547_v12  ;;  %v4146_v7 = vld [vmem:[#allocation2 + $0xa] sm:$0xff] }
 0x35f   :  { %6552 = vmatprep.subr.bf16.mxu0 %v6551_v35 }
 0x361   :  { %6196 = vmatmul.mubr.f32.gmra.mrb[54].mxu0 %v8464_v26  ;;  %v4145_v26 = vld [vmem:[#allocation2 + $0x2] sm:$0xff] }
 0x362   :  { %6198 = vmatprep.mubr.f32.mxu0 %v8488_v37  ;;  %6554 = vmatpush3.bf16.msra.mxu0 %v6551_v35  ;;  %v4148_v37 = vld [vmem:[#allocation2 + $0x1a] sm:$0xff] }
 0x363   :  { %6556 = vmatprep.subr.bf16.mxu0 %v6555_v55 }
 0x365   :  { %6199 = vmatmul.mubr.f32.gmra.mrb[56].mxu0 %v8484_v42  ;;  %v4147_v42 = vld [vmem:[#allocation2 + $0x12] sm:$0xff] }
 0x366   :  { %6201 = vmatprep.mubr.f32.mxu0 %v8506_v1  ;;  %6558 = vmatpush3.bf16.msra.mxu0 %v6555_v55  ;;  %v4150_v1 = vld [vmem:[#allocation2 + $0x2a] sm:$0xff] }
 0x367   :  { %6560 = vmatprep.subr.bf16.mxu0 %v6559_v59 }
 0x369   :  { %6202 = vmatmul.mubr.f32.gmra.mrb[58].mxu0 %v8500_v23  ;;  %v4149_v23 = vld [vmem:[#allocation2 + $0x22] sm:$0xff] }
 0x36a   :  { %6204 = vmatprep.mubr.f32.mxu0 %v8524_v11  ;;  %6562 = vmatpush3.bf16.msra.mxu0 %v6559_v59  ;;  %v4152_v11 = vld [vmem:[#allocation2 + $0x3a] sm:$0xff] }
 0x36d   :  { %6205 = vmatmul.mubr.f32.gmra.mrb[60].mxu0 %v8520_v27  ;;  %v4151_v27 = vld [vmem:[#allocation2 + $0x32] sm:$0xff] }
 0x36e   :  { %6207 = vmatprep.mubr.f32.mxu0 %v8544_v21  ;;  %v4154_v21 = vld [vmem:[#allocation2 + $0x4a] sm:$0xff] }
 0x371   :  { %6208 = vmatmul.mubr.f32.gmra.mrb[62].mxu0 %v8540_v56  ;;  %v4153_v56 = vld [vmem:[#allocation2 + $0x42] sm:$0xff] }
 0x372   :  { %6210 = vmatprep.mubr.f32.mxu0 %v8560_v34  ;;  %v4156_v34 = vld [vmem:[#allocation2 + $0x5a] sm:$0xff] }
 0x375   :  { %6211 = vmatmul.mubr.f32.gmra.mrb[64].mxu0 %v8556_v47  ;;  %v4155_v47 = vld [vmem:[#allocation2 + $0x52] sm:$0xff] }
 0x376   :  { %6213 = vmatprep.mubr.f32.mxu0 %v8572_v52  ;;  %v4158_v52 = vld [vmem:[#allocation2 + $0x6a] sm:$0xff] }
 0x379   :  { %6214 = vmatmul.mubr.f32.gmra.mrb[66].mxu0 %v8568_v49  ;;  %v4157_v49 = vld [vmem:[#allocation2 + $0x62] sm:$0xff] }
 0x37a   :  { %6216 = vmatprep.mubr.f32.mxu0 %v8583_v43  ;;  %v4160_v43 = vld [vmem:[#allocation2 + $0x7a] sm:$0xff] }
 0x37d   :  { %6217 = vmatmul.mubr.f32.gmra.mrb[68].mxu0 %v8579_v18  ;;  %v4159_v18 = vld [vmem:[#allocation2 + $0x72] sm:$0xff] }
 0x37e   :  { %6219 = vmatprep.mubr.f32.mxu0 %v8593_v31  ;;  %v4162_v31 = vld [vmem:[#allocation2 + $0x8a] sm:$0xff] }
 0x381   :  { %6220 = vmatmul.mubr.f32.gmra.mrb[70].mxu0 %v8589_v39  ;;  %v4161_v39 = vld [vmem:[#allocation2 + $0x82] sm:$0xff] }
 0x382   :  { %6222 = vmatprep.mubr.f32.mxu0 %v8601_v5  ;;  %v4164_v5 = vld [vmem:[#allocation2 + $0x9a] sm:$0xff] }
 0x385   :  { %6223 = vmatmul.mubr.f32.gmra.mrb[72].mxu0 %v8598_v30  ;;  %v4163_v30 = vld [vmem:[#allocation2 + $0x92] sm:$0xff] }
 0x386   :  { %6225 = vmatprep.mubr.f32.mxu0 %v8609_v36  ;;  %v4166_v36 = vld [vmem:[#allocation2 + $0xaa] sm:$0xff] }
 0x389   :  { %6226 = vmatmul.mubr.f32.gmra.mrb[74].mxu0 %v8606_v8  ;;  %v4165_v8 = vld [vmem:[#allocation2 + $0xa2] sm:$0xff] }
 0x38a   :  { %6228 = vmatprep.mubr.f32.mxu0 %v8617_v22  ;;  %v4168_v22 = vld [vmem:[#allocation2 + $0xba] sm:$0xff] }
 0x38d   :  { %6229 = vmatmul.mubr.f32.gmra.mrb[76].mxu0 %v8614_v17  ;;  %v4167_v17 = vld [vmem:[#allocation2 + $0xb2] sm:$0xff] }
 0x38e   :  { %6231 = vmatprep.mubr.f32.mxu0 %v8625_v29  ;;  %v4170_v29 = vld [vmem:[#allocation2 + $0xca] sm:$0xff] }
 0x391   :  { %6232 = vmatmul.mubr.f32.gmra.mrb[78].mxu0 %v8622_v41  ;;  %v4169_v41 = vld [vmem:[#allocation2 + $0xc2] sm:$0xff] }
 0x392   :  { %6234 = vmatprep.mubr.f32.mxu0 %v8633_v40  ;;  %v4172_v40 = vld [vmem:[#allocation2 + $0xda] sm:$0xff] }
 0x395   :  { %6235 = vmatmul.mubr.f32.gmra.mrb[80].mxu0 %v8630_v60  ;;  %v4171_v60 = vld [vmem:[#allocation2 + $0xd2] sm:$0xff] }
 0x396   :  { %6237 = vmatprep.mubr.f32.mxu0 %v8641_v28  ;;  %v4174_v28 = vld [vmem:[#allocation2 + $0xea] sm:$0xff] }
 0x399   :  { %6238 = vmatmul.mubr.f32.gmra.mrb[82].mxu0 %v8638_v3  ;;  %v4173_v3 = vld [vmem:[#allocation2 + $0xe2] sm:$0xff] }
 0x39a   :  { %6240 = vmatprep.mubr.f32.mxu0 %v8649_v48  ;;  %v4176_v48 = vld [vmem:[#allocation2 + $0xfa] sm:$0xff] }
 0x39d   :  { %6241 = vmatmul.mubr.f32.gmra.mrb[84].mxu0 %v8646_v51  ;;  %v4175_v51 = vld [vmem:[#allocation2 + $0xf2] sm:$0xff] }
 0x39e   :  { %6243 = vmatprep.mubr.f32.mxu0 %v8656_v33  ;;  %v4180_v33 = vld [vmem:[#allocation2 + $0x11a] sm:$0xff] }
 0x3a1   :  { %6244 = vmatmul.mubr.f32.gmra.mrb[86].mxu0 %v8654_v57  ;;  %v4179_v57 = vld [vmem:[#allocation2 + $0x112] sm:$0xff] }
 0x3a2   :  { %6278 = vmatprep.mubr.f32.mxu0 %v4145_v26 }
 0x3a5   :  { %6279 = vmatmul.mubr.f32.vlgmr.msra.gmra.mrb[44].mxu0 %v4146_v7 }
 0x3a6   :  { %6281 = vmatprep.mubr.f32.mxu0 %v4147_v42 }
 0x3a9   :  { %6282 = vmatmul.mubr.f32.gmra.mrb[46].mxu0 %v4148_v37 }
 0x3aa   :  { %6284 = vmatprep.mubr.f32.mxu0 %v4149_v23 }
 0x3ad   :  { %6285 = vmatmul.mubr.f32.gmra.mrb[48].mxu0 %v4150_v1 }
 0x3ae   :  { %6287 = vmatprep.mubr.f32.mxu0 %v4151_v27 }
 0x3b1   :  { %6288 = vmatmul.mubr.f32.gmra.mrb[50].mxu0 %v4152_v11 }
 0x3b2   :  { %6290 = vmatprep.mubr.f32.mxu0 %v4153_v56 }
 0x3b5   :  { %6291 = vmatmul.mubr.f32.gmra.mrb[52].mxu0 %v4154_v21 }
 0x3b6   :  { %6293 = vmatprep.mubr.f32.mxu0 %v4155_v47 }
 0x3b9   :  { %6294 = vmatmul.mubr.f32.gmra.mrb[54].mxu0 %v4156_v34 }
 0x3ba   :  { %6296 = vmatprep.mubr.f32.mxu0 %v4157_v49 }
 0x3bd   :  { %6297 = vmatmul.mubr.f32.gmra.mrb[56].mxu0 %v4158_v52 }
 0x3be   :  { %6299 = vmatprep.mubr.f32.mxu0 %v4159_v18 }
 0x3c1   :  { %6300 = vmatmul.mubr.f32.gmra.mrb[58].mxu0 %v4160_v43 }
 0x3c2   :  { %6302 = vmatprep.mubr.f32.mxu0 %v4161_v39 }
 0x3c5   :  { %6303 = vmatmul.mubr.f32.gmra.mrb[60].mxu0 %v4162_v31 }
 0x3c6   :  { %6305 = vmatprep.mubr.f32.mxu0 %v4163_v30 }
 0x3c9   :  { %6306 = vmatmul.mubr.f32.gmra.mrb[62].mxu0 %v4164_v5 }
 0x3ca   :  { %6308 = vmatprep.mubr.f32.mxu0 %v4165_v8 }
 0x3cd   :  { %6309 = vmatmul.mubr.f32.gmra.mrb[64].mxu0 %v4166_v36 }
 0x3ce   :  { %6311 = vmatprep.mubr.f32.mxu0 %v4167_v17 }
 0x3d1   :  { %6312 = vmatmul.mubr.f32.gmra.mrb[66].mxu0 %v4168_v22 }
 0x3d2   :  { %6314 = vmatprep.mubr.f32.mxu0 %v4169_v41 }
 0x3d5   :  { %6315 = vmatmul.mubr.f32.gmra.mrb[68].mxu0 %v4170_v29 }
 0x3d6   :  { %6317 = vmatprep.mubr.f32.mxu0 %v4171_v60 }
 0x3d9   :  { %6318 = vmatmul.mubr.f32.gmra.mrb[70].mxu0 %v4172_v40 }
 0x3da   :  { %6320 = vmatprep.mubr.f32.mxu0 %v4173_v3 }
 0x3dd   :  { %6321 = vmatmul.mubr.f32.gmra.mrb[72].mxu0 %v4174_v28 }
 0x3de   :  { %6323 = vmatprep.mubr.f32.mxu0 %v4175_v51 }
 0x3e1   :  { %6324 = vmatmul.mubr.f32.gmra.mrb[74].mxu0 %v4176_v48 }
 0x3e2   :  { %6326 = vmatprep.mubr.f32.mxu0 %v4177_v58 }
 0x3e5   :  { %6327 = vmatmul.mubr.f32.gmra.mrb[76].mxu0 %v4178_v53 }
 0x3e6   :  { %6329 = vmatprep.mubr.f32.mxu0 %v4179_v57 }
 0x3e9   :  { %6330 = vmatmul.mubr.f32.gmra.mrb[78].mxu0 %v4180_v33 }
 0x3ea   :  { %6332 = vmatprep.mubr.f32.mxu0 %v4181_v54 }
 0x3ed   :  { %6333 = vmatmul.mubr.f32.gmra.mrb[80].mxu0 %v4182_v45 }
 0x3ee   :  { %6335 = vmatprep.mubr.f32.mxu0 %v4183_v61 }
 0x3f1   :  { %6336 = vmatmul.mubr.f32.gmra.mrb[82].mxu0 %v4184_v13 }
 0x3f2   :  { %6338 = vmatprep.mubr.f32.mxu0 %v4185_v0 }
 0x3f5   :  { %6339 = vmatmul.mubr.f32.gmra.mrb[84].mxu0 %v4186_v25 }
 0x3f6   :  { %6341 = vmatprep.mubr.f32.mxu0 %v4187_v32 }
 0x3f9   :  { %6342 = vmatmul.mubr.f32.gmra.mrb[86].mxu0 %v4188_v24 }
 0x478   :  { %v6280_v19 = vpop.f32.mrb[44].mxu0 }
 0x479   :  { %v4543_v38 = vadd.f32 %v6280_v19, %v8753_v16  ;;  %v4272_v20 = vpop.f32.mrb[45].mxu0 }
 0x47a   :  { %v4542_v15 = vadd.f32 %v8753_v16, %v4272_v20 }
 0x47b   :  { %v4587_v44 = vmax.f32 %v4543_v38, 0.0 }
 0x47c   :  { %v4586_v10 = vmax.f32 %v4542_v15, 0.0  ;;  %v6283_v50 = vpop.f32.mrb[46].mxu0 }
 0x47d   :  { %v4545_v62 = vadd.f32 %v6283_v50, %v8753_v16  ;;  %v4282_v12 = vpop.f32.mrb[47].mxu0 }
 0x47e   :  { %v8758_v46 = vpack.c.bf16 %v4587_v44, %v4586_v10  ;;  %v4544_v63 = vadd.f32 %v8753_v16, %v4282_v12 }
 0x47f   :  { %v4589_v35 = vmax.f32 %v4545_v62, 0.0 }
 0x480   :  { %v4588_v14 = vmax.f32 %v4544_v63, 0.0  ;;  %v6286_v9 = vpop.f32.mrb[48].mxu0 }
 0x481   :  { %v4547_v55 = vadd.f32 %v6286_v9, %v8753_v16  ;;  %v4292_v2 = vpop.f32.mrb[49].mxu0 }
 0x482   :  { %v8762_v6 = vpack.c.bf16 %v4589_v35, %v4588_v14  ;;  %v4546_v59 = vadd.f32 %v8753_v16, %v4292_v2 }
 0x483   :  { %v4591_v26 = vmax.f32 %v4547_v55, 0.0 }
 0x484   :  { %v4590_v7 = vmax.f32 %v4546_v59, 0.0  ;;  %v6289_v42 = vpop.f32.mrb[50].mxu0 }
 0x485   :  { %v4549_v37 = vadd.f32 %v6289_v42, %v8753_v16  ;;  %v4302_v23 = vpop.f32.mrb[51].mxu0 }
 0x486   :  { %v8766_v1 = vpack.c.bf16 %v4591_v26, %v4590_v7  ;;  %v4548_v27 = vadd.f32 %v8753_v16, %v4302_v23 }
 0x487   :  { %v4593_v11 = vmax.f32 %v4549_v37, 0.0 }
 0x488   :  { %v4592_v56 = vmax.f32 %v4548_v27, 0.0  ;;  %v6292_v21 = vpop.f32.mrb[52].mxu0 }
 0x489   :  { %v4551_v47 = vadd.f32 %v6292_v21, %v8753_v16  ;;  %v4312_v34 = vpop.f32.mrb[53].mxu0 }
 0x48a   :  { %v8770_v49 = vpack.c.bf16 %v4593_v11, %v4592_v56  ;;  %v4550_v52 = vadd.f32 %v8753_v16, %v4312_v34 }
 0x48b   :  { %v4595_v18 = vmax.f32 %v4551_v47, 0.0 }
 0x48c   :  { %v4594_v43 = vmax.f32 %v4550_v52, 0.0  ;;  %v6295_v39 = vpop.f32.mrb[54].mxu0 }
 0x48d   :  { %v4553_v31 = vadd.f32 %v6295_v39, %v8753_v16  ;;  %v4322_v30 = vpop.f32.mrb[55].mxu0 }
 0x48e   :  { %v8774_v5 = vpack.c.bf16 %v4595_v18, %v4594_v43  ;;  %v4552_v8 = vadd.f32 %v8753_v16, %v4322_v30 }
 0x48f   :  { %v4597_v36 = vmax.f32 %v4553_v31, 0.0 }
 0x490   :  { %v4596_v17 = vmax.f32 %v4552_v8, 0.0  ;;  %v6298_v22 = vpop.f32.mrb[56].mxu0 }
 0x491   :  { %v4555_v41 = vadd.f32 %v6298_v22, %v8753_v16  ;;  %v4332_v29 = vpop.f32.mrb[57].mxu0 }
 0x492   :  { %v8778_v60 = vpack.c.bf16 %v4597_v36, %v4596_v17  ;;  %v4554_v40 = vadd.f32 %v8753_v16, %v4332_v29 }
 0x493   :  { %v4599_v3 = vmax.f32 %v4555_v41, 0.0 }
 0x494   :  { %v4598_v28 = vmax.f32 %v4554_v40, 0.0  ;;  %v6301_v51 = vpop.f32.mrb[58].mxu0 }
 0x495   :  { %v4557_v48 = vadd.f32 %v6301_v51, %v8753_v16  ;;  %v4342_v58 = vpop.f32.mrb[59].mxu0 }
 0x496   :  { %v8782_v53 = vpack.c.bf16 %v4599_v3, %v4598_v28  ;;  %v4556_v57 = vadd.f32 %v8753_v16, %v4342_v58 }
 0x497   :  { %v4601_v33 = vmax.f32 %v4557_v48, 0.0 }
 0x498   :  { %v4600_v54 = vmax.f32 %v4556_v57, 0.0  ;;  %v6304_v45 = vpop.f32.mrb[60].mxu0 }
 0x499   :  { %v4559_v61 = vadd.f32 %v6304_v45, %v8753_v16  ;;  %v4352_v13 = vpop.f32.mrb[61].mxu0 }
 0x49a   :  { %v8786_v0 = vpack.c.bf16 %v4601_v33, %v4600_v54  ;;  %v4558_v25 = vadd.f32 %v8753_v16, %v4352_v13 }
 0x49b   :  { %v4603_v32 = vmax.f32 %v4559_v61, 0.0 }
 0x49c   :  { %v4602_v24 = vmax.f32 %v4558_v25, 0.0  ;;  %v6307_v4 = vpop.f32.mrb[62].mxu0 }
 0x49d   :  { %v4561_v19 = vadd.f32 %v6307_v4, %v8753_v16  ;;  %v4362_v38 = vpop.f32.mrb[63].mxu0 }
 0x49e   :  { %v6563_v20 = vpack.c.bf16 %v4603_v32, %v4602_v24  ;;  %v4560_v15 = vadd.f32 %v8753_v16, %v4362_v38  ;;  %v4630_v32 = vld [vmem:[%s8854_s3] sm:$0xff] }
 0x49f   :  { %v4605_v44 = vmax.f32 %v4561_v19, 0.0 }
 0x4a0   :  { %v4604_v10 = vmax.f32 %v4560_v15, 0.0  ;;  %v6310_v50 = vpop.f32.mrb[64].mxu0  ;;  %6564 = vmatprep.subr.bf16.mxu1 %v6563_v20 }
 0x4a1   :  { %v4563_v62 = vadd.f32 %v6310_v50, %v8753_v16  ;;  %v4372_v12 = vpop.f32.mrb[65].mxu0  ;;  %6566 = vmatpush3.bf16.msra.mxu1 %v8758_v46 }
 0x4a2   :  { %v6567_v63 = vpack.c.bf16 %v4605_v44, %v4604_v10  ;;  %v4562_v35 = vadd.f32 %v8753_v16, %v4372_v12 }
 0x4a3   :  { %v4607_v14 = vmax.f32 %v4563_v62, 0.0  ;;  %v4632_v62 = vld [vmem:[%s8854_s3 + $0x10] sm:$0xff] }
 0x4a4   :  { %v4606_v9 = vmax.f32 %v4562_v35, 0.0  ;;  %v6313_v55 = vpop.f32.mrb[66].mxu0  ;;  %6568 = vmatprep.subr.bf16.mxu1 %v6567_v63 }
 0x4a5   :  { %v4565_v2 = vadd.f32 %v6313_v55, %v8753_v16  ;;  %v4382_v59 = vpop.f32.mrb[67].mxu0  ;;  %6570 = vmatpush3.bf16.msra.mxu1 %v8762_v6 }
 0x4a6   :  { %v6571_v26 = vpack.c.bf16 %v4607_v14, %v4606_v9  ;;  %v4564_v7 = vadd.f32 %v8753_v16, %v4382_v59 }
 0x4a7   :  { %v4609_v42 = vmax.f32 %v4565_v2, 0.0 }
 0x4a8   :  { %v4608_v37 = vmax.f32 %v4564_v7, 0.0  ;;  %v6316_v23 = vpop.f32.mrb[68].mxu0  ;;  %6572 = vmatprep.subr.bf16.mxu1 %v6571_v26 }
 0x4a9   :  { %v4567_v46 = vadd.f32 %v6316_v23, %v8753_v16  ;;  %v4392_v27 = vpop.f32.mrb[69].mxu0  ;;  %6574 = vmatpush3.bf16.msra.mxu1 %v8766_v1 }
 0x4aa   :  { %v6575_v11 = vpack.c.bf16 %v4609_v42, %v4608_v37  ;;  %v4566_v56 = vadd.f32 %v8753_v16, %v4392_v27 }
 0x4ab   :  { %v4611_v21 = vmax.f32 %v4567_v46, 0.0 }
 0x4ac   :  { %v4610_v47 = vmax.f32 %v4566_v56, 0.0  ;;  %v6319_v34 = vpop.f32.mrb[70].mxu0  ;;  %6576 = vmatprep.subr.bf16.mxu1 %v6575_v11 }
 0x4ad   :  { %v4569_v6 = vadd.f32 %v6319_v34, %v8753_v16  ;;  %v4402_v52 = vpop.f32.mrb[71].mxu0  ;;  %6578 = vmatpush3.bf16.msra.mxu1 %v8770_v49 }
 0x4ae   :  { %v6579_v18 = vpack.c.bf16 %v4611_v21, %v4610_v47  ;;  %v4568_v43 = vadd.f32 %v8753_v16, %v4402_v52 }
 0x4af   :  { %v4613_v39 = vmax.f32 %v4569_v6, 0.0 }
 0x4b0   :  { %v4612_v31 = vmax.f32 %v4568_v43, 0.0  ;;  %v6322_v30 = vpop.f32.mrb[72].mxu0  ;;  %6580 = vmatprep.subr.bf16.mxu1 %v6579_v18 }
 0x4b1   :  { %v4571_v1 = vadd.f32 %v6322_v30, %v8753_v16  ;;  %v4412_v8 = vpop.f32.mrb[73].mxu0  ;;  %6582 = vmatpush3.bf16.msra.mxu1 %v8774_v5 }
 0x4b2   :  { %v6583_v36 = vpack.c.bf16 %v4613_v39, %v4612_v31  ;;  %v4570_v17 = vadd.f32 %v8753_v16, %v4412_v8  ;;  %v4635_v39 = vld [vmem:[%s8854_s3 + $0x28] sm:$0xff] }
 0x4b3   :  { %v4615_v22 = vmax.f32 %v4571_v1, 0.0 }
 0x4b4   :  { %v4614_v41 = vmax.f32 %v4570_v17, 0.0  ;;  %v6325_v29 = vpop.f32.mrb[74].mxu0  ;;  %6584 = vmatprep.subr.bf16.mxu1 %v6583_v36 }
 0x4b5   :  { %v4573_v49 = vadd.f32 %v6325_v29, %v8753_v16  ;;  %v4422_v40 = vpop.f32.mrb[75].mxu0  ;;  %6586 = vmatpush3.bf16.msra.mxu1 %v8778_v60 }
 0x4b6   :  { %v6587_v3 = vpack.c.bf16 %v4615_v22, %v4614_v41  ;;  %v4572_v28 = vadd.f32 %v8753_v16, %v4422_v40 }
 0x4b7   :  { %v4617_v51 = vmax.f32 %v4573_v49, 0.0 }
 0x4b8   :  { %v4616_v48 = vmax.f32 %v4572_v28, 0.0  ;;  %v6328_v58 = vpop.f32.mrb[76].mxu0  ;;  %6588 = vmatprep.subr.bf16.mxu1 %v6587_v3 }
 0x4b9   :  { %v4575_v5 = vadd.f32 %v6328_v58, %v8753_v16  ;;  %v4432_v57 = vpop.f32.mrb[77].mxu0  ;;  %6590 = vmatpush3.bf16.msra.mxu1 %v8782_v53  ;;  %v4634_v53 = vld [vmem:[%s8854_s3 + $0x20] sm:$0xff] }
 0x4ba   :  { %v6591_v33 = vpack.c.bf16 %v4617_v51, %v4616_v48  ;;  %v4574_v54 = vadd.f32 %v8753_v16, %v4432_v57 }
 0x4bb   :  { %v4619_v45 = vmax.f32 %v4575_v5, 0.0 }
 0x4bc   :  { %v4618_v61 = vmax.f32 %v4574_v54, 0.0  ;;  %v6331_v13 = vpop.f32.mrb[78].mxu0  ;;  %6592 = vmatprep.subr.bf16.mxu1 %v6591_v33 }
 0x4bd   :  { %v4577_v60 = vadd.f32 %v6331_v13, %v8753_v16  ;;  %v4442_v25 = vpop.f32.mrb[79].mxu0  ;;  %6594 = vmatpush3.bf16.msra.mxu1 %v8786_v0  ;;  %v4633_v0 = vld [vmem:[%s8854_s3 + $0x18] sm:$0xff] }
 0x4be   :  { %v6595_v24 = vpack.c.bf16 %v4619_v45, %v4618_v61  ;;  %v4576_v4 = vadd.f32 %v8753_v16, %v4442_v25 }
 0x4bf   :  { %v4621_v19 = vmax.f32 %v4577_v60, 0.0 }
 0x4c0   :  { %v4620_v38 = vmax.f32 %v4576_v4, 0.0  ;;  %v6334_v20 = vpop.f32.mrb[80].mxu0  ;;  %6596 = vmatprep.subr.bf16.mxu1 %v6595_v24  ;;  %4708 = vmatmul.mubr.f32.vlgmr.msra.gmra.mrb[104].mxu1 %v4630_v32 }
 0x4c1   :  { %v4579_v15 = vadd.f32 %v6334_v20, %v8753_v16  ;;  %v4452_v44 = vpop.f32.mrb[81].mxu0  ;;  %6598 = vmatpush3.bf16.msra.mxu1 %v6595_v24  ;;  %4712 = vmatprep.mubr.f32.mxu1 %v4634_v53 }
 0x4c2   :  { %v6599_v10 = vpack.c.bf16 %v4621_v19, %v4620_v38  ;;  %v4578_v50 = vadd.f32 %v8753_v16, %v4452_v44 }
 0x4c3   :  { %v4623_v12 = vmax.f32 %v4579_v15, 0.0 }
 0x4c4   :  { %v4622_v63 = vmax.f32 %v4578_v50, 0.0  ;;  %v6337_v35 = vpop.f32.mrb[82].mxu0  ;;  %6600 = vmatprep.subr.bf16.mxu1 %v6599_v10  ;;  %4713 = vmatmul.mubr.f32.gmra.mrb[106].mxu1 %v4633_v0 }
 0x4c5   :  { %v4581_v14 = vadd.f32 %v6337_v35, %v8753_v16  ;;  %v4462_v9 = vpop.f32.mrb[83].mxu0  ;;  %6602 = vmatpush3.bf16.msra.mxu1 %v6599_v10  ;;  %6368 = vmatprep.mubr.msk.f32.mxu1 %vm4636_vm2, %v4632_v62 }
 0x4c6   :  { %v6603_v55 = vpack.c.bf16 %v4623_v12, %v4622_v63  ;;  %v4580_v2 = vadd.f32 %v8753_v16, %v4462_v9 }
 0x4c7   :  { %v4625_v59 = vmax.f32 %v4581_v14, 0.0 }
 0x4c8   :  { %v4624_v26 = vmax.f32 %v4580_v2, 0.0  ;;  %v6340_v7 = vpop.f32.mrb[84].mxu0  ;;  %6604 = vmatprep.subr.bf16.mxu1 %v6603_v55 }
 0x4c9   :  { %v4583_v42 = vadd.f32 %v6340_v7, %v8753_v16  ;;  %v4472_v37 = vpop.f32.mrb[85].mxu0  ;;  %6606 = vmatpush3.bf16.msra.mxu1 %v6603_v55 }
 0x4ca   :  { %v6607_v23 = vpack.c.bf16 %v4625_v59, %v4624_v26  ;;  %v4582_v46 = vadd.f32 %v8753_v16, %v4472_v37 }
 0x4cb   :  { %v4627_v27 = vmax.f32 %v4583_v42, 0.0 }
 0x4cc   :  { %v4626_v11 = vmax.f32 %v4582_v46, 0.0  ;;  %v6343_v56 = vpop.f32.mrb[86].mxu0  ;;  %6608 = vmatprep.subr.bf16.mxu1 %v6607_v23 }
 0x4cd   :  { %v4585_v21 = vadd.f32 %v6343_v56, %v8753_v16  ;;  %v4482_v47 = vpop.f32.mrb[87].mxu0  ;;  %6610 = vmatpush3.bf16.msra.mxu1 %v6607_v23 }
 0x4ce   :  { %v6611_v34 = vpack.c.bf16 %v4627_v27, %v4626_v11  ;;  %v4584_v6 = vadd.f32 %v8753_v16, %v4482_v47 }
 0x4cf   :  { %v4629_v52 = vmax.f32 %v4585_v21, 0.0 }
 0x4d0   :  { %v4628_v18 = vmax.f32 %v4584_v6, 0.0  ;;  %6612 = vmatprep.subr.bf16.mxu1 %v6611_v34 }
 0x4d1   :  { %6614 = vmatpush3.bf16.msra.mxu1 %v6611_v34 }
 0x4d2   :  { %v6615_v43 = vpack.c.bf16 %v4629_v52, %v4628_v18 }
 0x4d4   :  { %6616 = vmatprep.subr.bf16.mxu1 %v6615_v43 }
 0x4d5   :  { %6618 = vmatpush3.bf16.msra.mxu1 %v6615_v43 }
 0x4d8   :  { %6369 = vmatmul.mubr.msk.f32.vlgmr.msra.gmra.mrb[108].mxu1 %vm4636_vm2, %v4635_v39 }
 0x593   :  { %v5532_v31 = vpop.f32.mrb[104].mxu1 }
 0x594   :  { %v5533_v30 = vpop.f32.mrb[105].mxu1 }
 0x595   :  { %v5534_v1 = vadd.f32 %v5533_v30, %v5532_v31 }
 0x597   :  { %v5535_v8 = vpop.f32.mrb[106].mxu1 }
 0x598   :  { %v5536_v36 = vpop.f32.mrb[107].mxu1 }
 0x599   :  { %v5537_v17 = vadd.f32 %v5536_v36, %v5535_v8 }
 0x5ab   :  { %v6370_v16 = vpop.f32.mrb[108].mxu1 }
 0x5ac   :  { %v4790_v22 = vadd.f32 %v6370_v16, %v5537_v17  ;;  %v4784_v41 = vpop.f32.mrb[109].mxu1 }
 0x5ad   :  { %v4785_v29 = vadd.f32 %v5534_v1, %v4784_v41 }
 0x5ae   :  { %4794 = vst [vmem:[%s8856_s10 + $0x8] sm:$0xff] %v4790_v22 }
 0x5af   :  { %4793 = vst [vmem:[%s8856_s10] sm:$0xff] %v4785_v29 }

</bundles_post_ra>
